<compile_context>
chip_gen: v7x
topology: tpu7x:2x2x1
jax: 0.10.0
libtpu: 0.0.40
codegen_flags: <defaults>
</compile_context>

<pallas_src>
import functools

import jax
import jax.numpy as jnp
import numpy as np
from jax import lax
from jax.experimental import pallas as pl
from jax.experimental.pallas import tpu as pltpu

KERNEL_SIZE = 7


# --------------------------------------------------------------------------------------
# Kernels
# --------------------------------------------------------------------------------------
def _sa_mxu_kernel(b_ref, x_ref, band_ref, o_ref, sum_ref, max_ref, *, inv_c):
    """MXU path.  One (batch-block, channel-block) grid step.

    b_ref    : SMEM (1,)          f32  conv bias
    x_ref    : VMEM (bn, ct, HW)       one channel tile of bn batch elements
    band_ref : VMEM (2, HW, HW)   f32  banded conv matrices [avg | max], padding folded in
    o_ref    : VMEM (bn, 1, HW)        attention map (written on last channel step)
    sum_ref  : VMEM (bn, HW)      f32  running channel sum  (scratch)
    max_ref  : VMEM (bn, HW)      f32  running channel max  (scratch)
    """
    c_idx = pl.program_id(1)

    @pl.when(c_idx == 0)
    def _():
        sum_ref[...] = jnp.zeros(sum_ref.shape, jnp.float32)
        max_ref[...] = jnp.full(max_ref.shape, -jnp.inf, jnp.float32)

    # Single full-tile load + sublane reductions (one pass over the data).
    xv = x_ref[...].astype(jnp.float32)                       # (bn, ct, HW)
    sum_ref[...] = sum_ref[...] + jnp.sum(xv, axis=1)
    max_ref[...] = jnp.maximum(max_ref[...], jnp.max(xv, axis=1))

    @pl.when(c_idx == pl.num_programs(1) - 1)
    def _():
        avg = sum_ref[...] * inv_c                            # (bn, HW)
        mx = max_ref[...]
        acc = jnp.dot(avg, band_ref[0],
                      preferred_element_type=jnp.float32,
                      precision=lax.Precision.HIGHEST)
        acc = acc + jnp.dot(mx, band_ref[1],
                            preferred_element_type=jnp.float32,
                            precision=lax.Precision.HIGHEST)
        acc = acc + b_ref[0]
        o_ref[:, 0, :] = jax.nn.sigmoid(acc).astype(o_ref.dtype)


def _sa_roll_kernel(w_ref, b_ref, mask_ref, x_ref, o_ref, sum_ref, max_ref,
                    *, inv_c, H, W, K):
    """Fallback (large HW): 7x7 conv via hoisted masked lane rolls on the VPU/XLU.

    w_ref    : SMEM (2*K*K,) f32  flattened conv weight [avg-channel | max-channel]
    b_ref    : SMEM (1,)     f32  conv bias
    mask_ref : VMEM (2K, HW) f32  rows 0..K-1: row-validity per ki; K..2K-1: col per kj
    x_ref    : VMEM (bn, ct, HW)
    o_ref    : VMEM (bn, 1, HW)
    sum_ref / max_ref : VMEM (bn, HW) f32 scratch
    """
    HW = H * W
    p = K // 2
    c_idx = pl.program_id(1)

    @pl.when(c_idx == 0)
    def _():
        sum_ref[...] = jnp.zeros(sum_ref.shape, jnp.float32)
        max_ref[...] = jnp.full(max_ref.shape, -jnp.inf, jnp.float32)

    xv = x_ref[...].astype(jnp.float32)                       # (bn, ct, HW)
    sum_ref[...] = sum_ref[...] + jnp.sum(xv, axis=1)
    max_ref[...] = jnp.maximum(max_ref[...], jnp.max(xv, axis=1))

    @pl.when(c_idx == pl.num_programs(1) - 1)
    def _():
        avg = sum_ref[...] * inv_c                            # (bn, HW)
        mx = max_ref[...]
        masks = mask_ref[...]                                 # (2K, HW)

        # Hoisted row shifts: 14 rolls total instead of 98 2-D window slices.
        pre = [jnp.zeros(avg.shape, jnp.float32) for _ in range(K)]
        for c, plane in enumerate((avg, mx)):
            for ki in range(K):
                di = ki - p
                shift = (-di * W) % HW                        # rolled[q] = plane[q + di*W]
                t = plane if shift == 0 else pltpu.roll(plane, shift, axis=1)
                t = t * masks[ki:ki + 1, :]                   # zero rows shifted past edge
                for kj in range(K):
                    w = w_ref[c * K * K + ki * K + kj]
                    pre[kj] = pre[kj] + w * t

        acc = jnp.full(avg.shape, b_ref[0], jnp.float32)
        for kj in range(K):
            dj = kj - p
            shift = (-dj) % HW                                # rolled[q] = pre[q + dj]
            r = pre[kj] if shift == 0 else pltpu.roll(pre[kj], shift, axis=1)
            acc = acc + masks[K + kj:K + kj + 1, :] * r

        o_ref[:, 0, :] = jax.nn.sigmoid(acc).astype(o_ref.dtype)


# --------------------------------------------------------------------------------------
# Host-side helpers
# --------------------------------------------------------------------------------------
def _vmem_capacity_bytes():
    try:
        cap = int(getattr(pltpu.get_tpu_info(), "vmem_capacity_bytes", 0))
        if cap > 0:
            return cap
    except Exception:
        pass
    return 128 * 1024 * 1024


def _pick_ct(C, HW, budget_bytes):
    """Largest divisor of C that is (a multiple of 8 or C itself) and fits the budget."""
    cands = [d for d in range(1, C + 1) if C % d == 0 and (d == C or d % 8 == 0)]
    fitting = [d for d in cands if d * HW * 4 <= budget_bytes]
    return max(fitting) if fitting else min(cands)


def _band_matrices(weight, H, W, K):
    """(2, HW, HW) f32 band matrices with 7x7 weights + zero padding folded in.

    out[r] = sum_q in[q] * band[q, r]  (matches conv with zero padding, stride 1).
    """
    p = K // 2
    HW = H * W
    rows = np.arange(HW) // W
    cols = np.arange(HW) % W
    di = rows[:, None] - rows[None, :]                        # row(q) - row(r)
    dj = cols[:, None] - cols[None, :]
    valid = (np.abs(di) <= p) & (np.abs(dj) <= p)
    ki = np.clip(di + p, 0, K - 1)
    kj = np.clip(dj + p, 0, K - 1)
    valid_f = jnp.asarray(valid.astype(np.float32))
    w32 = weight.astype(jnp.float32)
    band_a = valid_f * w32[0, 0][ki, kj]
    band_m = valid_f * w32[0, 1][ki, kj]
    return jnp.stack([band_a, band_m], axis=0)                # (2, HW, HW)


# --------------------------------------------------------------------------------------
# Wrapper
# --------------------------------------------------------------------------------------
def spatial_attention(x, weight, bias, *, bn=None, ct=None, use_mxu=None):
    """x: (N, C, H, W); weight: (1, 2, K, K); bias: (1,). Returns (N, 1, H, W)."""
    N, C, H, W = x.shape
    K = KERNEL_SIZE
    p = K // 2
    HW = H * W

    # ---- generation-aware budgets ----
    cap = _vmem_capacity_bytes()
    vmem_limit = min(64 * 1024 * 1024, (cap * 3) // 4)        # 64 MiB v5e/v6e, 48 MiB v7x
    x_block_budget = 8 * 1024 * 1024 if cap <= 64 * 1024 * 1024 else 12 * 1024 * 1024

    # MXU banded-matmul conv when the (2, HW, HW) band matrices stay small
    # (<= 8 MiB, <= 16 MiB double-buffered); otherwise the roll/mask fallback.
    if use_mxu is None:
        use_mxu = HW <= 1024

    # ---- channel tile (sublane axis: multiple of 8 or full C) ----
    if ct is None:
        ct = _pick_ct(C, HW, 2 * 1024 * 1024)
    else:
        if C % ct != 0 or not (ct == C or ct % 8 == 0):
            raise ValueError(
                f"ct={ct} must divide C={C} and be a multiple of 8 (or equal C)")
    nc = C // ct

    # ---- batch tile ----
    per_elem = ct * HW * 4
    bn_cap = 128 if use_mxu else 16         # bound final-step vreg pressure
    if bn is None:
        bn = max(1, min(x_block_budget // per_elem, bn_cap, N))
        if N >= 2:
            bn = min(bn, (N + 1) // 2)      # nb >= 2: keep both v7x TensorCores busy
        if bn >= 8:
            bn = (bn // 8) * 8              # sublane-aligned loads/scratch when possible
    else:
        bn = max(1, min(bn, N))
    nb = -(-N // bn)
    n_pad = nb * bn

    # ---- lane-dense layout + batch padding (padded rows computed then dropped) ----
    x_flat = x.reshape(N, C, HW)
    if n_pad != N:
        x_flat = jnp.pad(x_flat, ((0, n_pad - N), (0, 0), (0, 0)))

    b = bias.reshape(-1).astype(jnp.float32)
    cparams = pltpu.CompilerParams(
        dimension_semantics=("parallel", "arbitrary"),
        vmem_limit_bytes=vmem_limit)

    if use_mxu:
        band = _band_matrices(weight, H, W, K)                # (2, HW, HW)
        kernel = functools.partial(_sa_mxu_kernel, inv_c=1.0 / C)
        out_flat = pl.pallas_call(
            kernel,
            out_shape=jax.ShapeDtypeStruct((n_pad, 1, HW), x.dtype),
            grid=(nb, nc),
            in_specs=[
                pl.BlockSpec(memory_space=pltpu.MemorySpace.SMEM),       # bias
                pl.BlockSpec((bn, ct, HW), lambda b_, c_: (b_, c_, 0)),  # x channel tile
                pl.BlockSpec((2, HW, HW), lambda b_, c_: (0, 0, 0)),     # band matrices
            ],
            out_specs=pl.BlockSpec((bn, 1, HW), lambda b_, c_: (b_, 0, 0)),
            scratch_shapes=[pltpu.VMEM((bn, HW), jnp.float32),           # running sum
                            pltpu.VMEM((bn, HW), jnp.float32)],          # running max
            compiler_params=cparams,
        )(b, x_flat, band)
    else:
        # Roll/mask fallback for large HW (band matrices would not fit VMEM).
        w_flat = weight.reshape(-1).astype(jnp.float32)                  # (2*K*K,)
        rows = np.arange(HW) // W
        cols = np.arange(HW) % W
        row_masks = np.stack(
            [((rows + (ki - p) >= 0) & (rows + (ki - p) < H)) for ki in range(K)])
        col_masks = np.stack(
            [((cols + (kj - p) >= 0) & (cols + (kj - p) < W)) for kj in range(K)])
        masks = jnp.asarray(
            np.concatenate([row_masks, col_masks], axis=0).astype(np.float32))
        kernel = functools.partial(_sa_roll_kernel, inv_c=1.0 / C, H=H, W=W, K=K)
        out_flat = pl.pallas_call(
            kernel,
            out_shape=jax.ShapeDtypeStruct((n_pad, 1, HW), x.dtype),
            grid=(nb, nc),
            in_specs=[
                pl.BlockSpec(memory_space=pltpu.MemorySpace.SMEM),       # conv weight
                pl.BlockSpec(memory_space=pltpu.MemorySpace.SMEM),       # conv bias
                pl.BlockSpec((2 * K, HW), lambda b_, c_: (0, 0)),        # boundary masks
                pl.BlockSpec((bn, ct, HW), lambda b_, c_: (b_, c_, 0)),  # x channel tile
            ],
            out_specs=pl.BlockSpec((bn, 1, HW), lambda b_, c_: (b_, 0, 0)),
            scratch_shapes=[pltpu.VMEM((bn, HW), jnp.float32),
                            pltpu.VMEM((bn, HW), jnp.float32)],
            compiler_params=cparams,
        )(w_flat, b, masks, x_flat)

    return out_flat[:N].reshape(N, 1, H, W)


# --------------------------------------------------------------------------------------
# Pure-JAX reference
# --------------------------------------------------------------------------------------
def spatial_attention_ref(x, weight, bias):
    avg = jnp.mean(x, axis=1, keepdims=True)
    mx = jnp.max(x, axis=1, keepdims=True)
    inp = jnp.concatenate([avg, mx], axis=1)                  # (N, 2, H, W)
    p = KERNEL_SIZE // 2
    out = lax.conv_general_dilated(
        inp, weight, window_strides=(1, 1),
        padding=((p, p), (p, p)),
        dimension_numbers=("NCHW", "OIHW", "NCHW"),
        precision=lax.Precision.HIGHEST)
    out = out + bias.reshape(1, -1, 1, 1)
    return jax.nn.sigmoid(out)


if __name__ == "__main__":
    key = jax.random.PRNGKey(0)
    kx, kw, kb, kx2, kx3 = jax.random.split(key, 5)

    K = KERNEL_SIZE
    bound = 1.0 / np.sqrt(2 * K * K)
    weight = jax.random.uniform(kw, (1, 2, K, K), jnp.float32, -bound, bound)
    bias = jax.random.uniform(kb, (1,), jnp.float32, -bound, bound)

    # Test 1: module's small test shape; MXU banded-matmul conv path, nb=2 batch blocks.
    N, C, H, W = 2, 4, 16, 16
    x = jax.random.normal(kx, (N, C, H, W), jnp.float32)
    out = jax.block_until_ready(spatial_attention(x, weight, bias))
    ref = jax.block_until_ready(spatial_attention_ref(x, weight, bias))
    np.testing.assert_allclose(np.asarray(out), np.asarray(ref), rtol=1e-5, atol=1e-5)
    assert out.shape == (N, 1, H, W)

    # Test 2: channel-tiled running sum/max accumulator path (C split over 2 grid steps).
    x2 = jax.random.normal(kx2, (2, 16, H, W), jnp.float32)
    out2 = jax.block_until_ready(spatial_attention(x2, weight, bias, ct=8))
    ref2 = jax.block_until_ready(spatial_attention_ref(x2, weight, bias))
    np.testing.assert_allclose(np.asarray(out2), np.asarray(ref2), rtol=1e-5, atol=1e-5)

    # Test 3: roll/mask fallback path (used automatically when HW is large).
    out3 = jax.block_until_ready(spatial_attention(x, weight, bias, use_mxu=False))
    np.testing.assert_allclose(np.asarray(out3), np.asarray(ref), rtol=1e-5, atol=1e-5)

    # Test 4: non-divisor batch (N=5 -> bn=3, nb=2, one zero-padded row dropped at end).
    x3 = jax.random.normal(kx3, (5, 8, H, W), jnp.float32)
    out4 = jax.block_until_ready(spatial_attention(x3, weight, bias))
    ref4 = jax.block_until_ready(spatial_attention_ref(x3, weight, bias))
    np.testing.assert_allclose(np.asarray(out4), np.asarray(ref4), rtol=1e-5, atol=1e-5)

    print("KERNEL_OK")
</pallas_src>

<mosaic_0001>
module attributes {stable_mosaic.version = 11 : i64} {
  func.func @_sa_mxu_kernel(%arg0: i32, %arg1: i32, %arg2: memref<1xf32, #tpu.memory_space<smem>>, %arg3: memref<1x4x256xf32, #tpu.memory_space<vmem>>, %arg4: memref<2x256x256xf32, #tpu.memory_space<vmem>>, %arg5: memref<1x1x256xf32, #tpu.memory_space<vmem>>, %arg6: memref<1x256xf32, #tpu.memory_space<vmem>>, %arg7: memref<1x256xf32, #tpu.memory_space<vmem>>) attributes {dimension_semantics = [#tpu.dimension_semantics<parallel>, #tpu.dimension_semantics<arbitrary>], iteration_bounds = array<i64: 2, 1>, scalar_prefetch = 0 : i64, scratch_operands = 2 : i64, tpu.core_type = #tpu.core_type<tc>, window_params = [{transform_indices = @transform_0, window_bounds = array<i64: 1>}, {transform_indices = @transform_1, window_bounds = array<i64: 1, 4, 256>}, {pipeline_mode = #tpu.pipeline_mode<synchronous>, transform_indices = @transform_2, window_bounds = array<i64: 2, 256, 256>}, {transform_indices = @transform_3, window_bounds = array<i64: 1, 1, 256>}]} {
    %c0_i32 = arith.constant 0 : i32
    %0 = arith.cmpi eq, %arg1, %c0_i32 : i32
    %1 = arith.extui %0 : i1 to i32
    %c0_i32_0 = arith.constant 0 : i32
    %2 = arith.cmpi ne, %1, %c0_i32_0 : i32
    scf.if %2 {
      %cst_14 = arith.constant 0.000000e+00 : f32
      %15 = vector.broadcast %cst_14 : f32 to vector<1x256xf32>
      %c0_15 = arith.constant 0 : index
      %c0_16 = arith.constant 0 : index
      %16 = vector.load %arg6[%c0_15, %c0_16] : memref<1x256xf32, #tpu.memory_space<vmem>>, vector<1x256xf32>
      tpu.vector_store %arg6[%c0_15, %c0_16], %15 {strides = array<i32>} : memref<1x256xf32, #tpu.memory_space<vmem>>, vector<1x256xf32>,
      %cst_17 = arith.constant 0xFF800000 : f32
      %17 = vector.broadcast %cst_17 : f32 to vector<1x256xf32>
      %c0_18 = arith.constant 0 : index
      %c0_19 = arith.constant 0 : index
      %18 = vector.load %arg7[%c0_18, %c0_19] : memref<1x256xf32, #tpu.memory_space<vmem>>, vector<1x256xf32>
      tpu.vector_store %arg7[%c0_18, %c0_19], %17 {strides = array<i32>} : memref<1x256xf32, #tpu.memory_space<vmem>>, vector<1x256xf32>,
    } else {
    }
    %c0 = arith.constant 0 : index
    %c0_1 = arith.constant 0 : index
    %c0_2 = arith.constant 0 : index
    %3 = vector.load %arg3[%c0, %c0_1, %c0_2] : memref<1x4x256xf32, #tpu.memory_space<vmem>>, vector<1x4x256xf32>
    %c0_3 = arith.constant 0 : index
    %c0_4 = arith.constant 0 : index
    %4 = vector.load %arg6[%c0_3, %c0_4] : memref<1x256xf32, #tpu.memory_space<vmem>>, vector<1x256xf32>
    %cst = arith.constant dense<0.000000e+00> : vector<1x256xf32>
    %5 = vector.multi_reduction <add>, %3, %cst [1] : vector<1x4x256xf32> to vector<1x256xf32>
    %6 = arith.addf %4, %5 : vector<1x256xf32>
    %c0_5 = arith.constant 0 : index
    %c0_6 = arith.constant 0 : index
    %7 = vector.load %arg6[%c0_5, %c0_6] : memref<1x256xf32, #tpu.memory_space<vmem>>, vector<1x256xf32>
    tpu.vector_store %arg6[%c0_5, %c0_6], %6 {strides = array<i32>} : memref<1x256xf32, #tpu.memory_space<vmem>>, vector<1x256xf32>,
    %c0_7 = arith.constant 0 : index
    %c0_8 = arith.constant 0 : index
    %8 = vector.load %arg7[%c0_7, %c0_8] : memref<1x256xf32, #tpu.memory_space<vmem>>, vector<1x256xf32>
    %cst_9 = arith.constant dense<0xFF800000> : vector<1x256xf32>
    %9 = vector.multi_reduction <maximumf>, %3, %cst_9 [1] : vector<1x4x256xf32> to vector<1x256xf32>
    %10 = arith.maximumf %8, %9 : vector<1x256xf32>
    %c0_10 = arith.constant 0 : index
    %c0_11 = arith.constant 0 : index
    %11 = vector.load %arg7[%c0_10, %c0_11] : memref<1x256xf32, #tpu.memory_space<vmem>>, vector<1x256xf32>
    tpu.vector_store %arg7[%c0_10, %c0_11], %10 {strides = array<i32>} : memref<1x256xf32, #tpu.memory_space<vmem>>, vector<1x256xf32>,
    %c0_i32_12 = arith.constant 0 : i32
    %12 = arith.cmpi eq, %arg1, %c0_i32_12 : i32
    %13 = arith.extui %12 : i1 to i32
    %c0_i32_13 = arith.constant 0 : i32
    %14 = arith.cmpi ne, %13, %c0_i32_13 : i32
    scf.if %14 {
      %c0_14 = arith.constant 0 : index
      %c0_15 = arith.constant 0 : index
      %15 = vector.load %arg6[%c0_14, %c0_15] : memref<1x256xf32, #tpu.memory_space<vmem>>, vector<1x256xf32>
      %cst_16 = arith.constant 2.500000e-01 : f32
      %16 = vector.broadcast %cst_16 : f32 to vector<1x256xf32>
      %17 = arith.mulf %15, %16 : vector<1x256xf32>
      %c0_17 = arith.constant 0 : index
      %c0_18 = arith.constant 0 : index
      %18 = vector.load %arg7[%c0_17, %c0_18] : memref<1x256xf32, #tpu.memory_space<vmem>>, vector<1x256xf32>
      %c0_19 = arith.constant 0 : index
      %c0_20 = arith.constant 0 : index
      %c0_21 = arith.constant 0 : index
      %19 = vector.load %arg4[%c0_19, %c0_20, %c0_21] : memref<2x256x256xf32, #tpu.memory_space<vmem>>, vector<1x256x256xf32>
      %20 = vector.shape_cast %19 : vector<1x256x256xf32> to vector<256x256xf32>
      %cst_22 = arith.constant dense<0.000000e+00> : vector<1x256xf32>
      %21 = tpu.matmul %17, %20, %cst_22 {dimension_numbers = #tpu.dot_dimension_numbers<[1], [0], [0], [1], [0, 0, 1, 1], [], []>, precision = #tpu.contract_precision<fp32>} : vector<1x256xf32>, vector<256x256xf32>, vector<1x256xf32> -> vector<1x256xf32>
      %c1 = arith.constant 1 : index
      %c0_23 = arith.constant 0 : index
      %c0_24 = arith.constant 0 : index
      %22 = vector.load %arg4[%c1, %c0_23, %c0_24] : memref<2x256x256xf32, #tpu.memory_space<vmem>>, vector<1x256x256xf32>
      %23 = vector.shape_cast %22 : vector<1x256x256xf32> to vector<256x256xf32>
      %cst_25 = arith.constant dense<0.000000e+00> : vector<1x256xf32>
      %24 = tpu.matmul %18, %23, %cst_25 {dimension_numbers = #tpu.dot_dimension_numbers<[1], [0], [0], [1], [0, 0, 1, 1], [], []>, precision = #tpu.contract_precision<fp32>} : vector<1x256xf32>, vector<256x256xf32>, vector<1x256xf32> -> vector<1x256xf32>
      %25 = arith.addf %21, %24 : vector<1x256xf32>
      %c0_26 = arith.constant 0 : index
      %26 = memref.load %arg2[%c0_26] : memref<1xf32, #tpu.memory_space<smem>>
      %27 = vector.broadcast %26 : f32 to vector<1x256xf32>
      %28 = arith.addf %25, %27 : vector<1x256xf32>
      %29 = arith.negf %28 : vector<1x256xf32>
      %30 = math.exp %29 : vector<1x256xf32>
      %cst_27 = arith.constant 1.000000e+00 : f32
      %31 = vector.broadcast %cst_27 : f32 to vector<1x256xf32>
      %32 = arith.addf %31, %30 : vector<1x256xf32>
      %33 = arith.divf %31, %32 : vector<1x256xf32>
      %c0_28 = arith.constant 0 : index
      %c0_29 = arith.constant 0 : index
      %c0_30 = arith.constant 0 : index
      %34 = vector.load %arg5[%c0_28, %c0_29, %c0_30] : memref<1x1x256xf32, #tpu.memory_space<vmem>>, vector<1x1x256xf32>
      %35 = vector.shape_cast %34 : vector<1x1x256xf32> to vector<1x256xf32>
      %36 = vector.shape_cast %33 : vector<1x256xf32> to vector<1x1x256xf32>
      tpu.vector_store %arg5[%c0_28, %c0_29, %c0_30], %36 {strides = array<i32>} : memref<1x1x256xf32, #tpu.memory_space<vmem>>, vector<1x1x256xf32>,
    } else {
    }
    return
  }
  func.func @transform_0(%arg0: i32, %arg1: i32) -> i32 {
    %c0_i32 = arith.constant 0 : i32
    %c0_i32_0 = arith.constant 0 : i32
    return %c0_i32 : i32
  }
  func.func @transform_1(%arg0: i32, %arg1: i32) -> (i32, i32, i32) {
    %c0_i32 = arith.constant 0 : i32
    %c0_i32_0 = arith.constant 0 : i32
    return %arg0, %arg1, %c0_i32 : i32, i32, i32
  }
  func.func @transform_2(%arg0: i32, %arg1: i32) -> (i32, i32, i32) {
    %c0_i32 = arith.constant 0 : i32
    %c0_i32_0 = arith.constant 0 : i32
    %c0_i32_1 = arith.constant 0 : i32
    %c0_i32_2 = arith.constant 0 : i32
    return %c0_i32, %c0_i32_0, %c0_i32_1 : i32, i32, i32
  }
  func.func @transform_3(%arg0: i32, %arg1: i32) -> (i32, i32, i32) {
    %c0_i32 = arith.constant 0 : i32
    %c0_i32_0 = arith.constant 0 : i32
    %c0_i32_1 = arith.constant 0 : i32
    return %arg0, %c0_i32, %c0_i32_0 : i32, i32, i32
  }
}

</mosaic_0001>

<bundles_post_ra>
// kernel: tpu_custom_call.1
= control target key start
LH: loop header
LB: loop body
LE: loop exit
PB: predicated region body
PF: predicated region fallthrough
CT: control target
= control target key end

     0   :  { %s6167_s0 = inlined_call_operand.<no memory space> [shape: f32[1], index: 0, kind: input, shape index: {}]   ;;  %s6168_s1 = inlined_call_operand.hbm [shape: f32[2,4,256], index: 1, kind: input, shape index: {}]   ;;  %s6169_s2 = inlined_call_operand.hbm [shape: f32[2,256,256], index: 2, kind: input, shape index: {}]   ;;  %s6170_s3 = inlined_call_operand.hbm [shape: f32[2,1,256], index: 3, kind: output, shape index: {}]  }
   0x1   :  { %8 = sst [smem:[#allocation4]] %s6167_s0 }
   0x2   :  { %9 = vsyncpa [#allocation6], 0 }
   0x3   :  { %11 = vsyncpa [#allocation6 + $0x1], 0 }
   0x4   :  { %12 = vsyncpa [#allocation9], 0 }
   0x5   :  { %13 = vsyncpa [#allocation7], 0 }
   0x6   :  { %15 = vsyncpa [#allocation7 + $0x1], 0  ;;  %s4249_s14 = smov 0   ;;  %s4251_s15 = smov 0  }
   0x7   :  { %s4253_s16 = smov 0   ;;  %s4255_s17 = smov 0  }
   0x8   :  { %s4257_s18 = smov 0   ;;  %s4259_s19 = smov 0  }
   0x9 LB: > { %s3174_s0 = sadd.s32 4294967295, %s4216_s19   ;;  %s3175_s20 = sadd.s32 4294967294, %s4216_s19   ;;  %s4216_s19 = sphi %s4259_s19, %s21_s19   ;;  %s4212_s18 = sphi %s4257_s18, %s7501_s18   ;;  %s4208_s17 = sphi %s4255_s17, %s7500_s17   ;;  %s4204_s16 = sphi %s4253_s16, %s7499_s16   ;;  %s4200_s15 = sphi %s4251_s15, %s7498_s15   ;;  %s4196_s14 = sphi %s4249_s14, %s7497_s14  }
   0xa   : > { %p76_p0 = scmp.ne.s32.totalorder %s4200_s15, %s4196_s14  ;;  %p4283_p1 = scmp.eq.s32.totalorder %s3174_s0, 0 }
   0xb   : > { %p4287_p2 = scmp.eq.s32.totalorder %s3174_s0, 1  ;;  %p127_p3 = scmp.eq.s32.totalorder %s3175_s20, 1 }
   0xc   : > { %s6687_s21 = scalar_select %p4283_p1, 1, 0 }
   0xd   : > { %s6688_s22 = scalar_select %p4287_p2, 1, 0 }
   0xe   : > { %p4293_p4 = por %p4283_p1, %p76_p0  ;;  %p3176_p5 = scmp.ge.s32.totalorder %s4216_s19, 1 }
   0xf   : > { %p4298_p6 = por %p127_p3, %p76_p0  ;;  %p134_p7 = scmp.lt.s32.totalorder %s4216_s19, 3 }
  0x10   : > { %s6689_s23 = scalar_select %p4293_p4, 1, 0 }
  0x11   : > { %s6690_s24 = scalar_select %p4298_p6, 1, 0 }
  0x12   : > { %p4303_p8 = pnand %p3176_p5, %p134_p7  ;;  %s4218_s26 = smov [#allocation8]  }
  0x13   : > { %s149_s27 = sshll.u32 %s4218_s26, 4  ;;  %s33_s29 = sadd.s32 1, %s4212_s18  ;;  %s150_s27 = int_to_ptr.vmem [resolvable:$true] %s149_s27 }
  0x14   : > { %s6691_s25 = scalar_select %p4303_p8, 1, 0 }
  0x15   : > { %p3993_p9 = pneg %p4303_p8  ;;  %s4072_s5 = scalar_lea.hbm %s6169_s2, 16384 }
  0x16   : > { %p4073_p12 = scmp.ne.s32.totalorder %s6169_s2, %s4072_s5  ;;  %p4079_p5 = scmp.lt.u32.totalorder %s4072_s5, %s6169_s2 }
  0x17   : > { %p4312_p11 = pnand %p3993_p9, %p4283_p1 }
  0x19   : > { %p4074_p13 = pneg %p4312_p11 }
  0x1b   : > { %p4075_p0 = pnand %p4074_p13, %p4073_p12 }
  0x1d   : > { %p4076_p3 = pneg %p4075_p0 }
  0x1f   : > { %p4081_p7 = pnand %p4079_p5, %p4076_p3 }
  0x21   : > { %4084 = shalt.err (!%p4081_p7)
}
  0x22   : > { %s4085_s10 = scalar_lea.vmem %s150_s27, 16384  ;;  %p4093_p1 = scmp.lt.s32.totalorder %s150_s27, %s150_s27 }
  0x23   : > { %p4086_p9 = scmp.ne.s32.totalorder %s150_s27, %s4085_s10  ;;  %p4094_p4 = scmp.lt.s32.totalorder %s4085_s10, %s4085_s10 }
  0x25   : > { %p4088_p10 = pnand %p4086_p9, %p4074_p13  ;;  %p4095_p8 = por %p4094_p4, %p4093_p1 }
  0x27   : > { %p4089_p6 = pneg %p4088_p10 }
  0x29   : > { %p4096_p2 = pnand %p4095_p8, %p4089_p6 }
  0x2b   : > { %4099 = shalt.err (!%p4096_p2)
}
  0x2c   : > { %s4219_s11 = smov 256   ;;  %s4220_s12 = smov 16  }
  0x2d   : > { %3996 = dma.hbm_to_vmem [thread:$0]  (!%p4312_p11), %s6169_s2, 16384, %s150_s27, [#allocation9], %s4219_s11, %s4219_s11, %s4220_s12  }
  0x2e   : > { %p35_p1 = scmp.ge.s32.totalorder %s33_s29, 2  ;;  %s63_s20 = sadd.s32 1, %s4204_s16 }
  0x2f   : > { %p70_p2 = scmp.ne.s32.totalorder %s4204_s16, %s4200_s15  ;;  %p71_p4 = scmp.eq.s32.totalorder %s4216_s19, 0 }
  0x30   : > { %s7503_s29 = smov (%p35_p1, %s33_s29), 0  ;;  %p6694_p8 = scmp.ne.s32.totalorder %s6688_s22, 0 }
  0x31   : > { %p4339_p6 = por %p71_p4, %p70_p2  ;;  %s58_s28 = ssub.s32 %s4212_s18, %s7503_s29 }
  0x32   : > { %p4345_p10 = por %p6694_p8, %p70_p2  ;;  %p4006_p12 = scmp.lt.s32.totalorder %s4216_s19, 2 }
  0x33   : > { %p61_p11 = scmp.eq.s32.totalorder %s58_s28, 0  ;;  %s163_s27 = sand.u32 1, %s4204_s16  }
  0x34   : > { %s3179_s4 = sshll.u32 %s163_s27, 3  ;;  %s3193_s6 = sshll.u32 %s4212_s18, 7 }
  0x35   : > { %s4354_s5 = scalar_select %p61_p11, %s4204_s16, %s63_s20  }
  0x36   : > { %s4360_s9 = scalar_lea.hbm %s6168_s1, %s3193_s6  ;;  %s167_s22 = scalar_lea.vmem [#allocation5], %s3179_s4 }
  0x37   : > { %s177_s10 = sshll.u32 %s167_s22, 4  ;;  %p4366_p13 = pnand %p4006_p12, %p4339_p6  ;;  %s4362_s10 = int_to_ptr.vmem [resolvable:$true] %s177_s10 }
  0x38   : > { %s164_s12 = scalar_lea.sflag [#allocation6], %s163_s27  ;;  %s4100_s13 = scalar_lea.hbm %s4360_s9, 128 }
  0x39   : > { %p4101_p0 = scmp.ne.s32.totalorder %s4360_s9, %s4100_s13  ;;  %p4102_p3 = pneg %p4366_p13 }
  0x3a   : > { %s4105_s28 = scalar_lea.hbm %s6168_s1, 256  ;;  %p4106_p9 = scmp.lt.u32.totalorder %s4360_s9, %s6168_s1 }
  0x3b   : > { %p4103_p5 = pnand %p4102_p3, %p4101_p0  ;;  %p4107_p1 = scmp.lt.u32.totalorder %s4105_s28, %s4100_s13 }
  0x3c   : > { %p4109_p4 = scmp.lt.u32.totalorder %s4100_s13, %s4360_s9 }
  0x3d   : > { %p4104_p7 = pneg %p4103_p5  ;;  %p4108_p2 = por %p4107_p1, %p4106_p9 }
  0x3f   : > { %p4110_p6 = por %p4109_p4, %p4108_p2 }
  0x41   : > { %p4111_p8 = pnand %p4110_p6, %p4104_p7 }
  0x43   : > { %4114 = shalt.err (!%p4111_p8)
}
  0x44   : > { %s4115_s27 = scalar_lea.vmem %s4362_s10, 128  ;;  %s4221_s6 = smov [#allocation5]  }
  0x45   : > { %p4116_p12 = scmp.ne.s32.totalorder %s4362_s10, %s4115_s27  ;;  %s4120_s7 = sshll.u32 %s4221_s6, 4  ;;  %s4121_s7 = int_to_ptr.vmem [resolvable:$false] %s4120_s7 }
  0x46   : > { %s4122_s8 = scalar_lea.vmem %s4121_s7, 256  ;;  %p4123_p5 = scmp.lt.s32.totalorder %s4362_s10, %s4121_s7 }
  0x47   : > { %p4118_p11 = pnand %p4116_p12, %p4102_p3  ;;  %p4124_p9 = scmp.lt.s32.totalorder %s4122_s8, %s4115_s27 }
  0x49   : > { %p4119_p0 = pneg %p4118_p11  ;;  %p4125_p1 = por %p4124_p9, %p4123_p5 }
  0x4b   : > { %p4126_p2 = pnand %p4125_p1, %p4119_p0 }
  0x4d   : > { %4129 = shalt.err (!%p4126_p2)
}
  0x4e   : > { %4000 = dma.hbm_to_vmem [thread:$0]  (!%p4366_p13), %s4360_s9, 128, %s4362_s10, %s164_s12  }
  0x4f   : > { %p6697_p7 = scmp.ne.s32.totalorder %s6691_s25, 0 }
  0x51   : > { %186 = sbr.rel (%p6697_p7) target bundleno = 847 (0x34f), region = 32 }
  0x58   : > { %s4398_s22 = sand.u32 1, %s4200_s15   ;;  %p6698_p3 = scmp.ne.s32.totalorder %s6689_s23, 0 }
  0x59   : > { %s3183_s13 = sshll.u32 %s4398_s22, 3  ;;  %s189_s0 = scalar_lea.sflag [#allocation6], %s4398_s22 }
  0x5a   : > { %s4402_s20 = scalar_lea.vmem [#allocation5], %s3183_s13 }
  0x5b   : > { %4183 = dma.done.wait (%p6698_p3), %s189_s0, 128  }
  0x5c   : > { %4185 = vsyncadd (%p6698_p3), %s189_s0, 4294967168  ;;  %p6699_p13 = scmp.ne.s32.totalorder %s6687_s21, 0 }
  0x5e   : > { %4187 = dma.done.wait (%p6699_p13), [#allocation9], 16384  }
  0x5f   : > { %4189 = vsyncadd (%p6699_p13), [#allocation9], 4294950912  ;;  %v223_v0 = vlaneseq  ;;  %v6700_v1 = vmov 0  ;;  %v4222_v2 = vmov 1966171168   ;;  %v4223_v4 = vmov 0.0  }
  0x60   : > { %v253_v3 = vunpack.c.l.s4 %v4222_v2  ;;  %v4224_v5 = vmov -inf   ;;  %v380_v8 = vld [vmem:[#allocation8 + $0x208] sm:$0xff]  ;;  %v382_v9 = vld [vmem:[#allocation8 + $0x218] sm:$0xff]  ;;  %v379_v17 = vld [vmem:[#allocation8 + $0x200] sm:$0xff]  ;;  %vm234_vm1 = vcmask 1043456   ;;  %s3033_s21 = sld [smem:[#allocation4]] }
  0x61   : > { %vm4412_vm0 = vcmp.lt.s32.totalorder %v223_v0, 256  ;;  %v4420_v7 = vshrl.u32 %v223_v0, 7  ;;  %v315_v10 = vld [vmem:[#allocation8 + $0x8] sm:$0xff]  ;;  %v454_v13 = vand.u32 4294901760, %v380_v8  ;;  %v458_v14 = vand.u32 4294901760, %v382_v9  ;;  %v317_v15 = vld [vmem:[#allocation8 + $0x18] sm:$0xff] }
  0x62   : > { %v6701_v1 = vsel %vm4412_vm0, 4294967295, %v6700_v1  ;;  %227 = vst.msk [vmem:[#allocation2] sm:$0x3] %vm4412_vm0, %v4223_v4  ;;  %228 = vst.msk [vmem:[#allocation3] sm:$0x3] %vm4412_vm0, %v4224_v5  ;;  %v254_v6 = vunpack.c.0.s8 %v253_v3  ;;  %v1749_v16 = vand.u32 4294901760, %v315_v10 }
  0x63   : > { %6702 = vst [vmem:[#allocation14_spill] sm:$0xff] %v6701_v1  ;;  %v381_v18 = vld [vmem:[#allocation8 + $0x210] sm:$0xff]  ;;  %v1753_v19 = vand.u32 4294901760, %v317_v15  ;;  %v456_v20 = vand.u32 4294901760, %v379_v17  ;;  %v314_v22 = vld [vmem:[#allocation8] sm:$0xff]  ;;  %v384_v24 = vld [vmem:[#allocation8 + $0x228] sm:$0xff]  ;;  %v4427_v26 = vpack.c.bf16 %v458_v14, %v454_v13  ;;  %v4429_v27 = vsub.f32 %v380_v8, %v454_v13 }
  0x64   : > { %v460_v21 = vand.u32 4294901760, %v381_v18  ;;  %v316_v23 = vld [vmem:[#allocation8 + $0x10] sm:$0xff]  ;;  %v4425_v25 = vsub.s32 %v254_v6, %v4420_v7  ;;  %v4431_v28 = vsub.f32 %v382_v9, %v458_v14  ;;  %v4433_v29 = vsub.f32 %v315_v10, %v1749_v16  ;;  %v386_v30 = vld [vmem:[#allocation8 + $0x238] sm:$0xff]  ;;  %v319_v31 = vld [vmem:[#allocation8 + $0x28] sm:$0xff]  ;;  %s3185_s23 = sshll.u32 %s4398_s22, 1  ;;  %s3194_s25 = sshll.u32 %s4208_s17, 5 }
  0x65   : > { %6704 = vst [vmem:[#allocation16_spill] sm:$0xff] %v4427_v26  ;;  %6705 = vst [vmem:[#allocation17_spill] sm:$0xff] %v4429_v27  ;;  %v321_v32 = vld [vmem:[#allocation8 + $0x38] sm:$0xff]  ;;  %v4435_v33 = vpack.c.bf16 %v1753_v19, %v1749_v16  ;;  %v4437_v34 = vsub.f32 %v317_v15, %v1753_v19  ;;  %v4441_v36 = vsub.f32 %v379_v17, %v456_v20  ;;  %v383_v37 = vld [vmem:[#allocation8 + $0x220] sm:$0xff]  ;;  %3196 = vmatprep.subr.bf16.mxu1 %v4427_v26  ;;  %s218_s9 = scalar_lea.vmem [#allocation10], %s3185_s23  ;;  %s6116_s28 = scalar_lea.hbm %s6170_s3, %s3194_s25 }
  0x66   : > { %6703 = vst [vmem:[#allocation15_spill] sm:$0xff] %v4425_v25  ;;  %6706 = vst [vmem:[#allocation18_spill] sm:$0xff] %v4431_v28  ;;  %v4439_v35 = vpack.c.bf16 %v460_v21, %v456_v20  ;;  %v4444_v38 = vsub.f32 %v381_v18, %v460_v21  ;;  %v1751_v39 = vand.u32 4294901760, %v314_v22  ;;  %v1755_v40 = vand.u32 4294901760, %v316_v23  ;;  %v385_v42 = vld [vmem:[#allocation8 + $0x230] sm:$0xff]  ;;  %v318_v47 = vld [vmem:[#allocation8 + $0x20] sm:$0xff] }
  0x67   : > { %6707 = vst [vmem:[#allocation19_spill] sm:$0xff] %v4433_v29  ;;  %6708 = vst [vmem:[#allocation20_spill] sm:$0xff] %v4435_v33  ;;  %v462_v41 = vand.u32 4294901760, %v384_v24  ;;  %3580 = vmatprep.subr.bf16.mxu0 %v4435_v33  ;;  %v466_v43 = vand.u32 4294901760, %v386_v30  ;;  %v1757_v44 = vand.u32 4294901760, %v319_v31  ;;  %v1761_v45 = vand.u32 4294901760, %v321_v32 }
  0x68   : > { %6709 = vst [vmem:[#allocation21_spill] sm:$0xff] %v4437_v34  ;;  %6710 = vst [vmem:[#allocation22_spill] sm:$0xff] %v4439_v35  ;;  %3198 = vmatpush1.bf16.msra.mxu1 %v4439_v35  ;;  %v464_v46 = vand.u32 4294901760, %v383_v37  ;;  %v320_v48 = vld [vmem:[#allocation8 + $0x30] sm:$0xff]  ;;  %v4448_v49 = vpack.c.bf16 %v1755_v40, %v1751_v39  ;;  %v4450_v50 = vsub.f32 %v314_v22, %v1751_v39  ;;  %v388_v53 = vld [vmem:[#allocation8 + $0x248] sm:$0xff]  ;;  %v468_v62 = vand.u32 4294901760, %v385_v42 }
  0x69   : > { %6711 = vst [vmem:[#allocation23_spill] sm:$0xff] %v4441_v36  ;;  %6712 = vst [vmem:[#allocation24_spill] sm:$0xff] %v4444_v38  ;;  %v4452_v51 = vsub.f32 %v316_v23, %v1755_v40  ;;  %v4454_v52 = vsub.f32 %v384_v24, %v462_v41  ;;  %v390_v54 = vld [vmem:[#allocation8 + $0x258] sm:$0xff]  ;;  %v323_v55 = vld [vmem:[#allocation8 + $0x48] sm:$0xff]  ;;  %v4456_v56 = vpack.c.bf16 %v466_v43, %v462_v41  ;;  %v1759_v0 = vand.u32 4294901760, %v318_v47  ;;  %s3083_s10 = sshll.u32 %s218_s9, 4  ;;  %s6118_s10 = int_to_ptr.vmem [resolvable:$true] %s3083_s10 }
  0x6a   : > { %6713 = vst [vmem:[#allocation25_spill] sm:$0xff] %v4448_v49  ;;  %6714 = vst [vmem:[#allocation26_spill] sm:$0xff] %v4450_v50  ;;  %v4458_v57 = vsub.f32 %v386_v30, %v466_v43  ;;  %v4460_v58 = vpack.c.bf16 %v1761_v45, %v1757_v44  ;;  %v4462_v59 = vsub.f32 %v319_v31, %v1757_v44  ;;  %v325_v60 = vld [vmem:[#allocation8 + $0x58] sm:$0xff]  ;;  %3582 = vmatpush1.bf16.msra.mxu0 %v4448_v49  ;;  %v387_v6 = vld [vmem:[#allocation8 + $0x240] sm:$0xff]  ;;  %s3069_s17 = scalar_lea.sflag [#allocation7], %s4398_s22  ;;  %s4130_s26 = scalar_lea.vmem %s6118_s10, 32 }
  0x6b   : > { %6715 = vst [vmem:[#allocation27_spill] sm:$0xff] %v4452_v51  ;;  %6716 = vst [vmem:[#allocation28_spill] sm:$0xff] %v4454_v52  ;;  %v4465_v61 = vsub.f32 %v321_v32, %v1761_v45  ;;  %v4467_v63 = vsub.f32 %v383_v37, %v464_v46  ;;  %3200 = vmatprep.subr.bf16.mxu1 %v4456_v56  ;;  %v1763_v2 = vand.u32 4294901760, %v320_v48  ;;  %v470_v3 = vand.u32 4294901760, %v388_v53  ;;  %v389_v8 = vld [vmem:[#allocation8 + $0x250] sm:$0xff]  ;;  %v322_v15 = vld [vmem:[#allocation8 + $0x40] sm:$0xff]  ;;  %p4131_p4 = scmp.ne.s32.totalorder %s6118_s10, %s4130_s26 }
  0x6c   : > { %6717 = vst [vmem:[#allocation29_spill] sm:$0xff] %v4456_v56  ;;  %6718 = vst [vmem:[#allocation30_spill] sm:$0xff] %v4458_v57  ;;  %3584 = vmatprep.subr.bf16.mxu0 %v4460_v58  ;;  %v474_v4 = vand.u32 4294901760, %v390_v54  ;;  %v1765_v5 = vand.u32 4294901760, %v323_v55  ;;  %v4471_v9 = vpack.c.bf16 %v468_v62, %v464_v46  ;;  %v4473_v10 = vsub.f32 %v385_v42, %v468_v62  ;;  %v324_v16 = vld [vmem:[#allocation8 + $0x50] sm:$0xff]  ;;  %v392_v17 = vld [vmem:[#allocation8 + $0x268] sm:$0xff] }
  0x6d   : > { %6719 = vst [vmem:[#allocation31_spill] sm:$0xff] %v4460_v58  ;;  %6720 = vst [vmem:[#allocation32_spill] sm:$0xff] %v4462_v59  ;;  %v4475_v13 = vsub.f32 %v318_v47, %v1759_v0  ;;  %v1769_v14 = vand.u32 4294901760, %v325_v60  ;;  %v4477_v18 = vpack.c.bf16 %v1763_v2, %v1759_v0  ;;  %v4479_v19 = vsub.f32 %v320_v48, %v1763_v2  ;;  %v394_v22 = vld [vmem:[#allocation8 + $0x278] sm:$0xff]  ;;  %v327_v23 = vld [vmem:[#allocation8 + $0x68] sm:$0xff]  ;;  %p4132_p6 = pnand %p4131_p4, %p4345_p10  ;;  %s4225_s4 = smov [#allocation10]  }
  0x6e   : > { %6721 = vst [vmem:[#allocation33_spill] sm:$0xff] %v4465_v61  ;;  %6722 = vst [vmem:[#allocation34_spill] sm:$0xff] %v4467_v63  ;;  %v4481_v20 = vpack.c.bf16 %v474_v4, %v470_v3  ;;  %v4483_v21 = vsub.f32 %v388_v53, %v470_v3  ;;  %v329_v24 = vld [vmem:[#allocation8 + $0x78] sm:$0xff]  ;;  %3202 = vmatpush1.bf16.msra.mxu1 %v4471_v9  ;;  %v4486_v30 = vsub.f32 %v390_v54, %v474_v4  ;;  %v391_v47 = vld [vmem:[#allocation8 + $0x260] sm:$0xff]  ;;  %s4134_s27 = sshll.u32 %s4225_s4, 4  ;;  %s4135_s27 = int_to_ptr.vmem [resolvable:$false] %s4134_s27 }
  0x6f   : > { %6723 = vst [vmem:[#allocation35_spill] sm:$0xff] %v4471_v9  ;;  %6724 = vst [vmem:[#allocation36_spill] sm:$0xff] %v4473_v10  ;;  %v4488_v31 = vpack.c.bf16 %v1769_v14, %v1765_v5  ;;  %v4490_v32 = vsub.f32 %v323_v55, %v1765_v5  ;;  %v4492_v37 = vsub.f32 %v325_v60, %v1769_v14  ;;  %3586 = vmatpush1.bf16.msra.mxu0 %v4477_v18  ;;  %v393_v60 = vld [vmem:[#allocation8 + $0x270] sm:$0xff]  ;;  %v326_v62 = vld [vmem:[#allocation8 + $0x60] sm:$0xff]  ;;  %p4133_p8 = pneg %p4132_p6  ;;  %s4136_s6 = scalar_lea.vmem %s4135_s27, 64 }
  0x70   : > { %6725 = vst [vmem:[#allocation37_spill] sm:$0xff] %v4475_v13  ;;  %6726 = vst [vmem:[#allocation38_spill] sm:$0xff] %v4477_v18  ;;  %3204 = vmatprep.subr.bf16.mxu1 %v4481_v20  ;;  %v472_v39 = vand.u32 4294901760, %v387_v6  ;;  %v476_v40 = vand.u32 4294901760, %v389_v8  ;;  %v1767_v41 = vand.u32 4294901760, %v322_v15  ;;  %v1771_v42 = vand.u32 4294901760, %v324_v16  ;;  %p4137_p12 = scmp.lt.s32.totalorder %s6118_s10, %s4135_s27  ;;  %p4138_p11 = scmp.lt.s32.totalorder %s4136_s6, %s4130_s26 }
  0x71   : > { %6727 = vst [vmem:[#allocation39_spill] sm:$0xff] %v4479_v19  ;;  %6728 = vst [vmem:[#allocation40_spill] sm:$0xff] %v4481_v20  ;;  %3588 = vmatprep.subr.bf16.mxu0 %v4488_v31  ;;  %v478_v43 = vand.u32 4294901760, %v392_v17  ;;  %v482_v44 = vand.u32 4294901760, %v394_v22  ;;  %v1773_v45 = vand.u32 4294901760, %v327_v23  ;;  %v1777_v46 = vand.u32 4294901760, %v329_v24 }
  0x72   : > { %6729 = vst [vmem:[#allocation41_spill] sm:$0xff] %v4483_v21  ;;  %6730 = vst [vmem:[#allocation42_spill] sm:$0xff] %v4486_v30  ;;  %v4497_v48 = vpack.c.bf16 %v476_v40, %v472_v39  ;;  %v4499_v53 = vsub.f32 %v387_v6, %v472_v39  ;;  %v4501_v54 = vsub.f32 %v389_v8, %v476_v40  ;;  %v328_v0 = vld [vmem:[#allocation8 + $0x70] sm:$0xff]  ;;  %v396_v14 = vld [vmem:[#allocation8 + $0x288] sm:$0xff]  ;;  %v1775_v40 = vand.u32 4294901760, %v326_v62  ;;  %p4139_p0 = por %p4138_p11, %p4137_p12 }
  0x73   : > { %6731 = vst [vmem:[#allocation43_spill] sm:$0xff] %v4488_v31  ;;  %6732 = vst [vmem:[#allocation44_spill] sm:$0xff] %v4490_v32  ;;  %v4503_v55 = vpack.c.bf16 %v1771_v42, %v1767_v41  ;;  %v4505_v2 = vsub.f32 %v322_v15, %v1767_v41  ;;  %v4507_v3 = vsub.f32 %v324_v16, %v1771_v42  ;;  %v398_v12 = vld [vmem:[#allocation8 + $0x298] sm:$0xff]  ;;  %v331_v11 = vld [vmem:[#allocation8 + $0x88] sm:$0xff]  ;;  %v480_v15 = vand.u32 4294901760, %v391_v47 }
  0x74   : > { %6733 = vst [vmem:[#allocation45_spill] sm:$0xff] %v4492_v37  ;;  %6734 = vst [vmem:[#allocation46_spill] sm:$0xff] %v4497_v48  ;;  %v4509_v4 = vpack.c.bf16 %v482_v44, %v478_v43  ;;  %v4511_v5 = vsub.f32 %v392_v17, %v478_v43  ;;  %3206 = vmatpush1.bf16.msra.mxu1 %v4497_v48  ;;  %v4515_v6 = vsub.f32 %v394_v22, %v482_v44  ;;  %v333_v42 = vld [vmem:[#allocation8 + $0x98] sm:$0xff]  ;;  %v395_v48 = vld [vmem:[#allocation8 + $0x280] sm:$0xff]  ;;  %p4140_p5 = pnand %p4139_p0, %p4133_p8 }
  0x75   : > { %6735 = vst [vmem:[#allocation47_spill] sm:$0xff] %v4499_v53  ;;  %6736 = vst [vmem:[#allocation48_spill] sm:$0xff] %v4501_v54  ;;  %3590 = vmatpush1.bf16.msra.mxu0 %v4503_v55  ;;  %v4517_v8 = vpack.c.bf16 %v1777_v46, %v1773_v45  ;;  %v4519_v39 = vsub.f32 %v327_v23, %v1773_v45  ;;  %v4522_v16 = vsub.f32 %v329_v24, %v1777_v46  ;;  %v397_v31 = vld [vmem:[#allocation8 + $0x290] sm:$0xff]  ;;  %v330_v23 = vld [vmem:[#allocation8 + $0x80] sm:$0xff] }
  0x76   : > { %6737 = vst [vmem:[#allocation49_spill] sm:$0xff] %v4503_v55  ;;  %6738 = vst [vmem:[#allocation50_spill] sm:$0xff] %v4505_v2  ;;  %3208 = vmatprep.subr.bf16.mxu1 %v4509_v4  ;;  %v484_v17 = vand.u32 4294901760, %v393_v60  ;;  %v1779_v41 = vand.u32 4294901760, %v328_v0  ;;  %v4525_v43 = vsub.f32 %v391_v47, %v480_v15  ;;  %v486_v55 = vand.u32 4294901760, %v396_v14  ;;  %v400_v20 = vld [vmem:[#allocation8 + $0x2a8] sm:$0xff] }
  0x77   : > { %6739 = vst [vmem:[#allocation51_spill] sm:$0xff] %v4507_v3  ;;  %6740 = vst [vmem:[#allocation52_spill] sm:$0xff] %v4509_v4  ;;  %3592 = vmatprep.subr.bf16.mxu0 %v4517_v8  ;;  %v490_v22 = vand.u32 4294901760, %v398_v12  ;;  %v1781_v44 = vand.u32 4294901760, %v331_v11  ;;  %v4533_v46 = vsub.f32 %v326_v62, %v1775_v40  ;;  %v332_v4 = vld [vmem:[#allocation8 + $0x90] sm:$0xff]  ;;  %v402_v9 = vld [vmem:[#allocation8 + $0x2b8] sm:$0xff] }
  0x78   : > { %6741 = vst [vmem:[#allocation53_spill] sm:$0xff] %v4511_v5  ;;  %6742 = vst [vmem:[#allocation54_spill] sm:$0xff] %v4515_v6  ;;  %v4527_v45 = vpack.c.bf16 %v484_v17, %v480_v15  ;;  %v4529_v18 = vsub.f32 %v393_v60, %v484_v17  ;;  %v4531_v24 = vpack.c.bf16 %v1779_v41, %v1775_v40  ;;  %v1785_v60 = vand.u32 4294901760, %v333_v42  ;;  %v335_v35 = vld [vmem:[#allocation8 + $0xa8] sm:$0xff]  ;;  %v334_v33 = vld [vmem:[#allocation8 + $0xa0] sm:$0xff] }
  0x79   : > { %6743 = vst [vmem:[#allocation55_spill] sm:$0xff] %v4517_v8  ;;  %6744 = vst [vmem:[#allocation56_spill] sm:$0xff] %v4519_v39  ;;  %v4535_v8 = vsub.f32 %v328_v0, %v1779_v41  ;;  %v4537_v47 = vpack.c.bf16 %v490_v22, %v486_v55  ;;  %v4539_v58 = vsub.f32 %v396_v14, %v486_v55  ;;  %v488_v62 = vand.u32 4294901760, %v395_v48  ;;  %v337_v55 = vld [vmem:[#allocation8 + $0xb8] sm:$0xff] }
  0x7a   : > { %6745 = vst [vmem:[#allocation57_spill] sm:$0xff] %v4522_v16  ;;  %6746 = vst [vmem:[#allocation58_spill] sm:$0xff] %v4525_v43  ;;  %v4541_v49 = vsub.f32 %v398_v12, %v490_v22  ;;  %3210 = vmatpush1.bf16.msra.mxu1 %v4527_v45  ;;  %3594 = vmatpush1.bf16.msra.mxu0 %v4531_v24  ;;  %v4545_v15 = vsub.f32 %v331_v11, %v1781_v44  ;;  %v492_v17 = vand.u32 4294901760, %v397_v31  ;;  %v399_v11 = vld [vmem:[#allocation8 + $0x2a0] sm:$0xff] }
  0x7b   : > { %6747 = vst [vmem:[#allocation59_spill] sm:$0xff] %v4527_v45  ;;  %6748 = vst [vmem:[#allocation60_spill] sm:$0xff] %v4529_v18  ;;  %3212 = vmatprep.subr.bf16.mxu1 %v4537_v47  ;;  %v1783_v40 = vand.u32 4294901760, %v330_v23  ;;  %v1787_v0 = vand.u32 4294901760, %v332_v4  ;;  %v494_v41 = vand.u32 4294901760, %v400_v20  ;;  %v498_v56 = vand.u32 4294901760, %v402_v9 }
  0x7c   : > { %6749 = vst [vmem:[#allocation61_spill] sm:$0xff] %v4531_v24  ;;  %6750 = vst [vmem:[#allocation62_spill] sm:$0xff] %v4533_v46  ;;  %v4548_v14 = vpack.c.bf16 %v1785_v60, %v1781_v44  ;;  %v4550_v12 = vsub.f32 %v333_v42, %v1785_v60  ;;  %v4552_v22 = vpack.c.bf16 %v492_v17, %v488_v62  ;;  %v401_v45 = vld [vmem:[#allocation8 + $0x2b0] sm:$0xff]  ;;  %v404_v44 = vld [vmem:[#allocation8 + $0x2c8] sm:$0xff] }
  0x7d   : > { %6751 = vst [vmem:[#allocation63_spill] sm:$0xff] %v4535_v8  ;;  %6752 = vst [vmem:[#allocation64_spill] sm:$0xff] %v4537_v47  ;;  %v4554_v24 = vsub.f32 %v395_v48, %v488_v62  ;;  %v4556_v26 = vsub.f32 %v397_v31, %v492_v17  ;;  %v4558_v47 = vpack.c.bf16 %v1787_v0, %v1783_v40  ;;  %v406_v8 = vld [vmem:[#allocation8 + $0x2d8] sm:$0xff]  ;;  %v1789_v31 = vand.u32 4294901760, %v335_v35 }
  0x7e   : > { %6753 = vst [vmem:[#allocation65_spill] sm:$0xff] %v4539_v58  ;;  %6754 = vst [vmem:[#allocation66_spill] sm:$0xff] %v4541_v49  ;;  %v4562_v49 = vsub.f32 %v332_v4, %v1787_v0  ;;  %v336_v58 = vld [vmem:[#allocation8 + $0xb0] sm:$0xff]  ;;  %3596 = vmatprep.subr.bf16.mxu0 %v4548_v14  ;;  %3214 = vmatpush1.bf16.msra.mxu1 %v4552_v22  ;;  %v4566_v48 = vpack.c.bf16 %v498_v56, %v494_v41  ;;  %v496_v62 = vand.u32 4294901760, %v399_v11 }
  0x7f   : > { %6755 = vst [vmem:[#allocation67_spill] sm:$0xff] %v4545_v15  ;;  %6756 = vst [vmem:[#allocation68_spill] sm:$0xff] %v4548_v14  ;;  %v4560_v15 = vsub.f32 %v330_v23, %v1783_v40  ;;  %v4568_v42 = vsub.f32 %v400_v20, %v494_v41  ;;  %v4570_v60 = vsub.f32 %v402_v9, %v498_v56  ;;  %3598 = vmatpush1.bf16.msra.mxu0 %v4558_v47 }
  0x80   : > { %6757 = vst [vmem:[#allocation69_spill] sm:$0xff] %v4550_v12  ;;  %6758 = vst [vmem:[#allocation70_spill] sm:$0xff] %v4552_v22  ;;  %v1793_v23 = vand.u32 4294901760, %v337_v55  ;;  %v500_v4 = vand.u32 4294901760, %v401_v45  ;;  %v1791_v17 = vand.u32 4294901760, %v334_v33  ;;  %3216 = vmatprep.subr.bf16.mxu1 %v4566_v48  ;;  %v4574_v40 = vsub.f32 %v335_v35, %v1789_v31  ;;  %v410_v12 = vld [vmem:[#allocation8 + $0x2f8] sm:$0xff] }
  0x81   : > { %6759 = vst [vmem:[#allocation71_spill] sm:$0xff] %v4554_v24  ;;  %6760 = vst [vmem:[#allocation72_spill] sm:$0xff] %v4556_v26  ;;  %v1795_v0 = vand.u32 4294901760, %v336_v58  ;;  %v502_v14 = vand.u32 4294901760, %v404_v44  ;;  %v506_v22 = vand.u32 4294901760, %v406_v8  ;;  %v4582_v41 = vsub.f32 %v399_v11, %v496_v62  ;;  %v340_v24 = vld [vmem:[#allocation8 + $0xd0] sm:$0xff] }
  0x82   : > { %6761 = vst [vmem:[#allocation73_spill] sm:$0xff] %v4558_v47  ;;  %6762 = vst [vmem:[#allocation74_spill] sm:$0xff] %v4560_v15  ;;  %v341_v15 = vld [vmem:[#allocation8 + $0xd8] sm:$0xff]  ;;  %v4576_v20 = vpack.c.bf16 %v1793_v23, %v1789_v31  ;;  %v4578_v56 = vsub.f32 %v337_v55, %v1793_v23  ;;  %v4580_v9 = vpack.c.bf16 %v500_v4, %v496_v62  ;;  %v403_v47 = vld [vmem:[#allocation8 + $0x2c0] sm:$0xff] }
  0x83   : > { %6763 = vst [vmem:[#allocation75_spill] sm:$0xff] %v4562_v49  ;;  %6764 = vst [vmem:[#allocation76_spill] sm:$0xff] %v4566_v48  ;;  %v339_v49 = vld [vmem:[#allocation8 + $0xc8] sm:$0xff]  ;;  %v4584_v26 = vsub.f32 %v401_v45, %v500_v4  ;;  %v4586_v35 = vpack.c.bf16 %v1795_v0, %v1791_v17  ;;  %v4588_v48 = vsub.f32 %v334_v33, %v1791_v17  ;;  %v1801_v33 = vand.u32 4294901760, %v341_v15 }
  0x84   : > { %6765 = vst [vmem:[#allocation77_spill] sm:$0xff] %v4568_v42  ;;  %6766 = vst [vmem:[#allocation78_spill] sm:$0xff] %v4570_v60  ;;  %v405_v60 = vld [vmem:[#allocation8 + $0x2d0] sm:$0xff]  ;;  %v338_v42 = vld [vmem:[#allocation8 + $0xc0] sm:$0xff]  ;;  %3600 = vmatprep.subr.bf16.mxu0 %v4576_v20  ;;  %3218 = vmatpush1.bf16.msra.mxu1 %v4580_v9  ;;  %v4594_v55 = vpack.c.bf16 %v506_v22, %v502_v14  ;;  %v4596_v11 = vsub.f32 %v404_v44, %v502_v14  ;;  %v1797_v45 = vand.u32 4294901760, %v339_v49 }
  0x85   : > { %6767 = vst [vmem:[#allocation79_spill] sm:$0xff] %v4574_v40  ;;  %6768 = vst [vmem:[#allocation80_spill] sm:$0xff] %v4576_v20  ;;  %v4590_v40 = vsub.f32 %v336_v58, %v1795_v0  ;;  %v408_v31 = vld [vmem:[#allocation8 + $0x2e8] sm:$0xff]  ;;  %v4598_v23 = vsub.f32 %v406_v8, %v506_v22  ;;  %3602 = vmatpush1.bf16.msra.mxu0 %v4586_v35  ;;  %v504_v62 = vand.u32 4294901760, %v403_v47  ;;  %v508_v58 = vand.u32 4294901760, %v405_v60 }
  0x86   : > { %6769 = vst [vmem:[#allocation81_spill] sm:$0xff] %v4578_v56  ;;  %6770 = vst [vmem:[#allocation82_spill] sm:$0xff] %v4580_v9  ;;  %v1799_v4 = vand.u32 4294901760, %v338_v42  ;;  %3220 = vmatprep.subr.bf16.mxu1 %v4594_v55  ;;  %v4602_v17 = vsub.f32 %v339_v49, %v1797_v45  ;;  %v1803_v0 = vand.u32 4294901760, %v340_v24  ;;  %v510_v20 = vand.u32 4294901760, %v408_v31  ;;  %v414_v56 = vld [vmem:[#allocation8 + $0x318] sm:$0xff] }
  0x87   : > { %6771 = vst [vmem:[#allocation83_spill] sm:$0xff] %v4582_v41  ;;  %6772 = vst [vmem:[#allocation84_spill] sm:$0xff] %v4584_v26  ;;  %v514_v9 = vand.u32 4294901760, %v410_v12  ;;  %v4604_v14 = vpack.c.bf16 %v1801_v33, %v1797_v45  ;;  %v4606_v8 = vsub.f32 %v341_v15, %v1801_v33  ;;  %v4608_v22 = vpack.c.bf16 %v508_v58, %v504_v62  ;;  %v344_v41 = vld [vmem:[#allocation8 + $0xf0] sm:$0xff]  ;;  %v412_v45 = vld [vmem:[#allocation8 + $0x308] sm:$0xff] }
  0x88   : > { %6773 = vst [vmem:[#allocation85_spill] sm:$0xff] %v4586_v35  ;;  %6774 = vst [vmem:[#allocation86_spill] sm:$0xff] %v4588_v48  ;;  %v345_v48 = vld [vmem:[#allocation8 + $0xf8] sm:$0xff]  ;;  %v4610_v44 = vsub.f32 %v403_v47, %v504_v62  ;;  %v407_v35 = vld [vmem:[#allocation8 + $0x2e0] sm:$0xff]  ;;  %v4612_v26 = vsub.f32 %v405_v60, %v508_v58  ;;  %v4614_v49 = vpack.c.bf16 %v1803_v0, %v1799_v4 }
  0x89   : > { %6775 = vst [vmem:[#allocation87_spill] sm:$0xff] %v4590_v40  ;;  %6776 = vst [vmem:[#allocation88_spill] sm:$0xff] %v4594_v55  ;;  %v343_v40 = vld [vmem:[#allocation8 + $0xe8] sm:$0xff]  ;;  %v4616_v55 = vsub.f32 %v338_v42, %v1799_v4  ;;  %3604 = vmatprep.subr.bf16.mxu0 %v4604_v14  ;;  %3222 = vmatpush1.bf16.msra.mxu1 %v4608_v22  ;;  %v4622_v47 = vpack.c.bf16 %v514_v9, %v510_v20  ;;  %v1809_v42 = vand.u32 4294901760, %v345_v48 }
  0x8a   : > { %6777 = vst [vmem:[#allocation89_spill] sm:$0xff] %v4596_v11  ;;  %6778 = vst [vmem:[#allocation90_spill] sm:$0xff] %v4598_v23  ;;  %v409_v23 = vld [vmem:[#allocation8 + $0x2f0] sm:$0xff]  ;;  %v342_v11 = vld [vmem:[#allocation8 + $0xe0] sm:$0xff]  ;;  %v4624_v15 = vsub.f32 %v408_v31, %v510_v20  ;;  %v4626_v33 = vsub.f32 %v410_v12, %v514_v9  ;;  %v1805_v60 = vand.u32 4294901760, %v343_v40  ;;  %3606 = vmatpush1.bf16.msra.mxu0 %v4614_v49  ;;  %v512_v62 = vand.u32 4294901760, %v407_v35 }
  0x8b   : > { %6779 = vst [vmem:[#allocation91_spill] sm:$0xff] %v4602_v17  ;;  %6780 = vst [vmem:[#allocation92_spill] sm:$0xff] %v4604_v14  ;;  %v4618_v17 = vsub.f32 %v340_v24, %v1803_v0  ;;  %v516_v24 = vand.u32 4294901760, %v409_v23  ;;  %v1807_v58 = vand.u32 4294901760, %v342_v11  ;;  %3224 = vmatprep.subr.bf16.mxu1 %v4622_v47  ;;  %v1811_v0 = vand.u32 4294901760, %v344_v41 }
  0x8c   : > { %6781 = vst [vmem:[#allocation93_spill] sm:$0xff] %v4606_v8  ;;  %6782 = vst [vmem:[#allocation94_spill] sm:$0xff] %v4608_v22  ;;  %v4630_v4 = vsub.f32 %v343_v40, %v1805_v60  ;;  %v518_v14 = vand.u32 4294901760, %v412_v45  ;;  %v522_v22 = vand.u32 4294901760, %v414_v56  ;;  %v4632_v20 = vpack.c.bf16 %v1809_v42, %v1805_v60  ;;  %v416_v60 = vld [vmem:[#allocation8 + $0x328] sm:$0xff]  ;;  %v418_v8 = vld [vmem:[#allocation8 + $0x338] sm:$0xff] }
  0x8d   : > { %6783 = vst [vmem:[#allocation95_spill] sm:$0xff] %v4610_v44  ;;  %6784 = vst [vmem:[#allocation96_spill] sm:$0xff] %v4612_v26  ;;  %v4634_v12 = vsub.f32 %v345_v48, %v1809_v42  ;;  %v4636_v9 = vpack.c.bf16 %v516_v24, %v512_v62  ;;  %v4638_v31 = vsub.f32 %v407_v35, %v512_v62  ;;  %v348_v44 = vld [vmem:[#allocation8 + $0x110] sm:$0xff] }
  0x8e   : > { %6785 = vst [vmem:[#allocation97_spill] sm:$0xff] %v4614_v49  ;;  %6786 = vst [vmem:[#allocation98_spill] sm:$0xff] %v4616_v55  ;;  %v349_v55 = vld [vmem:[#allocation8 + $0x118] sm:$0xff]  ;;  %v411_v49 = vld [vmem:[#allocation8 + $0x300] sm:$0xff]  ;;  %v4640_v26 = vsub.f32 %v409_v23, %v516_v24  ;;  %v4642_v40 = vpack.c.bf16 %v1811_v0, %v1807_v58  ;;  %3608 = vmatprep.subr.bf16.mxu0 %v4632_v20  ;;  %v4650_v48 = vpack.c.bf16 %v522_v22, %v518_v14 }
  0x8f   : > { %6787 = vst [vmem:[#allocation99_spill] sm:$0xff] %v4618_v17  ;;  %6788 = vst [vmem:[#allocation100_spill] sm:$0xff] %v4622_v47  ;;  %v347_v17 = vld [vmem:[#allocation8 + $0x108] sm:$0xff]  ;;  %v4644_v47 = vsub.f32 %v342_v11, %v1807_v58  ;;  %3226 = vmatpush1.bf16.msra.mxu1 %v4636_v9  ;;  %v4652_v35 = vsub.f32 %v412_v45, %v518_v14  ;;  %v4654_v42 = vsub.f32 %v414_v56, %v522_v22 }
  0x90   : > { %6789 = vst [vmem:[#allocation101_spill] sm:$0xff] %v4624_v15  ;;  %6790 = vst [vmem:[#allocation102_spill] sm:$0xff] %v4626_v33  ;;  %v413_v33 = vld [vmem:[#allocation8 + $0x310] sm:$0xff]  ;;  %v346_v15 = vld [vmem:[#allocation8 + $0x100] sm:$0xff]  ;;  %v1813_v23 = vand.u32 4294901760, %v347_v17  ;;  %3610 = vmatpush1.bf16.msra.mxu0 %v4642_v40  ;;  %v1817_v11 = vand.u32 4294901760, %v349_v55  ;;  %3228 = vmatprep.subr.bf16.mxu1 %v4650_v48 }
  0x91   : > { %6791 = vst [vmem:[#allocation103_spill] sm:$0xff] %v4630_v4  ;;  %6792 = vst [vmem:[#allocation104_spill] sm:$0xff] %v4632_v20  ;;  %v4646_v4 = vsub.f32 %v344_v41, %v1811_v0  ;;  %v520_v62 = vand.u32 4294901760, %v411_v49  ;;  %v524_v41 = vand.u32 4294901760, %v413_v33  ;;  %v1815_v24 = vand.u32 4294901760, %v346_v15 }
  0x92   : > { %6793 = vst [vmem:[#allocation105_spill] sm:$0xff] %v4634_v12  ;;  %6794 = vst [vmem:[#allocation106_spill] sm:$0xff] %v4636_v9  ;;  %v4658_v58 = vsub.f32 %v347_v17, %v1813_v23  ;;  %v1819_v0 = vand.u32 4294901760, %v348_v44  ;;  %v526_v20 = vand.u32 4294901760, %v416_v60  ;;  %v530_v9 = vand.u32 4294901760, %v418_v8  ;;  %v422_v12 = vld [vmem:[#allocation8 + $0x358] sm:$0xff] }
  0x93   : > { %6795 = vst [vmem:[#allocation107_spill] sm:$0xff] %v4638_v31  ;;  %6796 = vst [vmem:[#allocation108_spill] sm:$0xff] %v4640_v26  ;;  %v4660_v14 = vpack.c.bf16 %v1817_v11, %v1813_v23  ;;  %v4662_v56 = vsub.f32 %v349_v55, %v1817_v11  ;;  %v4664_v22 = vpack.c.bf16 %v524_v41, %v520_v62  ;;  %v352_v31 = vld [vmem:[#allocation8 + $0x130] sm:$0xff]  ;;  %v420_v23 = vld [vmem:[#allocation8 + $0x348] sm:$0xff] }
  0x94   : > { %6797 = vst [vmem:[#allocation109_spill] sm:$0xff] %v4642_v40  ;;  %6798 = vst [vmem:[#allocation110_spill] sm:$0xff] %v4644_v47  ;;  %v353_v47 = vld [vmem:[#allocation8 + $0x138] sm:$0xff]  ;;  %v4666_v45 = vsub.f32 %v411_v49, %v520_v62  ;;  %v415_v40 = vld [vmem:[#allocation8 + $0x320] sm:$0xff]  ;;  %v4668_v26 = vsub.f32 %v413_v33, %v524_v41  ;;  %v4670_v17 = vpack.c.bf16 %v1819_v0, %v1815_v24 }
  0x95   : > { %6799 = vst [vmem:[#allocation111_spill] sm:$0xff] %v4646_v4  ;;  %6800 = vst [vmem:[#allocation112_spill] sm:$0xff] %v4650_v48  ;;  %v351_v4 = vld [vmem:[#allocation8 + $0x128] sm:$0xff]  ;;  %v4672_v48 = vsub.f32 %v346_v15, %v1815_v24  ;;  %3612 = vmatprep.subr.bf16.mxu0 %v4660_v14  ;;  %3230 = vmatpush1.bf16.msra.mxu1 %v4664_v22  ;;  %v4678_v55 = vpack.c.bf16 %v530_v9, %v526_v20  ;;  %v1825_v15 = vand.u32 4294901760, %v353_v47 }
  0x96   : > { %6801 = vst [vmem:[#allocation113_spill] sm:$0xff] %v4652_v35  ;;  %6802 = vst [vmem:[#allocation114_spill] sm:$0xff] %v4654_v42  ;;  %v417_v42 = vld [vmem:[#allocation8 + $0x330] sm:$0xff]  ;;  %v350_v35 = vld [vmem:[#allocation8 + $0x120] sm:$0xff]  ;;  %v4680_v49 = vsub.f32 %v416_v60, %v526_v20  ;;  %v4682_v11 = vsub.f32 %v418_v8, %v530_v9  ;;  %v1821_v33 = vand.u32 4294901760, %v351_v4  ;;  %3614 = vmatpush1.bf16.msra.mxu0 %v4670_v17  ;;  %v528_v62 = vand.u32 4294901760, %v415_v40 }
  0x97   : > { %6803 = vst [vmem:[#allocation115_spill] sm:$0xff] %v4658_v58  ;;  %6804 = vst [vmem:[#allocation116_spill] sm:$0xff] %v4660_v14  ;;  %v4674_v58 = vsub.f32 %v348_v44, %v1819_v0  ;;  %v532_v44 = vand.u32 4294901760, %v417_v42  ;;  %v1823_v41 = vand.u32 4294901760, %v350_v35  ;;  %3232 = vmatprep.subr.bf16.mxu1 %v4678_v55  ;;  %v1827_v0 = vand.u32 4294901760, %v352_v31 }
  0x98   : > { %6805 = vst [vmem:[#allocation117_spill] sm:$0xff] %v4662_v56  ;;  %6806 = vst [vmem:[#allocation118_spill] sm:$0xff] %v4664_v22  ;;  %v4686_v24 = vsub.f32 %v351_v4, %v1821_v33  ;;  %v534_v14 = vand.u32 4294901760, %v420_v23  ;;  %v538_v22 = vand.u32 4294901760, %v422_v12  ;;  %v4688_v20 = vpack.c.bf16 %v1825_v15, %v1821_v33  ;;  %v424_v33 = vld [vmem:[#allocation8 + $0x368] sm:$0xff]  ;;  %v426_v56 = vld [vmem:[#allocation8 + $0x378] sm:$0xff] }
  0x99   : > { %6807 = vst [vmem:[#allocation119_spill] sm:$0xff] %v4666_v45  ;;  %6808 = vst [vmem:[#allocation120_spill] sm:$0xff] %v4668_v26  ;;  %v4690_v8 = vsub.f32 %v353_v47, %v1825_v15  ;;  %v4692_v9 = vpack.c.bf16 %v532_v44, %v528_v62  ;;  %v4694_v60 = vsub.f32 %v415_v40, %v528_v62  ;;  %v356_v45 = vld [vmem:[#allocation8 + $0x150] sm:$0xff] }
  0x9a   : > { %6809 = vst [vmem:[#allocation121_spill] sm:$0xff] %v4670_v17  ;;  %6810 = vst [vmem:[#allocation122_spill] sm:$0xff] %v4672_v48  ;;  %v357_v48 = vld [vmem:[#allocation8 + $0x158] sm:$0xff]  ;;  %v419_v17 = vld [vmem:[#allocation8 + $0x340] sm:$0xff]  ;;  %v4696_v26 = vsub.f32 %v417_v42, %v532_v44  ;;  %v4698_v4 = vpack.c.bf16 %v1827_v0, %v1823_v41  ;;  %3616 = vmatprep.subr.bf16.mxu0 %v4688_v20  ;;  %v4706_v47 = vpack.c.bf16 %v538_v22, %v534_v14 }
  0x9b   : > { %6811 = vst [vmem:[#allocation123_spill] sm:$0xff] %v4674_v58  ;;  %6812 = vst [vmem:[#allocation124_spill] sm:$0xff] %v4678_v55  ;;  %v355_v58 = vld [vmem:[#allocation8 + $0x148] sm:$0xff]  ;;  %v4700_v55 = vsub.f32 %v350_v35, %v1823_v41  ;;  %3234 = vmatpush1.bf16.msra.mxu1 %v4692_v9  ;;  %v4708_v40 = vsub.f32 %v420_v23, %v534_v14  ;;  %v4710_v15 = vsub.f32 %v422_v12, %v538_v22 }
  0x9c   : > { %6813 = vst [vmem:[#allocation125_spill] sm:$0xff] %v4680_v49  ;;  %6814 = vst [vmem:[#allocation126_spill] sm:$0xff] %v4682_v11  ;;  %v421_v11 = vld [vmem:[#allocation8 + $0x350] sm:$0xff]  ;;  %v354_v49 = vld [vmem:[#allocation8 + $0x140] sm:$0xff]  ;;  %v1829_v42 = vand.u32 4294901760, %v355_v58  ;;  %3618 = vmatpush1.bf16.msra.mxu0 %v4698_v4  ;;  %v1833_v35 = vand.u32 4294901760, %v357_v48  ;;  %3236 = vmatprep.subr.bf16.mxu1 %v4706_v47 }
  0x9d   : > { %6815 = vst [vmem:[#allocation127_spill] sm:$0xff] %v4686_v24  ;;  %6816 = vst [vmem:[#allocation128_spill] sm:$0xff] %v4688_v20  ;;  %v4702_v24 = vsub.f32 %v352_v31, %v1827_v0  ;;  %v536_v62 = vand.u32 4294901760, %v419_v17  ;;  %v540_v31 = vand.u32 4294901760, %v421_v11  ;;  %v1831_v44 = vand.u32 4294901760, %v354_v49 }
  0x9e   : > { %6817 = vst [vmem:[#allocation129_spill] sm:$0xff] %v4690_v8  ;;  %6818 = vst [vmem:[#allocation130_spill] sm:$0xff] %v4692_v9  ;;  %v4714_v41 = vsub.f32 %v355_v58, %v1829_v42  ;;  %v1835_v0 = vand.u32 4294901760, %v356_v45  ;;  %v542_v20 = vand.u32 4294901760, %v424_v33  ;;  %v546_v9 = vand.u32 4294901760, %v426_v56  ;;  %v430_v8 = vld [vmem:[#allocation8 + $0x398] sm:$0xff] }
  0x9f   : > { %6819 = vst [vmem:[#allocation131_spill] sm:$0xff] %v4694_v60  ;;  %6820 = vst [vmem:[#allocation132_spill] sm:$0xff] %v4696_v26  ;;  %v4716_v14 = vpack.c.bf16 %v1833_v35, %v1829_v42  ;;  %v4718_v12 = vsub.f32 %v357_v48, %v1833_v35  ;;  %v4720_v22 = vpack.c.bf16 %v540_v31, %v536_v62  ;;  %v360_v60 = vld [vmem:[#allocation8 + $0x170] sm:$0xff]  ;;  %v428_v42 = vld [vmem:[#allocation8 + $0x388] sm:$0xff] }
  0xa0   : > { %6821 = vst [vmem:[#allocation133_spill] sm:$0xff] %v4698_v4  ;;  %6822 = vst [vmem:[#allocation134_spill] sm:$0xff] %v4700_v55  ;;  %v361_v55 = vld [vmem:[#allocation8 + $0x178] sm:$0xff]  ;;  %v4722_v23 = vsub.f32 %v419_v17, %v536_v62  ;;  %v423_v4 = vld [vmem:[#allocation8 + $0x360] sm:$0xff]  ;;  %v4724_v26 = vsub.f32 %v421_v11, %v540_v31  ;;  %v4726_v58 = vpack.c.bf16 %v1835_v0, %v1831_v44 }
  0xa1   : > { %6823 = vst [vmem:[#allocation135_spill] sm:$0xff] %v4702_v24  ;;  %6824 = vst [vmem:[#allocation136_spill] sm:$0xff] %v4706_v47  ;;  %v359_v24 = vld [vmem:[#allocation8 + $0x168] sm:$0xff]  ;;  %v4728_v47 = vsub.f32 %v354_v49, %v1831_v44  ;;  %3620 = vmatprep.subr.bf16.mxu0 %v4716_v14  ;;  %3238 = vmatpush1.bf16.msra.mxu1 %v4720_v22  ;;  %v4734_v48 = vpack.c.bf16 %v546_v9, %v542_v20  ;;  %v1841_v49 = vand.u32 4294901760, %v361_v55 }
  0xa2   : > { %6825 = vst [vmem:[#allocation137_spill] sm:$0xff] %v4708_v40  ;;  %6826 = vst [vmem:[#allocation138_spill] sm:$0xff] %v4710_v15  ;;  %v425_v15 = vld [vmem:[#allocation8 + $0x370] sm:$0xff]  ;;  %v358_v40 = vld [vmem:[#allocation8 + $0x160] sm:$0xff]  ;;  %v4736_v17 = vsub.f32 %v424_v33, %v542_v20  ;;  %v4738_v35 = vsub.f32 %v426_v56, %v546_v9  ;;  %v1837_v11 = vand.u32 4294901760, %v359_v24  ;;  %3622 = vmatpush1.bf16.msra.mxu0 %v4726_v58  ;;  %v544_v62 = vand.u32 4294901760, %v423_v4 }
  0xa3   : > { %6827 = vst [vmem:[#allocation139_spill] sm:$0xff] %v4714_v41  ;;  %6828 = vst [vmem:[#allocation140_spill] sm:$0xff] %v4716_v14  ;;  %v4730_v41 = vsub.f32 %v356_v45, %v1835_v0  ;;  %v548_v45 = vand.u32 4294901760, %v425_v15  ;;  %v1839_v31 = vand.u32 4294901760, %v358_v40  ;;  %3240 = vmatprep.subr.bf16.mxu1 %v4734_v48  ;;  %v1843_v0 = vand.u32 4294901760, %v360_v60 }
  0xa4   : > { %6829 = vst [vmem:[#allocation141_spill] sm:$0xff] %v4718_v12  ;;  %6830 = vst [vmem:[#allocation142_spill] sm:$0xff] %v4720_v22  ;;  %v4742_v44 = vsub.f32 %v359_v24, %v1837_v11  ;;  %v550_v14 = vand.u32 4294901760, %v428_v42  ;;  %v554_v22 = vand.u32 4294901760, %v430_v8  ;;  %v4744_v20 = vpack.c.bf16 %v1841_v49, %v1837_v11  ;;  %v432_v11 = vld [vmem:[#allocation8 + $0x3a8] sm:$0xff]  ;;  %v434_v12 = vld [vmem:[#allocation8 + $0x3b8] sm:$0xff] }
  0xa5   : > { %6831 = vst [vmem:[#allocation143_spill] sm:$0xff] %v4722_v23  ;;  %6832 = vst [vmem:[#allocation144_spill] sm:$0xff] %v4724_v26  ;;  %v4746_v56 = vsub.f32 %v361_v55, %v1841_v49  ;;  %v4748_v9 = vpack.c.bf16 %v548_v45, %v544_v62  ;;  %v4750_v33 = vsub.f32 %v423_v4, %v544_v62  ;;  %v364_v23 = vld [vmem:[#allocation8 + $0x190] sm:$0xff] }
  0xa6   : > { %6833 = vst [vmem:[#allocation145_spill] sm:$0xff] %v4726_v58  ;;  %6834 = vst [vmem:[#allocation146_spill] sm:$0xff] %v4728_v47  ;;  %v365_v47 = vld [vmem:[#allocation8 + $0x198] sm:$0xff]  ;;  %v427_v58 = vld [vmem:[#allocation8 + $0x380] sm:$0xff]  ;;  %v4752_v26 = vsub.f32 %v425_v15, %v548_v45  ;;  %v4754_v24 = vpack.c.bf16 %v1843_v0, %v1839_v31  ;;  %3624 = vmatprep.subr.bf16.mxu0 %v4744_v20  ;;  %v4762_v55 = vpack.c.bf16 %v554_v22, %v550_v14 }
  0xa7   : > { %6835 = vst [vmem:[#allocation147_spill] sm:$0xff] %v4730_v41  ;;  %6836 = vst [vmem:[#allocation148_spill] sm:$0xff] %v4734_v48  ;;  %v363_v41 = vld [vmem:[#allocation8 + $0x188] sm:$0xff]  ;;  %v4756_v48 = vsub.f32 %v358_v40, %v1839_v31  ;;  %3242 = vmatpush1.bf16.msra.mxu1 %v4748_v9  ;;  %v4764_v4 = vsub.f32 %v428_v42, %v550_v14  ;;  %v4766_v49 = vsub.f32 %v430_v8, %v554_v22 }
  0xa8   : > { %6837 = vst [vmem:[#allocation149_spill] sm:$0xff] %v4736_v17  ;;  %6838 = vst [vmem:[#allocation150_spill] sm:$0xff] %v4738_v35  ;;  %v429_v35 = vld [vmem:[#allocation8 + $0x390] sm:$0xff]  ;;  %v362_v17 = vld [vmem:[#allocation8 + $0x180] sm:$0xff]  ;;  %v1845_v15 = vand.u32 4294901760, %v363_v41  ;;  %3626 = vmatpush1.bf16.msra.mxu0 %v4754_v24  ;;  %v1849_v40 = vand.u32 4294901760, %v365_v47  ;;  %3244 = vmatprep.subr.bf16.mxu1 %v4762_v55 }
  0xa9   : > { %6839 = vst [vmem:[#allocation151_spill] sm:$0xff] %v4742_v44  ;;  %6840 = vst [vmem:[#allocation152_spill] sm:$0xff] %v4744_v20  ;;  %v4758_v44 = vsub.f32 %v360_v60, %v1843_v0  ;;  %v552_v62 = vand.u32 4294901760, %v427_v58  ;;  %v556_v60 = vand.u32 4294901760, %v429_v35  ;;  %v1847_v45 = vand.u32 4294901760, %v362_v17 }
  0xaa   : > { %6841 = vst [vmem:[#allocation153_spill] sm:$0xff] %v4746_v56  ;;  %6842 = vst [vmem:[#allocation154_spill] sm:$0xff] %v4748_v9  ;;  %v4770_v31 = vsub.f32 %v363_v41, %v1845_v15  ;;  %v1851_v0 = vand.u32 4294901760, %v364_v23  ;;  %v558_v20 = vand.u32 4294901760, %v432_v11  ;;  %v562_v9 = vand.u32 4294901760, %v434_v12  ;;  %v438_v56 = vld [vmem:[#allocation8 + $0x3d8] sm:$0xff] }
  0xab   : > { %6843 = vst [vmem:[#allocation155_spill] sm:$0xff] %v4750_v33  ;;  %6844 = vst [vmem:[#allocation156_spill] sm:$0xff] %v4752_v26  ;;  %v4772_v14 = vpack.c.bf16 %v1849_v40, %v1845_v15  ;;  %v4774_v8 = vsub.f32 %v365_v47, %v1849_v40  ;;  %v4776_v22 = vpack.c.bf16 %v556_v60, %v552_v62  ;;  %v368_v33 = vld [vmem:[#allocation8 + $0x1b0] sm:$0xff]  ;;  %v436_v15 = vld [vmem:[#allocation8 + $0x3c8] sm:$0xff] }
  0xac   : > { %6845 = vst [vmem:[#allocation157_spill] sm:$0xff] %v4754_v24  ;;  %6846 = vst [vmem:[#allocation158_spill] sm:$0xff] %v4756_v48  ;;  %v369_v48 = vld [vmem:[#allocation8 + $0x1b8] sm:$0xff]  ;;  %v4778_v42 = vsub.f32 %v427_v58, %v552_v62  ;;  %v431_v24 = vld [vmem:[#allocation8 + $0x3a0] sm:$0xff]  ;;  %v4780_v26 = vsub.f32 %v429_v35, %v556_v60  ;;  %v4782_v41 = vpack.c.bf16 %v1851_v0, %v1847_v45 }
  0xad   : > { %6847 = vst [vmem:[#allocation159_spill] sm:$0xff] %v4758_v44  ;;  %6848 = vst [vmem:[#allocation160_spill] sm:$0xff] %v4762_v55  ;;  %v367_v44 = vld [vmem:[#allocation8 + $0x1a8] sm:$0xff]  ;;  %v4784_v55 = vsub.f32 %v362_v17, %v1847_v45  ;;  %3628 = vmatprep.subr.bf16.mxu0 %v4772_v14  ;;  %3246 = vmatpush1.bf16.msra.mxu1 %v4776_v22  ;;  %v4790_v47 = vpack.c.bf16 %v562_v9, %v558_v20  ;;  %v1857_v17 = vand.u32 4294901760, %v369_v48 }
  0xae   : > { %6849 = vst [vmem:[#allocation161_spill] sm:$0xff] %v4764_v4  ;;  %6850 = vst [vmem:[#allocation162_spill] sm:$0xff] %v4766_v49  ;;  %v433_v49 = vld [vmem:[#allocation8 + $0x3b0] sm:$0xff]  ;;  %v366_v4 = vld [vmem:[#allocation8 + $0x1a0] sm:$0xff]  ;;  %v4792_v58 = vsub.f32 %v432_v11, %v558_v20  ;;  %v4794_v40 = vsub.f32 %v434_v12, %v562_v9  ;;  %v1853_v35 = vand.u32 4294901760, %v367_v44  ;;  %3630 = vmatpush1.bf16.msra.mxu0 %v4782_v41  ;;  %v560_v62 = vand.u32 4294901760, %v431_v24 }
  0xaf   : > { %6851 = vst [vmem:[#allocation163_spill] sm:$0xff] %v4770_v31  ;;  %6852 = vst [vmem:[#allocation164_spill] sm:$0xff] %v4772_v14  ;;  %v4786_v31 = vsub.f32 %v364_v23, %v1851_v0  ;;  %v564_v23 = vand.u32 4294901760, %v433_v49  ;;  %v1855_v60 = vand.u32 4294901760, %v366_v4  ;;  %3248 = vmatprep.subr.bf16.mxu1 %v4790_v47  ;;  %v1859_v0 = vand.u32 4294901760, %v368_v33  ;;  %v373_v20 = vld [vmem:[#allocation8 + $0x1d8] sm:$0xff] }
  0xb0   : > { %6853 = vst [vmem:[#allocation165_spill] sm:$0xff] %v4774_v8  ;;  %6854 = vst [vmem:[#allocation166_spill] sm:$0xff] %v4776_v22  ;;  %v4798_v45 = vsub.f32 %v367_v44, %v1853_v35  ;;  %v566_v22 = vand.u32 4294901760, %v436_v15  ;;  %v570_v14 = vand.u32 4294901760, %v438_v56  ;;  %v4800_v11 = vpack.c.bf16 %v1857_v17, %v1853_v35  ;;  %v440_v35 = vld [vmem:[#allocation8 + $0x3e8] sm:$0xff]  ;;  %v442_v8 = vld [vmem:[#allocation8 + $0x3f8] sm:$0xff] }
  0xb1   : > { %6855 = vst [vmem:[#allocation167_spill] sm:$0xff] %v4778_v42  ;;  %6856 = vst [vmem:[#allocation168_spill] sm:$0xff] %v4780_v26  ;;  %v4802_v12 = vsub.f32 %v369_v48, %v1857_v17  ;;  %v4804_v9 = vpack.c.bf16 %v564_v23, %v560_v62  ;;  %v4808_v26 = vsub.f32 %v433_v49, %v564_v23  ;;  %v372_v42 = vld [vmem:[#allocation8 + $0x1d0] sm:$0xff] }
  0xb2   : > { %6857 = vst [vmem:[#allocation169_spill] sm:$0xff] %v4782_v41  ;;  %6858 = vst [vmem:[#allocation170_spill] sm:$0xff] %v4784_v55  ;;  %v4806_v41 = vsub.f32 %v431_v24, %v560_v62  ;;  %v370_v55 = vld [vmem:[#allocation8 + $0x1c0] sm:$0xff]  ;;  %v4810_v44 = vpack.c.bf16 %v1859_v0, %v1855_v60  ;;  %3632 = vmatprep.subr.bf16.mxu0 %v4800_v11  ;;  %v4818_v48 = vpack.c.bf16 %v570_v14, %v566_v22 }
  0xb3   : > { %6859 = vst [vmem:[#allocation171_spill] sm:$0xff] %v4786_v31  ;;  %6860 = vst [vmem:[#allocation172_spill] sm:$0xff] %v4790_v47  ;;  %v371_v31 = vld [vmem:[#allocation8 + $0x1c8] sm:$0xff]  ;;  %v4812_v47 = vsub.f32 %v366_v4, %v1855_v60  ;;  %3250 = vmatpush1.bf16.msra.mxu1 %v4804_v9  ;;  %v4820_v24 = vsub.f32 %v436_v15, %v566_v22  ;;  %v4822_v17 = vsub.f32 %v438_v56, %v570_v14  ;;  %v377_v22 = vld [vmem:[#allocation8 + $0x1f8] sm:$0xff] }
  0xb4   : > { %6861 = vst [vmem:[#allocation173_spill] sm:$0xff] %v4792_v58  ;;  %6862 = vst [vmem:[#allocation174_spill] sm:$0xff] %v4794_v40  ;;  %v435_v40 = vld [vmem:[#allocation8 + $0x3c0] sm:$0xff]  ;;  %v437_v58 = vld [vmem:[#allocation8 + $0x3d0] sm:$0xff]  ;;  %v1861_v49 = vand.u32 4294901760, %v371_v31  ;;  %3634 = vmatpush1.bf16.msra.mxu0 %v4810_v44  ;;  %v1865_v4 = vand.u32 4294901760, %v373_v20  ;;  %3252 = vmatprep.subr.bf16.mxu1 %v4818_v48 }
  0xb5   : > { %6863 = vst [vmem:[#allocation175_spill] sm:$0xff] %v4798_v45  ;;  %6864 = vst [vmem:[#allocation176_spill] sm:$0xff] %v4800_v11  ;;  %v4814_v45 = vsub.f32 %v368_v33, %v1859_v0  ;;  %v568_v62 = vand.u32 4294901760, %v435_v40  ;;  %v572_v33 = vand.u32 4294901760, %v437_v58  ;;  %v1863_v23 = vand.u32 4294901760, %v370_v55 }
  0xb6   : > { %6865 = vst [vmem:[#allocation177_spill] sm:$0xff] %v4802_v12  ;;  %6866 = vst [vmem:[#allocation178_spill] sm:$0xff] %v4804_v9  ;;  %v4826_v60 = vsub.f32 %v371_v31, %v1861_v49  ;;  %v1867_v0 = vand.u32 4294901760, %v372_v42  ;;  %v574_v11 = vand.u32 4294901760, %v440_v35  ;;  %v578_v9 = vand.u32 4294901760, %v442_v8 }
  0xb7   : > { %6867 = vst [vmem:[#allocation179_spill] sm:$0xff] %v4806_v41  ;;  %6868 = vst [vmem:[#allocation180_spill] sm:$0xff] %v4808_v26  ;;  %v4828_v15 = vpack.c.bf16 %v1865_v4, %v1861_v49  ;;  %v4830_v56 = vsub.f32 %v373_v20, %v1865_v4  ;;  %v4832_v14 = vpack.c.bf16 %v572_v33, %v568_v62  ;;  %v376_v41 = vld [vmem:[#allocation8 + $0x1f0] sm:$0xff] }
  0xb8   : > { %6869 = vst [vmem:[#allocation181_spill] sm:$0xff] %v4810_v44  ;;  %6870 = vst [vmem:[#allocation182_spill] sm:$0xff] %v4812_v47  ;;  %v4834_v44 = vsub.f32 %v435_v40, %v568_v62  ;;  %v374_v47 = vld [vmem:[#allocation8 + $0x1e0] sm:$0xff]  ;;  %v4838_v31 = vpack.c.bf16 %v1867_v0, %v1863_v23  ;;  %v4842_v26 = vsub.f32 %v372_v42, %v1867_v0  ;;  %v229_v49 = vld [vmem:[%s4402_s20] sm:$0xff]  ;;  %v1873_v62 = vand.u32 4294901760, %v377_v22 }
  0xb9   : > { %6871 = vst [vmem:[#allocation183_spill] sm:$0xff] %v4814_v45  ;;  %6872 = vst [vmem:[#allocation184_spill] sm:$0xff] %v4818_v48  ;;  %v375_v45 = vld [vmem:[#allocation8 + $0x1e8] sm:$0xff]  ;;  %v4836_v48 = vsub.f32 %v437_v58, %v572_v33  ;;  %3636 = vmatprep.subr.bf16.mxu0 %v4828_v15  ;;  %3254 = vmatpush1.bf16.msra.mxu1 %v4832_v14  ;;  %v4847_v20 = vpack.c.bf16 %v578_v9, %v574_v11  ;;  %v1871_v42 = vand.u32 4294901760, %v374_v47 }
  0xba   : > { %6873 = vst [vmem:[#allocation185_spill] sm:$0xff] %v4820_v24  ;;  %6874 = vst [vmem:[#allocation186_spill] sm:$0xff] %v4822_v17  ;;  %v439_v17 = vld [vmem:[#allocation8 + $0x3e0] sm:$0xff]  ;;  %v441_v24 = vld [vmem:[#allocation8 + $0x3f0] sm:$0xff]  ;;  %v4849_v40 = vsub.f32 %v440_v35, %v574_v11  ;;  %v4851_v4 = vsub.f32 %v442_v8, %v578_v9  ;;  %v1869_v58 = vand.u32 4294901760, %v375_v45  ;;  %3638 = vmatpush1.bf16.msra.mxu0 %v4838_v31  ;;  %v1875_v0 = vand.u32 4294901760, %v376_v41 }
  0xbb   : > { %6875 = vst [vmem:[#allocation187_spill] sm:$0xff] %v4826_v60  ;;  %6876 = vst [vmem:[#allocation188_spill] sm:$0xff] %v4828_v15  ;;  %v4840_v60 = vsub.f32 %v370_v55, %v1863_v23  ;;  %v576_v55 = vand.u32 4294901760, %v439_v17  ;;  %v580_v33 = vand.u32 4294901760, %v441_v24  ;;  %3256 = vmatprep.subr.bf16.mxu1 %v4847_v20  ;;  %v232_v15 = vcombine.high %v229_v49, %v229_v49 }
  0xbc   : > { %6877 = vst [vmem:[#allocation189_spill] sm:$0xff] %v4830_v56  ;;  %6878 = vst [vmem:[#allocation190_spill] sm:$0xff] %v4832_v14  ;;  %v4855_v23 = vsub.f32 %v375_v45, %v1869_v58  ;;  %v235_v14 = vsel %vm234_vm1, %v229_v49, 0.0  ;;  %v4860_v11 = vsub.f32 %v377_v22, %v1873_v62  ;;  %v4872_v45 = vsub.f32 %v376_v41, %v1875_v0 }
  0xbd   : > { %6879 = vst [vmem:[#allocation191_spill] sm:$0xff] %v4834_v44  ;;  %6880 = vst [vmem:[#allocation192_spill] sm:$0xff] %v4836_v48  ;;  %v4862_v8 = vpack.c.bf16 %v580_v33, %v576_v55  ;;  %v4864_v9 = vsub.f32 %v439_v17, %v576_v55  ;;  %v4866_v35 = vsub.f32 %v441_v24, %v580_v33  ;;  %v242_v22 = vsel %vm234_vm1, %v232_v15, 0.0 }
  0xbe   : > { %6881 = vst [vmem:[#allocation193_spill] sm:$0xff] %v4838_v31  ;;  %6882 = vst [vmem:[#allocation194_spill] sm:$0xff] %v4840_v60  ;;  %v4868_v31 = vpack.c.bf16 %v1875_v0, %v1871_v42  ;;  %v281_v17 = vsel %vm234_vm1, %v232_v15, -inf  ;;  %v243_v24 = vrot.slane %v242_v22, 4  ;;  %v6399_v0 = vand.u32 4294901760, %v4433_v29 }
  0xbf   : > { %6883 = vst [vmem:[#allocation195_spill] sm:$0xff] %v4842_v26  ;;  %6884 = vst [vmem:[#allocation196_spill] sm:$0xff] %v4847_v20  ;;  %v4858_v26 = vpack.c.bf16 %v1873_v62, %v1869_v58  ;;  %3258 = vmatpush1.bf16.msra.mxu1 %v4862_v8  ;;  %v236_v58 = vrot.slane %v235_v14, 4  ;;  %v274_v62 = vsel %vm234_vm1, %v229_v49, -inf  ;;  %v282_v33 = vrot.slane %v281_v17, 4 }
  0xc0   : > { %6885 = vst [vmem:[#allocation197_spill] sm:$0xff] %v4849_v40  ;;  %6886 = vst [vmem:[#allocation198_spill] sm:$0xff] %v4851_v4  ;;  %v4870_v4 = vsub.f32 %v374_v47, %v1871_v42  ;;  %v275_v55 = vrot.slane %v274_v62, 4  ;;  %v6389_v47 = vand.u32 4294901760, %v4429_v27  ;;  %v6395_v42 = vand.u32 4294901760, %v4431_v28 }
  0xc1   : > { %6887 = vst [vmem:[#allocation199_spill] sm:$0xff] %v4855_v23  ;;  %6888 = vst [vmem:[#allocation200_spill] sm:$0xff] %v4858_v26  ;;  %3640 = vmatprep.subr.bf16.mxu0 %v4858_v26  ;;  %v237_v41 = vadd.f32 %v236_v58, %v235_v14  ;;  %v244_v26 = vadd.f32 %v243_v24, %v242_v22  ;;  %v1897_v14 = vsub.f32 %v4433_v29, %v6399_v0 }
  0xc2   : > { %6889 = vst [vmem:[#allocation201_spill] sm:$0xff] %v4860_v11  ;;  %6890 = vst [vmem:[#allocation202_spill] sm:$0xff] %v4862_v8  ;;  %3642 = vmatpush1.bf16.msra.mxu0 %v4868_v31  ;;  %v6403_v8 = vand.u32 4294901760, %v4437_v34  ;;  %v276_v20 = vmax.f32 %v274_v62, %v275_v55  ;;  %v602_v15 = vsub.f32 %v4429_v27, %v6389_v47  ;;  %v6422_v29 = vand.u32 4294901760, %v4444_v38 }
  0xc3   : > { %6891 = vst [vmem:[#allocation203_spill] sm:$0xff] %v4864_v9  ;;  %6892 = vst [vmem:[#allocation204_spill] sm:$0xff] %v4866_v35  ;;  %v238_v49 = vrot.slane %v237_v41, 2  ;;  %v245_v22 = vrot.slane %v244_v26, 2  ;;  %v1898_v47 = vand.u32 4294901760, %v1897_v14 }
  0xc4   : > { %6893 = vst [vmem:[#allocation205_spill] sm:$0xff] %v4868_v31  ;;  %6894 = vst [vmem:[#allocation206_spill] sm:$0xff] %v4870_v4  ;;  %v614_v31 = vsub.f32 %v4431_v28, %v6395_v42  ;;  %v1909_v58 = vsub.f32 %v4437_v34, %v6403_v8  ;;  %v277_v62 = vrot.slane %v276_v20, 2  ;;  %v603_v24 = vand.u32 4294901760, %v602_v15 }
  0xc5   : > { %6895 = vst [vmem:[#allocation207_spill] sm:$0xff] %v4872_v45  ;;  %v283_v45 = vmax.f32 %v281_v17, %v282_v33  ;;  %v239_v55 = vadd.f32 %v238_v49, %v237_v41  ;;  %v246_v4 = vadd.f32 %v245_v22, %v244_v26  ;;  %v6423_v42 = vand.u32 4294901760, %v4441_v36 }
  0xc6   : > { %v615_v33 = vand.u32 4294901760, %v614_v31  ;;  %v1910_v27 = vand.u32 4294901760, %v1909_v58  ;;  %v278_v35 = vmax.f32 %v276_v20, %v277_v62  ;;  %v620_v26 = vsub.f32 %v4444_v38, %v6422_v29 }
  0xc7   : > { %v284_v17 = vrot.slane %v283_v45, 2  ;;  %v240_v28 = vrot.slane %v239_v55, 1  ;;  %v247_v23 = vrot.slane %v246_v4, 1  ;;  %v608_v41 = vsub.f32 %v4441_v36, %v6423_v42 }
  0xc8   : > { %v3259_v11 = vpack.c.bf16 %v615_v33, %v603_v24  ;;  %v3643_v0 = vpack.c.bf16 %v1910_v27, %v1898_v47  ;;  %v279_v8 = vrot.slane %v278_v35, 1  ;;  %v6419_v20 = vand.u32 4294901760, %v4450_v50 }
  0xc9   : > { %v285_v9 = vmax.f32 %v283_v45, %v284_v17  ;;  %v241_v31 = vadd.f32 %v240_v28, %v239_v55  ;;  %v6416_v27 = vand.u32 4294901760, %v4452_v51  ;;  %v248_v45 = vadd.f32 %v247_v23, %v246_v4 }
  0xca   : > { %3260 = vmatprep.subr.bf16.mxu1 %v3259_v11  ;;  %3644 = vmatprep.subr.bf16.mxu0 %v3643_v0  ;;  %v280_v47 = vmax.f32 %v278_v35, %v279_v8  ;;  %v609_v49 = vand.u32 4294901760, %v608_v41  ;;  %v621_v14 = vand.u32 4294901760, %v620_v26  ;;  %v1903_v58 = vsub.f32 %v4450_v50, %v6419_v20  ;;  %v230_v35 = vld [vmem:[#allocation2] sm:$0x3]  ;;  %v273_v41 = vld [vmem:[#allocation3] sm:$0x3] }
  0xcb   : > { %v286_v34 = vrot.slane %v285_v9, 1  ;;  %v1915_v28 = vsub.f32 %v4452_v51, %v6416_v27  ;;  %v6421_v11 = vand.u32 4294901760, %v4454_v52  ;;  %v251_v0 = vcombine.low %v241_v31, %v248_v45 }
  0xcc   : > { %v6420_v62 = vand.u32 4294901760, %v4458_v57  ;;  %v6406_v4 = vand.u32 4294901760, %v4462_v59  ;;  %v4915_v23 = vpack.c.bf16 %v621_v14, %v609_v49  ;;  %v6412_v45 = vand.u32 4294901760, %v4465_v61 }
  0xcd   : > { %v287_v15 = vmax.f32 %v285_v9, %v286_v34  ;;  %v1904_v34 = vand.u32 4294901760, %v1903_v58  ;;  %v1916_v8 = vand.u32 4294901760, %v1915_v28  ;;  %v626_v9 = vsub.f32 %v4454_v52, %v6421_v11 }
  0xce   : > { %v258_v17 = vrot.slane %v251_v0, %v4425_v25  ;;  %v638_v55 = vsub.f32 %v4458_v57, %v6420_v62  ;;  %v1921_v33 = vsub.f32 %v4462_v59, %v6406_v4  ;;  %v1933_v28 = vsub.f32 %v4465_v61, %v6412_v45 }
  0xcf   : > { %v290_v22 = vcombine.low %v280_v47, %v287_v15  ;;  %v4928_v31 = vpack.c.bf16 %v1916_v8, %v1904_v34  ;;  %v627_v26 = vand.u32 4294901760, %v626_v9  ;;  %v6407_v47 = vand.u32 4294901760, %v4467_v63 }
  0xd0   : > { %v265_v15 = vrot.slane %v258_v17, %v4425_v25  ;;  %v639_v14 = vand.u32 4294901760, %v638_v55  ;;  %v1922_v58 = vand.u32 4294901760, %v1921_v33  ;;  %v6409_v34 = vand.u32 4294901760, %v4475_v13 }
  0xd1   : > { %v297_v24 = vrot.slane %v290_v22, %v4425_v25  ;;  %v632_v0 = vsub.f32 %v4467_v63, %v6407_v47  ;;  %v6410_v22 = vand.u32 4294901760, %v4473_v10  ;;  %v6408_v17 = vand.u32 4294901760, %v4479_v19 }
  0xd2   : > { %v267_v8 = vadd.f32 %v265_v15, %v230_v35  ;;  %v4942_v4 = vpack.c.bf16 %v639_v14, %v627_v26  ;;  %v1927_v47 = vsub.f32 %v4475_v13, %v6409_v34  ;;  %v6413_v26 = vand.u32 4294901760, %v4486_v30 }
  0xd3   : > { %v304_v49 = vrot.slane %v297_v24, %v4425_v25  ;;  %v1934_v24 = vand.u32 4294901760, %v1933_v28  ;;  %v633_v55 = vand.u32 4294901760, %v632_v0  ;;  %v644_v33 = vsub.f32 %v4473_v10, %v6410_v22 }
  0xd4   : > { %272 = vst.msk [vmem:[#allocation2] sm:$0x3] %vm4412_vm0, %v267_v8  ;;  %v1939_v35 = vsub.f32 %v4479_v19, %v6408_v17  ;;  %v6414_v15 = vand.u32 4294901760, %v4490_v32  ;;  %v1928_v28 = vand.u32 4294901760, %v1927_v47  ;;  %v6415_v0 = vand.u32 4294901760, %v4492_v37 }
  0xd5   : > { %v306_v9 = vmax.f32 %v273_v41, %v304_v49  ;;  %v6411_v41 = vand.u32 4294901760, %v4483_v21  ;;  %v4961_v49 = vpack.c.bf16 %v1934_v24, %v1922_v58  ;;  %v645_v14 = vand.u32 4294901760, %v644_v33 }
  0xd6   : > { %v1940_v8 = vand.u32 4294901760, %v1939_v35  ;;  %v662_v17 = vsub.f32 %v4486_v30, %v6413_v26  ;;  %v1945_v34 = vsub.f32 %v4490_v32, %v6414_v15  ;;  %v1957_v47 = vsub.f32 %v4492_v37, %v6415_v0 }
  0xd7   : > { %307 = vst.msk [vmem:[#allocation3] sm:$0x3] %vm4412_vm0, %v306_v9  ;;  %v650_v9 = vsub.f32 %v4483_v21, %v6411_v41  ;;  %v4973_v22 = vpack.c.bf16 %v645_v14, %v633_v55  ;;  %v6417_v58 = vand.u32 4294901760, %v4499_v53  ;;  %v6418_v24 = vand.u32 4294901760, %v4501_v54 }
  0xd8   : > { %v4980_v33 = vpack.c.bf16 %v1940_v8, %v1928_v28  ;;  %v663_v41 = vand.u32 4294901760, %v662_v17  ;;  %v1946_v45 = vand.u32 4294901760, %v1945_v34  ;;  %v1958_v26 = vand.u32 4294901760, %v1957_v47 }
  0xd9   : > { %v651_v35 = vand.u32 4294901760, %v650_v9  ;;  %v656_v15 = vsub.f32 %v4499_v53, %v6417_v58  ;;  %v668_v55 = vsub.f32 %v4501_v54, %v6418_v24  ;;  %v6425_v14 = vand.u32 4294901760, %v4505_v2 }
  0xda   : > { %v6424_v27 = vand.u32 4294901760, %v4507_v3  ;;  %v6426_v28 = vand.u32 4294901760, %v4511_v5  ;;  %v6428_v17 = vand.u32 4294901760, %v4515_v6  ;;  %v4994_v9 = vpack.c.bf16 %v1958_v26, %v1946_v45 }
  0xdb   : > { %v4989_v0 = vpack.c.bf16 %v663_v41, %v651_v35  ;;  %v311_v8 = vld [vmem:[#allocation2] sm:$0x3]  ;;  %v657_v47 = vand.u32 4294901760, %v656_v15  ;;  %v669_v58 = vand.u32 4294901760, %v668_v55  ;;  %v1951_v24 = vsub.f32 %v4505_v2, %v6425_v14 }
  0xdc   : > { %v6896_v20 = vsub.s32 0, %v4420_v7  ;;  %v6897_v35 = vsub.s32 1, %v4420_v7  ;;  %v312_v11 = vmul.f32 0.25, %v311_v8  ;;  %v1963_v29 = vsub.f32 %v4507_v3, %v6424_v27 }
  0xdd   : > { %v5006_v42 = vpack.c.bf16 %v669_v58, %v657_v47  ;;  %v1952_v45 = vand.u32 4294901760, %v1951_v24  ;;  %v674_v26 = vsub.f32 %v4511_v5, %v6426_v28  ;;  %v686_v15 = vsub.f32 %v4515_v6, %v6428_v17 }
  0xde   : > { %v313_v34 = vld [vmem:[#allocation3] sm:$0x3]  ;;  %v1964_v47 = vand.u32 4294901760, %v1963_v29  ;;  %v6434_v14 = vand.u32 4294901760, %v4519_v39  ;;  %v6433_v29 = vand.u32 4294901760, %v4522_v16 }
  0xdf   : > { %v447_v41 = vrot.slane %v313_v34, %v6896_v20  ;;  %v451_v62 = vrot.slane %v313_v34, %v6897_v35  ;;  %v6900_v34 = vmov %v6897_v35  ;;  %v6901_v35 = vsub.s32 0, %v4420_v7 }
  0xe0   : > { %v1746_v8 = vrot.slane %v312_v11, %v6900_v34  ;;  %v675_v24 = vand.u32 4294901760, %v674_v26  ;;  %v687_v27 = vand.u32 4294901760, %v686_v15  ;;  %v5033_v6 = vpack.c.bf16 %v1964_v47, %v1952_v45 }
  0xe1   : > { %v5014_v20 = vand.u32 4294901760, %v451_v62  ;;  %v5016_v55 = vand.u32 4294901760, %v447_v41  ;;  %v1742_v58 = vrot.slane %v312_v11, %v6901_v35  ;;  %v1969_v7 = vsub.f32 %v4519_v39, %v6434_v14 }
  0xe2   : > { %v5026_v1 = vand.u32 4294901760, %v1746_v8  ;;  %v5035_v34 = vpack.c.bf16 %v687_v27, %v675_v24  ;;  %v1981_v27 = vsub.f32 %v4522_v16, %v6433_v29  ;;  %v6445_v15 = vand.u32 4294901760, %v4525_v43 }
  0xe3   : > { %6898 = vst [vmem:[#allocation208_spill] sm:$0xff] %v5014_v20  ;;  %6899 = vst [vmem:[#allocation209_spill] sm:$0xff] %v5016_v55  ;;  %v5024_v28 = vsub.f32 %v451_v62, %v5014_v20  ;;  %v5029_v17 = vsub.f32 %v447_v41, %v5016_v55  ;;  %v5031_v25 = vand.u32 4294901760, %v1742_v58  ;;  %v1970_v45 = vand.u32 4294901760, %v1969_v7 }
  0xe4   : > { %6903 = vst [vmem:[#allocation211_spill] sm:$0xff] %v5026_v1  ;;  %v5043_v62 = vsub.f32 %v1746_v8, %v5026_v1  ;;  %v6446_v35 = vand.u32 4294901760, %v4529_v18  ;;  %v1982_v7 = vand.u32 4294901760, %v1981_v27  ;;  %v680_v29 = vsub.f32 %v4525_v43, %v6445_v15  ;;  %v6908_v43 = vld [vmem:[#allocation63_spill] sm:$0xff] }
  0xe5   : > { %6902 = vst [vmem:[#allocation210_spill] sm:$0xff] %v5024_v28  ;;  %6904 = vst [vmem:[#allocation212_spill] sm:$0xff] %v5029_v17  ;;  %v6437_v11 = vand.u32 4294901760, %v5024_v28  ;;  %v6442_v41 = vand.u32 4294901760, %v5029_v17  ;;  %v5047_v26 = vsub.f32 %v1742_v58, %v5031_v25  ;;  %v6460_v16 = vand.u32 4294901760, %v4533_v46 }
  0xe6   : > { %6905 = vst [vmem:[#allocation213_spill] sm:$0xff] %v5031_v25  ;;  %6906 = vst [vmem:[#allocation214_spill] sm:$0xff] %v5043_v62  ;;  %v6455_v8 = vand.u32 4294901760, %v5043_v62  ;;  %v692_v14 = vsub.f32 %v4529_v18, %v6446_v35  ;;  %v6459_v5 = vand.u32 4294901760, %v6908_v43  ;;  %v6909_v25 = vld [vmem:[#allocation65_spill] sm:$0xff] }
  0xe7   : > { %6907 = vst [vmem:[#allocation215_spill] sm:$0xff] %v5047_v26  ;;  %v585_v47 = vsub.f32 %v5024_v28, %v6437_v11  ;;  %v591_v58 = vsub.f32 %v5029_v17, %v6442_v41  ;;  %v6458_v24 = vand.u32 4294901760, %v5047_v26  ;;  %v5075_v41 = vpack.c.bf16 %v1982_v7, %v1970_v45  ;;  %v6911_v7 = vld [vmem:[#allocation67_spill] sm:$0xff] }
  0xe8   : > { %v1880_v28 = vsub.f32 %v5043_v62, %v6455_v8  ;;  %v681_v17 = vand.u32 4294901760, %v680_v29  ;;  %v693_v15 = vand.u32 4294901760, %v692_v14  ;;  %v1975_v35 = vsub.f32 %v4533_v46, %v6460_v16 }
  0xe9   : > { %v586_v11 = vand.u32 4294901760, %v585_v47  ;;  %v592_v39 = vand.u32 4294901760, %v591_v58  ;;  %v1886_v27 = vsub.f32 %v5047_v26, %v6458_v24  ;;  %v6461_v8 = vand.u32 4294901760, %v6909_v25  ;;  %v6910_v24 = vld [vmem:[#allocation66_spill] sm:$0xff] }
  0xea   : > { %v1881_v18 = vand.u32 4294901760, %v1880_v28  ;;  %v5082_v58 = vpack.c.bf16 %v693_v15, %v681_v17  ;;  %v1976_v62 = vand.u32 4294901760, %v1975_v35  ;;  %v6462_v45 = vand.u32 4294901760, %v6910_v24  ;;  %v6913_v17 = vld [vmem:[#allocation71_spill] sm:$0xff]  ;;  %v6914_v35 = vld [vmem:[#allocation72_spill] sm:$0xff] }
  0xeb   : > { %587 = vmatprep.mubr.f32.mxu1 %v586_v11  ;;  %v1887_v47 = vand.u32 4294901760, %v1886_v27  ;;  %v6463_v29 = vand.u32 4294901760, %v6911_v7  ;;  %v1987_v14 = vsub.f32 %v6908_v43, %v6459_v5  ;;  %v698_v28 = vsub.f32 %v6909_v25, %v6461_v8  ;;  %v6912_v11 = vld [vmem:[#allocation69_spill] sm:$0xff]  ;;  %v6915_v5 = vld [vmem:[#allocation74_spill] sm:$0xff] }
  0xec   : > { %593 = vmatmul.mubr.f32.vlgmr.msra.gmra.mrb[0].mxu1 %v592_v39  ;;  %1882 = vmatprep.mubr.f32.mxu0 %v1881_v18  ;;  %v6464_v15 = vand.u32 4294901760, %v6913_v17  ;;  %v710_v18 = vsub.f32 %v6910_v24, %v6462_v45  ;;  %v6917_v16 = vand.u32 4294901760, %v6914_v35 }
  0xed   : > { %3262 = vmatpush1.bf16.msra.mxu1 %v4915_v23  ;;  %1888 = vmatmul.mubr.f32.vlgmr.msra.gmra.mrb[0].mxu0 %v1887_v47  ;;  %v1993_v23 = vsub.f32 %v6911_v7, %v6463_v29  ;;  %v1988_v8 = vand.u32 4294901760, %v1987_v14  ;;  %v699_v39 = vand.u32 4294901760, %v698_v28  ;;  %v6916_v47 = vand.u32 4294901760, %v6912_v11 }
  0xee   : > { %3264 = vmatprep.subr.bf16.mxu1 %v4942_v4  ;;  %3646 = vmatpush1.bf16.msra.mxu0 %v4928_v31  ;;  %v704_v45 = vsub.f32 %v6913_v17, %v6464_v15  ;;  %v711_v29 = vand.u32 4294901760, %v710_v18  ;;  %v716_v31 = vsub.f32 %v6914_v35, %v6917_v16  ;;  %v6918_v14 = vand.u32 4294901760, %v6915_v5 }
  0xef   : > { %v2005_v4 = vsub.f32 %v6912_v11, %v6916_v47  ;;  %984 = vmatprep.mubr.f32.mxu1 %v5014_v20  ;;  %3648 = vmatprep.subr.bf16.mxu0 %v4961_v49  ;;  %v1994_v27 = vand.u32 4294901760, %v1993_v23  ;;  %v3657_v47 = vpack.c.bf16 %v1988_v8, %v1976_v62  ;;  %v6919_v20 = vld [vmem:[#allocation75_spill] sm:$0xff]  ;;  %v6920_v11 = vld [vmem:[#allocation77_spill] sm:$0xff] }
  0xf0   : > { %v1999_v28 = vsub.f32 %v6915_v5, %v6918_v14  ;;  %2279 = vmatprep.mubr.f32.mxu0 %v5026_v1  ;;  %v705_v26 = vand.u32 4294901760, %v704_v45  ;;  %v6472_v17 = vand.u32 4294901760, %v6919_v20  ;;  %v3275_v49 = vpack.c.bf16 %v711_v29, %v699_v39  ;;  %v6922_v8 = vld [vmem:[#allocation79_spill] sm:$0xff]  ;;  %v6923_v29 = vld [vmem:[#allocation81_spill] sm:$0xff] }
  0xf1   : > { %3266 = vmatpush1.bf16.msra.mxu1 %v4973_v22  ;;  %v2006_v15 = vand.u32 4294901760, %v2005_v4  ;;  %v717_v18 = vand.u32 4294901760, %v716_v31  ;;  %v6473_v16 = vand.u32 4294901760, %v6920_v11  ;;  %v6921_v22 = vld [vmem:[#allocation78_spill] sm:$0xff]  ;;  %v6477_v45 = vand.u32 4294901760, %v6922_v8  ;;  %v6924_v31 = vld [vmem:[#allocation83_spill] sm:$0xff] }
  0xf2   : > { %3268 = vmatprep.subr.bf16.mxu1 %v4989_v0  ;;  %v2000_v23 = vand.u32 4294901760, %v1999_v28  ;;  %3650 = vmatpush1.bf16.msra.mxu0 %v4980_v33  ;;  %v2011_v14 = vsub.f32 %v6919_v20, %v6472_v17  ;;  %v6474_v62 = vand.u32 4294901760, %v6921_v22  ;;  %v6479_v39 = vand.u32 4294901760, %v6923_v29 }
  0xf3   : > { %v3659_v35 = vpack.c.bf16 %v2006_v15, %v1994_v27  ;;  %3652 = vmatprep.subr.bf16.mxu0 %v4994_v9  ;;  %v3277_v4 = vpack.c.bf16 %v717_v18, %v705_v26  ;;  %v722_v0 = vsub.f32 %v6920_v11, %v6473_v16  ;;  %v6480_v33 = vand.u32 4294901760, %v6924_v31  ;;  %v6925_v26 = vld [vmem:[#allocation84_spill] sm:$0xff] }
  0xf4   : > { %v2012_v15 = vand.u32 4294901760, %v2011_v14  ;;  %v734_v27 = vsub.f32 %v6921_v22, %v6474_v62  ;;  %v2017_v9 = vsub.f32 %v6922_v8, %v6477_v45  ;;  %v6483_v28 = vand.u32 4294901760, %v6925_v26  ;;  %v6926_v14 = vld [vmem:[#allocation86_spill] sm:$0xff] }
  0xf5   : > { %3270 = vmatpush1.bf16.msra.mxu1 %v5006_v42  ;;  %v723_v18 = vand.u32 4294901760, %v722_v0  ;;  %v2029_v17 = vsub.f32 %v6923_v29, %v6479_v39  ;;  %v728_v42 = vsub.f32 %v6924_v31, %v6480_v33  ;;  %v6485_v16 = vand.u32 4294901760, %v6926_v14  ;;  %v6927_v33 = vld [vmem:[#allocation87_spill] sm:$0xff]  ;;  %v6961_v22 = vld [vmem:[#allocation138_spill] sm:$0xff] }
  0xf6   : > { %3272 = vmatprep.subr.bf16.mxu1 %v5035_v34  ;;  %3654 = vmatpush1.bf16.msra.mxu0 %v5033_v6  ;;  %v3661_v62 = vpack.c.bf16 %v2012_v15, %v2000_v23  ;;  %v735_v1 = vand.u32 4294901760, %v734_v27  ;;  %v2018_v45 = vand.u32 4294901760, %v2017_v9  ;;  %v740_v34 = vsub.f32 %v6925_v26, %v6483_v28  ;;  %v6928_v15 = vld [vmem:[#allocation89_spill] sm:$0xff]  ;;  %v6929_v9 = vld [vmem:[#allocation90_spill] sm:$0xff] }
  0xf7   : > { %3656 = vmatprep.subr.bf16.mxu0 %v5075_v41  ;;  %v2030_v0 = vand.u32 4294901760, %v2029_v17  ;;  %v729_v8 = vand.u32 4294901760, %v728_v42  ;;  %v2023_v39 = vsub.f32 %v6926_v14, %v6485_v16  ;;  %v6486_v31 = vand.u32 4294901760, %v6927_v33  ;;  %v6930_v17 = vld [vmem:[#allocation91_spill] sm:$0xff]  ;;  %v6937_v14 = vld [vmem:[#allocation102_spill] sm:$0xff] }
  0xf8   : > { %v3279_v6 = vpack.c.bf16 %v735_v1, %v723_v18  ;;  %v741_v23 = vand.u32 4294901760, %v740_v34  ;;  %v6487_v27 = vand.u32 4294901760, %v6928_v15  ;;  %v6488_v29 = vand.u32 4294901760, %v6929_v9  ;;  %v6931_v18 = vld [vmem:[#allocation93_spill] sm:$0xff]  ;;  %v6932_v34 = vld [vmem:[#allocation95_spill] sm:$0xff] }
  0xf9   : > { %3274 = vmatpush1.bf16.msra.mxu1 %v5082_v58  ;;  %v3663_v28 = vpack.c.bf16 %v2030_v0, %v2018_v45  ;;  %v2024_v26 = vand.u32 4294901760, %v2023_v39  ;;  %v2035_v41 = vsub.f32 %v6927_v33, %v6486_v31  ;;  %v6490_v42 = vand.u32 4294901760, %v6930_v17 }
  0xfa   : > { %3276 = vmatprep.subr.bf16.mxu1 %v3275_v49  ;;  %3658 = vmatpush1.bf16.msra.mxu0 %v3657_v47  ;;  %v3281_v16 = vpack.c.bf16 %v741_v23, %v729_v8  ;;  %v746_v1 = vsub.f32 %v6928_v15, %v6487_v27  ;;  %v758_v58 = vsub.f32 %v6929_v9, %v6488_v29  ;;  %v6492_v49 = vand.u32 4294901760, %v6931_v18  ;;  %v6933_v47 = vld [vmem:[#allocation96_spill] sm:$0xff]  ;;  %v6934_v29 = vld [vmem:[#allocation98_spill] sm:$0xff] }
  0xfb   : > { %3660 = vmatprep.subr.bf16.mxu0 %v3659_v35  ;;  %v2036_v45 = vand.u32 4294901760, %v2035_v41  ;;  %v2041_v39 = vsub.f32 %v6930_v17, %v6490_v42  ;;  %v6495_v0 = vand.u32 4294901760, %v6932_v34  ;;  %v6502_v8 = vand.u32 4294901760, %v6933_v47 }
  0xfc   : > { %v747_v23 = vand.u32 4294901760, %v746_v1  ;;  %v759_v31 = vand.u32 4294901760, %v758_v58  ;;  %v2053_v27 = vsub.f32 %v6931_v18, %v6492_v49  ;;  %v6499_v33 = vand.u32 4294901760, %v6934_v29  ;;  %v6935_v49 = vld [vmem:[#allocation99_spill] sm:$0xff] }
  0xfd   : > { %3278 = vmatpush1.bf16.msra.mxu1 %v3277_v4  ;;  %v3665_v35 = vpack.c.bf16 %v2036_v45, %v2024_v26  ;;  %v2042_v41 = vand.u32 4294901760, %v2041_v39  ;;  %v752_v42 = vsub.f32 %v6932_v34, %v6495_v0  ;;  %v764_v17 = vsub.f32 %v6933_v47, %v6502_v8  ;;  %v6936_v45 = vld [vmem:[#allocation101_spill] sm:$0xff] }
  0xfe   : > { %3280 = vmatprep.subr.bf16.mxu1 %v3279_v6  ;;  %3662 = vmatpush1.bf16.msra.mxu0 %v3661_v62  ;;  %v3283_v4 = vpack.c.bf16 %v759_v31, %v747_v23  ;;  %v2054_v1 = vand.u32 4294901760, %v2053_v27  ;;  %v2047_v58 = vsub.f32 %v6934_v29, %v6499_v33  ;;  %v6498_v18 = vand.u32 4294901760, %v6935_v49  ;;  %v6938_v31 = vld [vmem:[#allocation103_spill] sm:$0xff] }
  0xff   : > { %3664 = vmatprep.subr.bf16.mxu0 %v3663_v28  ;;  %v753_v26 = vand.u32 4294901760, %v752_v42  ;;  %v765_v6 = vand.u32 4294901760, %v764_v17  ;;  %v6500_v39 = vand.u32 4294901760, %v6936_v45  ;;  %v6501_v0 = vand.u32 4294901760, %v6937_v14  ;;  %v6939_v42 = vld [vmem:[#allocation105_spill] sm:$0xff] }
 0x100   : > { %v3667_v34 = vpack.c.bf16 %v2054_v1, %v2042_v41  ;;  %v2048_v9 = vand.u32 4294901760, %v2047_v58  ;;  %v2059_v62 = vsub.f32 %v6935_v49, %v6498_v18  ;;  %v6503_v27 = vand.u32 4294901760, %v6938_v31  ;;  %v6940_v58 = vld [vmem:[#allocation107_spill] sm:$0xff]  ;;  %v6945_v49 = vld [vmem:[#allocation114_spill] sm:$0xff] }
 0x101   : > { %3282 = vmatpush1.bf16.msra.mxu1 %v3281_v16  ;;  %v3285_v23 = vpack.c.bf16 %v765_v6, %v753_v26  ;;  %v770_v28 = vsub.f32 %v6936_v45, %v6500_v39  ;;  %v782_v17 = vsub.f32 %v6937_v14, %v6501_v0  ;;  %v6505_v16 = vand.u32 4294901760, %v6939_v42  ;;  %v6942_v0 = vld [vmem:[#allocation110_spill] sm:$0xff] }
 0x102   : > { %3284 = vmatprep.subr.bf16.mxu1 %v3283_v4  ;;  %3666 = vmatpush1.bf16.msra.mxu0 %v3665_v35  ;;  %v2060_v41 = vand.u32 4294901760, %v2059_v62  ;;  %v2065_v1 = vsub.f32 %v6938_v31, %v6503_v27  ;;  %v6509_v18 = vand.u32 4294901760, %v6940_v58  ;;  %v6941_v4 = vld [vmem:[#allocation108_spill] sm:$0xff]  ;;  %v6512_v8 = vand.u32 4294901760, %v6942_v0 }
 0x103   : > { %v6511_v26 = vand.u32 4294901760, %v6941_v4  ;;  %3668 = vmatprep.subr.bf16.mxu0 %v3667_v34  ;;  %v771_v6 = vand.u32 4294901760, %v770_v28  ;;  %v783_v33 = vand.u32 4294901760, %v782_v17  ;;  %v2077_v39 = vsub.f32 %v6939_v42, %v6505_v16  ;;  %v6943_v16 = vld [vmem:[#allocation111_spill] sm:$0xff] }
 0x104   : > { %v3669_v35 = vpack.c.bf16 %v2060_v41, %v2048_v9  ;;  %v2066_v62 = vand.u32 4294901760, %v2065_v1  ;;  %v776_v27 = vsub.f32 %v6940_v58, %v6509_v18  ;;  %v2071_v17 = vsub.f32 %v6942_v0, %v6512_v8  ;;  %v6944_v41 = vld [vmem:[#allocation113_spill] sm:$0xff] }
 0x105   : > { %3286 = vmatpush1.bf16.msra.mxu1 %v3285_v23  ;;  %v788_v31 = vsub.f32 %v6941_v4, %v6511_v26  ;;  %v3287_v34 = vpack.c.bf16 %v783_v33, %v771_v6  ;;  %v2078_v28 = vand.u32 4294901760, %v2077_v39  ;;  %v6513_v42 = vand.u32 4294901760, %v6943_v16  ;;  %v6946_v39 = vld [vmem:[#allocation115_spill] sm:$0xff] }
 0x106   : > { %3670 = vmatpush1.bf16.msra.mxu0 %v3669_v35  ;;  %v777_v23 = vand.u32 4294901760, %v776_v27  ;;  %v6515_v1 = vand.u32 4294901760, %v6944_v41  ;;  %v6516_v29 = vand.u32 4294901760, %v6945_v49  ;;  %v2072_v58 = vand.u32 4294901760, %v2071_v17  ;;  %v6947_v27 = vld [vmem:[#allocation117_spill] sm:$0xff] }
 0x107   : > { %v789_v9 = vand.u32 4294901760, %v788_v31  ;;  %3288 = vmatprep.subr.bf16.mxu1 %v3287_v34  ;;  %v3671_v18 = vpack.c.bf16 %v2078_v28, %v2066_v62  ;;  %v2083_v33 = vsub.f32 %v6943_v16, %v6513_v42  ;;  %v6519_v6 = vand.u32 4294901760, %v6946_v39  ;;  %v6948_v28 = vld [vmem:[#allocation119_spill] sm:$0xff]  ;;  %v6949_v42 = vld [vmem:[#allocation120_spill] sm:$0xff] }
 0x108   : > { %v794_v35 = vsub.f32 %v6944_v41, %v6515_v1  ;;  %v806_v31 = vsub.f32 %v6945_v49, %v6516_v29  ;;  %v6521_v8 = vand.u32 4294901760, %v6947_v27  ;;  %v6525_v17 = vand.u32 4294901760, %v6948_v28  ;;  %v6950_v29 = vld [vmem:[#allocation122_spill] sm:$0xff] }
 0x109   : > { %v3289_v26 = vpack.c.bf16 %v789_v9, %v777_v23  ;;  %3672 = vmatprep.subr.bf16.mxu0 %v3671_v18  ;;  %v2084_v62 = vand.u32 4294901760, %v2083_v33  ;;  %v2089_v34 = vsub.f32 %v6946_v39, %v6519_v6  ;;  %v6527_v23 = vand.u32 4294901760, %v6949_v42  ;;  %v6953_v41 = vld [vmem:[#allocation126_spill] sm:$0xff] }
 0x10a   : > { %v795_v9 = vand.u32 4294901760, %v794_v35  ;;  %v807_v16 = vand.u32 4294901760, %v806_v31  ;;  %v2101_v1 = vsub.f32 %v6947_v27, %v6521_v8  ;;  %v6528_v0 = vand.u32 4294901760, %v6950_v29  ;;  %v6951_v31 = vld [vmem:[#allocation123_spill] sm:$0xff] }
 0x10b   : > { %3290 = vmatpush1.bf16.msra.mxu1 %v3289_v26  ;;  %v3673_v49 = vpack.c.bf16 %v2084_v62, %v2072_v58  ;;  %v2090_v18 = vand.u32 4294901760, %v2089_v34  ;;  %v800_v33 = vsub.f32 %v6948_v28, %v6525_v17  ;;  %v812_v6 = vsub.f32 %v6949_v42, %v6527_v23  ;;  %v6952_v62 = vld [vmem:[#allocation125_spill] sm:$0xff] }
 0x10c   : > { %v3291_v39 = vpack.c.bf16 %v807_v16, %v795_v9  ;;  %v2102_v26 = vand.u32 4294901760, %v2101_v1  ;;  %v2095_v35 = vsub.f32 %v6950_v29, %v6528_v0  ;;  %v6529_v8 = vand.u32 4294901760, %v6951_v31  ;;  %v6954_v1 = vld [vmem:[#allocation127_spill] sm:$0xff] }
 0x10d   : > { %3674 = vmatpush1.bf16.msra.mxu0 %v3673_v49  ;;  %v801_v27 = vand.u32 4294901760, %v800_v33  ;;  %v813_v58 = vand.u32 4294901760, %v812_v6  ;;  %v6531_v34 = vand.u32 4294901760, %v6952_v62  ;;  %v6532_v4 = vand.u32 4294901760, %v6953_v41  ;;  %v6955_v33 = vld [vmem:[#allocation129_spill] sm:$0xff] }
 0x10e   : > { %3292 = vmatprep.subr.bf16.mxu1 %v3291_v39  ;;  %v3675_v17 = vpack.c.bf16 %v2102_v26, %v2090_v18  ;;  %v2096_v14 = vand.u32 4294901760, %v2095_v35  ;;  %v2107_v16 = vsub.f32 %v6951_v31, %v6529_v8  ;;  %v6535_v9 = vand.u32 4294901760, %v6954_v1  ;;  %v6956_v26 = vld [vmem:[#allocation131_spill] sm:$0xff]  ;;  %v6957_v8 = vld [vmem:[#allocation132_spill] sm:$0xff] }
 0x10f   : > { %v3293_v23 = vpack.c.bf16 %v813_v58, %v801_v27  ;;  %v818_v49 = vsub.f32 %v6952_v62, %v6531_v34  ;;  %v830_v6 = vsub.f32 %v6953_v41, %v6532_v4  ;;  %v6537_v0 = vand.u32 4294901760, %v6955_v33  ;;  %v6958_v4 = vld [vmem:[#allocation134_spill] sm:$0xff] }
 0x110   : > { %3676 = vmatprep.subr.bf16.mxu0 %v3675_v17  ;;  %v2108_v39 = vand.u32 4294901760, %v2107_v16  ;;  %v2113_v18 = vsub.f32 %v6954_v1, %v6535_v9  ;;  %v6541_v35 = vand.u32 4294901760, %v6956_v26  ;;  %v6543_v27 = vand.u32 4294901760, %v6957_v8 }
 0x111   : > { %3294 = vmatpush1.bf16.msra.mxu1 %v3293_v23  ;;  %v819_v58 = vand.u32 4294901760, %v818_v49  ;;  %v831_v45 = vand.u32 4294901760, %v830_v6  ;;  %v2125_v34 = vsub.f32 %v6955_v33, %v6537_v0  ;;  %v6544_v47 = vand.u32 4294901760, %v6958_v4  ;;  %v6959_v6 = vld [vmem:[#allocation135_spill] sm:$0xff] }
 0x112   : > { %v3677_v15 = vpack.c.bf16 %v2108_v39, %v2096_v14  ;;  %v2114_v17 = vand.u32 4294901760, %v2113_v18  ;;  %v824_v16 = vsub.f32 %v6956_v26, %v6541_v35  ;;  %v836_v9 = vsub.f32 %v6957_v8, %v6543_v27  ;;  %v6960_v39 = vld [vmem:[#allocation137_spill] sm:$0xff] }
 0x113   : > { %v3295_v20 = vpack.c.bf16 %v831_v45, %v819_v58  ;;  %v2126_v23 = vand.u32 4294901760, %v2125_v34  ;;  %v2119_v49 = vsub.f32 %v6958_v4, %v6544_v47  ;;  %v6545_v0 = vand.u32 4294901760, %v6959_v6  ;;  %v6962_v34 = vld [vmem:[#allocation139_spill] sm:$0xff] }
 0x114   : > { %3678 = vmatpush1.bf16.msra.mxu0 %v3677_v15  ;;  %v825_v5 = vand.u32 4294901760, %v824_v16  ;;  %v837_v14 = vand.u32 4294901760, %v836_v9  ;;  %v6547_v18 = vand.u32 4294901760, %v6960_v39  ;;  %v6548_v11 = vand.u32 4294901760, %v6961_v22  ;;  %v6963_v16 = vld [vmem:[#allocation141_spill] sm:$0xff] }
 0x115   : > { %3296 = vmatprep.subr.bf16.mxu1 %v3295_v20  ;;  %v3679_v35 = vpack.c.bf16 %v2126_v23, %v2114_v17  ;;  %v2120_v7 = vand.u32 4294901760, %v2119_v49  ;;  %v2131_v45 = vsub.f32 %v6959_v6, %v6545_v0  ;;  %v6552_v58 = vand.u32 4294901760, %v6962_v34  ;;  %v6964_v23 = vld [vmem:[#allocation143_spill] sm:$0xff]  ;;  %v6965_v0 = vld [vmem:[#allocation144_spill] sm:$0xff] }
 0x116   : > { %v3297_v27 = vpack.c.bf16 %v837_v14, %v825_v5  ;;  %v842_v15 = vsub.f32 %v6960_v39, %v6547_v18  ;;  %v854_v9 = vsub.f32 %v6961_v22, %v6548_v11  ;;  %v6554_v47 = vand.u32 4294901760, %v6963_v16  ;;  %v6966_v11 = vld [vmem:[#allocation146_spill] sm:$0xff] }
 0x117   : > { %3680 = vmatprep.subr.bf16.mxu0 %v3679_v35  ;;  %v2132_v20 = vand.u32 4294901760, %v2131_v45  ;;  %v2137_v17 = vsub.f32 %v6962_v34, %v6552_v58  ;;  %v6558_v49 = vand.u32 4294901760, %v6964_v23  ;;  %v6560_v5 = vand.u32 4294901760, %v6965_v0  ;;  %v6969_v39 = vld [vmem:[#allocation150_spill] sm:$0xff] }
 0x118   : > { %3298 = vmatpush1.bf16.msra.mxu1 %v3297_v27  ;;  %v843_v14 = vand.u32 4294901760, %v842_v15  ;;  %v855_v43 = vand.u32 4294901760, %v854_v9  ;;  %v2149_v18 = vsub.f32 %v6963_v16, %v6554_v47  ;;  %v6561_v46 = vand.u32 4294901760, %v6966_v11  ;;  %v6967_v9 = vld [vmem:[#allocation147_spill] sm:$0xff] }
 0x119   : > { %v3681_v22 = vpack.c.bf16 %v2132_v20, %v2120_v7  ;;  %v2138_v35 = vand.u32 4294901760, %v2137_v17  ;;  %v848_v45 = vsub.f32 %v6964_v23, %v6558_v49  ;;  %v860_v58 = vsub.f32 %v6965_v0, %v6560_v5  ;;  %v6968_v20 = vld [vmem:[#allocation149_spill] sm:$0xff] }
 0x11a   : > { %v3299_v34 = vpack.c.bf16 %v855_v43, %v843_v14  ;;  %v2150_v27 = vand.u32 4294901760, %v2149_v18  ;;  %v2143_v15 = vsub.f32 %v6966_v11, %v6561_v46  ;;  %v6562_v47 = vand.u32 4294901760, %v6967_v9  ;;  %v6970_v18 = vld [vmem:[#allocation151_spill] sm:$0xff]  ;;  %v6977_v11 = vld [vmem:[#allocation162_spill] sm:$0xff] }
 0x11b   : > { %3682 = vmatpush1.bf16.msra.mxu0 %v3681_v22  ;;  %v849_v16 = vand.u32 4294901760, %v848_v45  ;;  %v861_v7 = vand.u32 4294901760, %v860_v58  ;;  %v6564_v17 = vand.u32 4294901760, %v6968_v20  ;;  %v6565_v6 = vand.u32 4294901760, %v6969_v39  ;;  %v6971_v45 = vld [vmem:[#allocation153_spill] sm:$0xff] }
 0x11c   : > { %3300 = vmatprep.subr.bf16.mxu1 %v3299_v34  ;;  %v3683_v49 = vpack.c.bf16 %v2150_v27, %v2138_v35  ;;  %v2144_v23 = vand.u32 4294901760, %v2143_v15  ;;  %v2155_v43 = vsub.f32 %v6967_v9, %v6562_v47  ;;  %v6568_v14 = vand.u32 4294901760, %v6970_v18  ;;  %v6972_v27 = vld [vmem:[#allocation155_spill] sm:$0xff]  ;;  %v6973_v47 = vld [vmem:[#allocation156_spill] sm:$0xff] }
 0x11d   : > { %v3301_v5 = vpack.c.bf16 %v861_v7, %v849_v16  ;;  %v866_v22 = vsub.f32 %v6968_v20, %v6564_v17  ;;  %v878_v58 = vsub.f32 %v6969_v39, %v6565_v6  ;;  %v6570_v46 = vand.u32 4294901760, %v6971_v45  ;;  %v6974_v6 = vld [vmem:[#allocation158_spill] sm:$0xff] }
 0x11e   : > { %3684 = vmatprep.subr.bf16.mxu0 %v3683_v49  ;;  %v2156_v34 = vand.u32 4294901760, %v2155_v43  ;;  %v2161_v35 = vsub.f32 %v6970_v18, %v6568_v14  ;;  %v6574_v15 = vand.u32 4294901760, %v6972_v27  ;;  %v6576_v16 = vand.u32 4294901760, %v6973_v47 }
 0x11f   : > { %3302 = vmatpush1.bf16.msra.mxu1 %v3301_v5  ;;  %v867_v7 = vand.u32 4294901760, %v866_v22  ;;  %v879_v9 = vand.u32 4294901760, %v878_v58  ;;  %v2173_v17 = vsub.f32 %v6971_v45, %v6570_v46  ;;  %v6577_v39 = vand.u32 4294901760, %v6974_v6  ;;  %v6975_v58 = vld [vmem:[#allocation159_spill] sm:$0xff] }
 0x120   : > { %v3685_v20 = vpack.c.bf16 %v2156_v34, %v2144_v23  ;;  %v2162_v49 = vand.u32 4294901760, %v2161_v35  ;;  %v872_v43 = vsub.f32 %v6972_v27, %v6574_v15  ;;  %v884_v14 = vsub.f32 %v6973_v47, %v6576_v16  ;;  %v6976_v34 = vld [vmem:[#allocation161_spill] sm:$0xff] }
 0x121   : > { %v3303_v18 = vpack.c.bf16 %v879_v9, %v867_v7  ;;  %v2174_v5 = vand.u32 4294901760, %v2173_v17  ;;  %v2167_v22 = vsub.f32 %v6974_v6, %v6577_v39  ;;  %v6578_v46 = vand.u32 4294901760, %v6975_v58  ;;  %v6978_v17 = vld [vmem:[#allocation163_spill] sm:$0xff]  ;;  %v6985_v6 = vld [vmem:[#allocation174_spill] sm:$0xff] }
 0x122   : > { %3686 = vmatpush1.bf16.msra.mxu0 %v3685_v20  ;;  %v873_v45 = vand.u32 4294901760, %v872_v43  ;;  %v885_v23 = vand.u32 4294901760, %v884_v14  ;;  %v6580_v35 = vand.u32 4294901760, %v6976_v34  ;;  %v6581_v0 = vand.u32 4294901760, %v6977_v11  ;;  %v6979_v43 = vld [vmem:[#allocation165_spill] sm:$0xff] }
 0x123   : > { %3304 = vmatprep.subr.bf16.mxu1 %v3303_v18  ;;  %v3687_v15 = vpack.c.bf16 %v2174_v5, %v2162_v49  ;;  %v2168_v27 = vand.u32 4294901760, %v2167_v22  ;;  %v2179_v9 = vsub.f32 %v6975_v58, %v6578_v46  ;;  %v6584_v7 = vand.u32 4294901760, %v6978_v17  ;;  %v6980_v5 = vld [vmem:[#allocation167_spill] sm:$0xff]  ;;  %v6981_v46 = vld [vmem:[#allocation168_spill] sm:$0xff] }
 0x124   : > { %v3305_v16 = vpack.c.bf16 %v885_v23, %v873_v45  ;;  %v890_v20 = vsub.f32 %v6976_v34, %v6580_v35  ;;  %v902_v14 = vsub.f32 %v6977_v11, %v6581_v0  ;;  %v6586_v39 = vand.u32 4294901760, %v6979_v43  ;;  %v6982_v0 = vld [vmem:[#allocation170_spill] sm:$0xff] }
 0x125   : > { %3688 = vmatprep.subr.bf16.mxu0 %v3687_v15  ;;  %v2180_v18 = vand.u32 4294901760, %v2179_v9  ;;  %v2185_v49 = vsub.f32 %v6978_v17, %v6584_v7  ;;  %v6590_v22 = vand.u32 4294901760, %v6980_v5  ;;  %v6592_v45 = vand.u32 4294901760, %v6981_v46 }
 0x126   : > { %3306 = vmatpush1.bf16.msra.mxu1 %v3305_v16  ;;  %v891_v23 = vand.u32 4294901760, %v890_v20  ;;  %v903_v58 = vand.u32 4294901760, %v902_v14  ;;  %v2197_v35 = vsub.f32 %v6979_v43, %v6586_v39  ;;  %v6594_v11 = vand.u32 4294901760, %v6982_v0  ;;  %v6983_v14 = vld [vmem:[#allocation171_spill] sm:$0xff] }
 0x127   : > { %v3689_v34 = vpack.c.bf16 %v2180_v18, %v2168_v27  ;;  %v2186_v15 = vand.u32 4294901760, %v2185_v49  ;;  %v896_v9 = vsub.f32 %v6980_v5, %v6590_v22  ;;  %v908_v7 = vsub.f32 %v6981_v46, %v6592_v45  ;;  %v6984_v18 = vld [vmem:[#allocation173_spill] sm:$0xff] }
 0x128   : > { %v3307_v17 = vpack.c.bf16 %v903_v58, %v891_v23  ;;  %v2198_v16 = vand.u32 4294901760, %v2197_v35  ;;  %v2191_v20 = vsub.f32 %v6982_v0, %v6594_v11  ;;  %v6593_v39 = vand.u32 4294901760, %v6983_v14  ;;  %v6986_v35 = vld [vmem:[#allocation175_spill] sm:$0xff] }
 0x129   : > { %3690 = vmatpush1.bf16.msra.mxu0 %v3689_v34  ;;  %v897_v43 = vand.u32 4294901760, %v896_v9  ;;  %v909_v27 = vand.u32 4294901760, %v908_v7  ;;  %v6595_v49 = vand.u32 4294901760, %v6984_v18  ;;  %v6596_v47 = vand.u32 4294901760, %v6985_v6 }
 0x12a   : > { %3308 = vmatprep.subr.bf16.mxu1 %v3307_v17  ;;  %v3691_v22 = vpack.c.bf16 %v2198_v16, %v2186_v15  ;;  %v2192_v5 = vand.u32 4294901760, %v2191_v20  ;;  %v2203_v58 = vsub.f32 %v6983_v14, %v6593_v39  ;;  %v6599_v23 = vand.u32 4294901760, %v6986_v35  ;;  %v6987_v16 = vld [vmem:[#allocation179_spill] sm:$0xff]  ;;  %v6988_v39 = vld [vmem:[#allocation180_spill] sm:$0xff]  ;;  %v6992_v14 = vld [vmem:[#allocation186_spill] sm:$0xff] }
 0x12b   : > { %v3309_v45 = vpack.c.bf16 %v909_v27, %v897_v43  ;;  %v914_v34 = vsub.f32 %v6984_v18, %v6595_v49  ;;  %v926_v7 = vsub.f32 %v6985_v6, %v6596_v47  ;;  %v6601_v9 = vand.u32 4294901760, %v4802_v12  ;;  %v6989_v47 = vld [vmem:[#allocation182_spill] sm:$0xff] }
 0x12c   : > { %3692 = vmatprep.subr.bf16.mxu0 %v3691_v22  ;;  %v2204_v17 = vand.u32 4294901760, %v2203_v58  ;;  %v2209_v15 = vsub.f32 %v6986_v35, %v6599_v23  ;;  %v6606_v20 = vand.u32 4294901760, %v6987_v16  ;;  %v6608_v43 = vand.u32 4294901760, %v6988_v39 }
 0x12d   : > { %3310 = vmatpush1.bf16.msra.mxu1 %v3309_v45  ;;  %v915_v27 = vand.u32 4294901760, %v914_v34  ;;  %v927_v11 = vand.u32 4294901760, %v926_v7  ;;  %v2221_v49 = vsub.f32 %v4802_v12, %v6601_v9  ;;  %v6610_v6 = vand.u32 4294901760, %v6989_v47  ;;  %v6990_v7 = vld [vmem:[#allocation183_spill] sm:$0xff] }
 0x12e   : > { %v3693_v18 = vpack.c.bf16 %v2204_v17, %v2192_v5  ;;  %v2210_v22 = vand.u32 4294901760, %v2209_v15  ;;  %v920_v58 = vsub.f32 %v6987_v16, %v6606_v20  ;;  %v932_v23 = vsub.f32 %v6988_v39, %v6608_v43  ;;  %v6991_v17 = vld [vmem:[#allocation185_spill] sm:$0xff] }
 0x12f   : > { %v3311_v35 = vpack.c.bf16 %v927_v11, %v915_v27  ;;  %v2222_v45 = vand.u32 4294901760, %v2221_v49  ;;  %v2215_v34 = vsub.f32 %v6989_v47, %v6610_v6  ;;  %v6609_v9 = vand.u32 4294901760, %v6990_v7  ;;  %v6993_v49 = vld [vmem:[#allocation187_spill] sm:$0xff]  ;;  %v7062_v47 = vld [vmem:[#allocation78_spill] sm:$0xff] }
 0x130   : > { %3694 = vmatpush1.bf16.msra.mxu0 %v3693_v18  ;;  %v921_v12 = vand.u32 4294901760, %v920_v58  ;;  %v933_v5 = vand.u32 4294901760, %v932_v23  ;;  %v6613_v15 = vand.u32 4294901760, %v6991_v17  ;;  %v6611_v0 = vand.u32 4294901760, %v6992_v14 }
 0x131   : > { %3312 = vmatprep.subr.bf16.mxu1 %v3311_v35  ;;  %v3695_v20 = vpack.c.bf16 %v2222_v45, %v2210_v22  ;;  %v2216_v16 = vand.u32 4294901760, %v2215_v34  ;;  %v2227_v11 = vsub.f32 %v6990_v7, %v6609_v9  ;;  %v6612_v27 = vand.u32 4294901760, %v6993_v49  ;;  %v7064_v7 = vld [vmem:[#allocation75_spill] sm:$0xff] }
 0x132   : > { %v3313_v43 = vpack.c.bf16 %v933_v5, %v921_v12  ;;  %v938_v18 = vsub.f32 %v6991_v17, %v6613_v15  ;;  %v950_v23 = vsub.f32 %v6992_v14, %v6611_v0  ;;  %v6614_v58 = vand.u32 4294901760, %v4830_v56  ;;  %v7054_v17 = vld [vmem:[#allocation214_spill] sm:$0xff] }
 0x133   : > { %3696 = vmatprep.subr.bf16.mxu0 %v3695_v20  ;;  %v2228_v35 = vand.u32 4294901760, %v2227_v11  ;;  %v2233_v22 = vsub.f32 %v6993_v49, %v6612_v27  ;;  %v6618_v45 = vand.u32 4294901760, %v4834_v44  ;;  %v6621_v12 = vand.u32 4294901760, %v4836_v48 }
 0x134   : > { %3314 = vmatpush1.bf16.msra.mxu1 %v3313_v43  ;;  %v939_v34 = vand.u32 4294901760, %v938_v18  ;;  %v951_v5 = vand.u32 4294901760, %v950_v23  ;;  %v2245_v9 = vsub.f32 %v4830_v56, %v6614_v58  ;;  %v6622_v6 = vand.u32 4294901760, %v4840_v60  ;;  %v6994_v23 = vld [vmem:[#allocation195_spill] sm:$0xff] }
 0x135   : > { %v3697_v0 = vpack.c.bf16 %v2228_v35, %v2216_v16  ;;  %v2234_v20 = vand.u32 4294901760, %v2233_v22  ;;  %v944_v11 = vsub.f32 %v4834_v44, %v6618_v45  ;;  %v956_v27 = vsub.f32 %v4836_v48, %v6621_v12  ;;  %v6995_v22 = vld [vmem:[#allocation198_spill] sm:$0xff] }
 0x136   : > { %v3315_v15 = vpack.c.bf16 %v951_v5, %v939_v34  ;;  %v2246_v43 = vand.u32 4294901760, %v2245_v9  ;;  %v2239_v18 = vsub.f32 %v4840_v60, %v6622_v6  ;;  %v6623_v58 = vand.u32 4294901760, %v6994_v23  ;;  %v6996_v34 = vld [vmem:[#allocation199_spill] sm:$0xff]  ;;  %v7058_v60 = vld [vmem:[#allocation69_spill] sm:$0xff] }
 0x137   : > { %3698 = vmatpush1.bf16.msra.mxu0 %v3697_v0  ;;  %v945_v56 = vand.u32 4294901760, %v944_v11  ;;  %v957_v16 = vand.u32 4294901760, %v956_v27  ;;  %v6625_v35 = vand.u32 4294901760, %v4849_v40  ;;  %v6626_v49 = vand.u32 4294901760, %v6995_v22  ;;  %v6997_v11 = vld [vmem:[#allocation201_spill] sm:$0xff] }
 0x138   : > { %3316 = vmatprep.subr.bf16.mxu1 %v3315_v15  ;;  %v3699_v45 = vpack.c.bf16 %v2246_v43, %v2234_v20  ;;  %v2240_v44 = vand.u32 4294901760, %v2239_v18  ;;  %v2251_v9 = vsub.f32 %v6994_v23, %v6623_v58  ;;  %v6630_v5 = vand.u32 4294901760, %v6996_v34  ;;  %v6998_v43 = vld [vmem:[#allocation203_spill] sm:$0xff]  ;;  %v6999_v58 = vld [vmem:[#allocation204_spill] sm:$0xff] }
 0x139   : > { %v3317_v12 = vpack.c.bf16 %v957_v16, %v945_v56  ;;  %v962_v0 = vsub.f32 %v4849_v40, %v6625_v35  ;;  %v974_v27 = vsub.f32 %v6995_v22, %v6626_v49  ;;  %v6632_v6 = vand.u32 4294901760, %v6997_v11  ;;  %v7000_v49 = vld [vmem:[#allocation206_spill] sm:$0xff] }
 0x13a   : > { %3700 = vmatprep.subr.bf16.mxu0 %v3699_v45  ;;  %v2252_v15 = vand.u32 4294901760, %v2251_v9  ;;  %v2257_v20 = vsub.f32 %v6996_v34, %v6630_v5  ;;  %v6634_v18 = vand.u32 4294901760, %v6998_v43  ;;  %v6636_v56 = vand.u32 4294901760, %v6999_v58 }
 0x13b   : > { %3318 = vmatpush1.bf16.msra.mxu1 %v3317_v12  ;;  %v963_v16 = vand.u32 4294901760, %v962_v0  ;;  %v975_v23 = vand.u32 4294901760, %v974_v27  ;;  %v2269_v35 = vsub.f32 %v6997_v11, %v6632_v6  ;;  %v6637_v22 = vand.u32 4294901760, %v7000_v49  ;;  %v7001_v27 = vld [vmem:[#allocation207_spill] sm:$0xff] }
 0x13c   : > { %v3701_v40 = vpack.c.bf16 %v2252_v15, %v2240_v44  ;;  %v2258_v45 = vand.u32 4294901760, %v2257_v20  ;;  %v968_v9 = vsub.f32 %v6998_v43, %v6634_v18  ;;  %v980_v5 = vsub.f32 %v6999_v58, %v6636_v56  ;;  %v7002_v43 = vld [vmem:[#allocation17_spill] sm:$0xff]  ;;  %v7003_v56 = vld [vmem:[#allocation18_spill] sm:$0xff] }
 0x13d   : > { %v3319_v34 = vpack.c.bf16 %v975_v23, %v963_v16  ;;  %v2270_v12 = vand.u32 4294901760, %v2269_v35  ;;  %v2263_v0 = vsub.f32 %v7000_v49, %v6637_v22  ;;  %v6640_v6 = vand.u32 4294901760, %v7001_v27  ;;  %v7004_v22 = vld [vmem:[#allocation19_spill] sm:$0xff]  ;;  %v7005_v49 = vld [vmem:[#allocation21_spill] sm:$0xff] }
 0x13e   : > { %3702 = vmatpush1.bf16.msra.mxu0 %v3701_v40  ;;  %v969_v11 = vand.u32 4294901760, %v968_v9  ;;  %v981_v44 = vand.u32 4294901760, %v980_v5  ;;  %v3323_v23 = vpack.c.bf16 %v7003_v56, %v7002_v43  ;;  %v3707_v58 = vpack.c.bf16 %v7005_v49, %v7004_v22  ;;  %v7043_v43 = vld [vmem:[#allocation187_spill] sm:$0xff]  ;;  %v7050_v56 = vld [vmem:[#allocation201_spill] sm:$0xff] }
 0x13f   : > { %3320 = vmatprep.subr.bf16.mxu1 %v3319_v34  ;;  %v3703_v15 = vpack.c.bf16 %v2270_v12, %v2258_v45  ;;  %v2264_v20 = vand.u32 4294901760, %v2263_v0  ;;  %v2275_v18 = vsub.f32 %v7001_v27, %v6640_v6  ;;  %v3325_v40 = vpack.c.bf16 %v4444_v38, %v4441_v36  ;;  %v7012_v6 = vld [vmem:[#allocation60_spill] sm:$0xff]  ;;  %v7038_v36 = vld [vmem:[#allocation173_spill] sm:$0xff]  ;;  %v7057_v49 = vld [vmem:[#allocation67_spill] sm:$0xff] }
 0x140   : > { %v3321_v35 = vpack.c.bf16 %v981_v44, %v969_v11  ;;  %v3327_v5 = vpack.c.bf16 %v4458_v57, %v4454_v52  ;;  %v3709_v11 = vpack.c.bf16 %v4452_v51, %v4450_v50  ;;  %v3329_v45 = vpack.c.bf16 %v4473_v10, %v4467_v63  ;;  %v7032_v51 = vld [vmem:[#allocation210_spill] sm:$0xff]  ;;  %v7035_v57 = vld [vmem:[#allocation167_spill] sm:$0xff]  ;;  %v7044_v38 = vld [vmem:[#allocation189_spill] sm:$0xff] }
 0x141   : > { %3704 = vmatprep.subr.bf16.mxu0 %v3703_v15  ;;  %v2276_v16 = vand.u32 4294901760, %v2275_v18  ;;  %v3711_v18 = vpack.c.bf16 %v4465_v61, %v4462_v59  ;;  %v3713_v9 = vpack.c.bf16 %v4479_v19, %v4475_v13  ;;  %v3331_v12 = vpack.c.bf16 %v4486_v30, %v4483_v21  ;;  %v7006_v15 = vld [vmem:[#allocation213_spill] sm:$0xff]  ;;  %v7027_v21 = vld [vmem:[#allocation156_spill] sm:$0xff]  ;;  %v7037_v30 = vld [vmem:[#allocation171_spill] sm:$0xff] }
 0x142   : > { %3322 = vmatpush1.bf16.msra.mxu1 %v3321_v35  ;;  %v3715_v0 = vpack.c.bf16 %v4492_v37, %v4490_v32  ;;  %v3717_v44 = vpack.c.bf16 %v4507_v3, %v4505_v2  ;;  %v3339_v37 = vpack.c.bf16 %v6910_v24, %v6909_v25  ;;  %v7013_v24 = vld [vmem:[#allocation135_spill] sm:$0xff]  ;;  %v7014_v25 = vld [vmem:[#allocation137_spill] sm:$0xff]  ;;  %v7023_v32 = vld [vmem:[#allocation150_spill] sm:$0xff]  ;;  %v3723_v22 = vpack.c.bf16 %v7058_v60, %v7057_v49 }
 0x143   : > { %v3705_v34 = vpack.c.bf16 %v2276_v16, %v2264_v20  ;;  %3324 = vmatprep.subr.bf16.mxu1 %v3323_v23  ;;  %v7007_v20 = vld [vmem:[#allocation53_spill] sm:$0xff]  ;;  %v7008_v23 = vld [vmem:[#allocation54_spill] sm:$0xff]  ;;  %v7009_v16 = vld [vmem:[#allocation56_spill] sm:$0xff] }
 0x144   : > { %v3335_v35 = vpack.c.bf16 %v7008_v23, %v7007_v20  ;;  %v7017_v3 = vld [vmem:[#allocation141_spill] sm:$0xff]  ;;  %v7018_v23 = vld [vmem:[#allocation143_spill] sm:$0xff]  ;;  %v7039_v10 = vld [vmem:[#allocation174_spill] sm:$0xff] }
 0x145   : > { %3706 = vmatpush1.bf16.msra.mxu0 %v3705_v34  ;;  %986 = vmatmul.mubr.f32.vlgmr.msra.gmra.mrb[0].mxu1 %v5016_v55  ;;  %v7021_v2 = vld [vmem:[#allocation147_spill] sm:$0xff]  ;;  %v7025_v13 = vld [vmem:[#allocation153_spill] sm:$0xff]  ;;  %v7048_v63 = vld [vmem:[#allocation198_spill] sm:$0xff] }
 0x146   : > { %3708 = vmatprep.subr.bf16.mxu0 %v3707_v58  ;;  %3326 = vmatpush1.bf16.msra.mxu1 %v3325_v40  ;;  %v3333_v58 = vpack.c.bf16 %v4501_v54, %v4499_v53  ;;  %v7010_v40 = vld [vmem:[#allocation57_spill] sm:$0xff]  ;;  %v7020_v53 = vld [vmem:[#allocation146_spill] sm:$0xff]  ;;  %v7033_v20 = vld [vmem:[#allocation163_spill] sm:$0xff] }
 0x147   : > { %3328 = vmatprep.subr.bf16.mxu1 %v3327_v5  ;;  %v3719_v34 = vpack.c.bf16 %v7010_v40, %v7009_v16  ;;  %v7011_v5 = vld [vmem:[#allocation58_spill] sm:$0xff]  ;;  %v7016_v40 = vld [vmem:[#allocation139_spill] sm:$0xff]  ;;  %v7030_v61 = vld [vmem:[#allocation161_spill] sm:$0xff]  ;;  %1186 = vmatprep.mubr.f32.mxu1 %v7032_v51 }
 0x148   : > { %2281 = vmatmul.mubr.f32.vlgmr.msra.gmra.mrb[0].mxu0 %v7006_v15  ;;  %v3337_v55 = vpack.c.bf16 %v7012_v6, %v7011_v5  ;;  %v7015_v5 = vld [vmem:[#allocation138_spill] sm:$0xff]  ;;  %v7019_v15 = vld [vmem:[#allocation144_spill] sm:$0xff]  ;;  %v7024_v6 = vld [vmem:[#allocation151_spill] sm:$0xff] }
 0x149   : > { %3710 = vmatpush1.bf16.msra.mxu0 %v3709_v11  ;;  %v7026_v11 = vld [vmem:[#allocation155_spill] sm:$0xff]  ;;  %v7028_v54 = vld [vmem:[#allocation158_spill] sm:$0xff]  ;;  %2481 = vmatprep.mubr.f32.mxu0 %v7054_v17  ;;  %v7060_v59 = vld [vmem:[#allocation72_spill] sm:$0xff] }
 0x14a   : > { %3712 = vmatprep.subr.bf16.mxu0 %v3711_v18  ;;  %3330 = vmatpush1.bf16.msra.mxu1 %v3329_v45  ;;  %v7022_v45 = vld [vmem:[#allocation149_spill] sm:$0xff]  ;;  %v7031_v16 = vld [vmem:[#allocation162_spill] sm:$0xff] }
 0x14b   : > { %3332 = vmatprep.subr.bf16.mxu1 %v3331_v12  ;;  %v7029_v12 = vld [vmem:[#allocation159_spill] sm:$0xff]  ;;  %v7034_v18 = vld [vmem:[#allocation165_spill] sm:$0xff]  ;;  %v7055_v51 = vld [vmem:[#allocation62_spill] sm:$0xff] }
 0x14c   : > { %v7063_v19 = vld [vmem:[#allocation74_spill] sm:$0xff]  ;;  %v7069_v60 = vld [vmem:[#allocation89_spill] sm:$0xff] }
 0x14d   : > { %3714 = vmatpush1.bf16.msra.mxu0 %v3713_v9  ;;  %v7061_v9 = vld [vmem:[#allocation77_spill] sm:$0xff]  ;;  %v3725_v17 = vpack.c.bf16 %v7064_v7, %v7063_v19  ;;  %v7070_v49 = vld [vmem:[#allocation90_spill] sm:$0xff]  ;;  %v7076_v19 = vld [vmem:[#allocation96_spill] sm:$0xff] }
 0x14e   : > { %3716 = vmatprep.subr.bf16.mxu0 %v3715_v0  ;;  %3334 = vmatpush1.bf16.msra.mxu1 %v3333_v58  ;;  %v7056_v0 = vld [vmem:[#allocation63_spill] sm:$0xff]  ;;  %v3343_v50 = vpack.c.bf16 %v7062_v47, %v7061_v9  ;;  %v7074_v7 = vld [vmem:[#allocation93_spill] sm:$0xff] }
 0x14f   : > { %3336 = vmatprep.subr.bf16.mxu1 %v3335_v35  ;;  %v7052_v35 = vld [vmem:[#allocation204_spill] sm:$0xff]  ;;  %v3721_v52 = vpack.c.bf16 %v7056_v0, %v7055_v51  ;;  %v7059_v58 = vld [vmem:[#allocation71_spill] sm:$0xff]  ;;  %v7066_v0 = vld [vmem:[#allocation81_spill] sm:$0xff] }
 0x150   : > { %v3341_v39 = vpack.c.bf16 %v7060_v59, %v7059_v58  ;;  %v7068_v51 = vld [vmem:[#allocation84_spill] sm:$0xff]  ;;  %v3347_v59 = vpack.c.bf16 %v7070_v49, %v7069_v60  ;;  %v7072_v58 = vld [vmem:[#allocation87_spill] sm:$0xff] }
 0x151   : > { %3718 = vmatpush1.bf16.msra.mxu0 %v3717_v44  ;;  %v7065_v44 = vld [vmem:[#allocation79_spill] sm:$0xff] }
 0x152   : > { %3720 = vmatprep.subr.bf16.mxu0 %v3719_v34  ;;  %3338 = vmatpush1.bf16.msra.mxu1 %v3337_v55  ;;  %v3727_v34 = vpack.c.bf16 %v7066_v0, %v7065_v44  ;;  %v7067_v55 = vld [vmem:[#allocation83_spill] sm:$0xff]  ;;  %v7077_v0 = vld [vmem:[#allocation101_spill] sm:$0xff]  ;;  %v7078_v44 = vld [vmem:[#allocation102_spill] sm:$0xff] }
 0x153   : > { %3340 = vmatprep.subr.bf16.mxu1 %v3339_v37  ;;  %v3345_v27 = vpack.c.bf16 %v7068_v51, %v7067_v55  ;;  %v7071_v37 = vld [vmem:[#allocation86_spill] sm:$0xff]  ;;  %v3351_v51 = vpack.c.bf16 %v7078_v44, %v7077_v0  ;;  %v7080_v55 = vld [vmem:[#allocation99_spill] sm:$0xff] }
 0x154   : > { %v3729_v47 = vpack.c.bf16 %v7072_v58, %v7071_v37  ;;  %v7082_v58 = vld [vmem:[#allocation105_spill] sm:$0xff]  ;;  %v7084_v37 = vld [vmem:[#allocation108_spill] sm:$0xff] }
 0x155   : > { %3722 = vmatpush1.bf16.msra.mxu0 %v3721_v52  ;;  %v7073_v52 = vld [vmem:[#allocation91_spill] sm:$0xff] }
 0x156   : > { %3724 = vmatprep.subr.bf16.mxu0 %v3723_v22  ;;  %3342 = vmatpush1.bf16.msra.mxu1 %v3341_v39  ;;  %v3731_v22 = vpack.c.bf16 %v7074_v7, %v7073_v52  ;;  %v7075_v39 = vld [vmem:[#allocation95_spill] sm:$0xff]  ;;  %v7085_v7 = vld [vmem:[#allocation113_spill] sm:$0xff]  ;;  %v7086_v52 = vld [vmem:[#allocation114_spill] sm:$0xff] }
 0x157   : > { %3344 = vmatprep.subr.bf16.mxu1 %v3343_v50  ;;  %v3349_v9 = vpack.c.bf16 %v7076_v19, %v7075_v39  ;;  %v7079_v50 = vld [vmem:[#allocation98_spill] sm:$0xff]  ;;  %v3355_v19 = vpack.c.bf16 %v7086_v52, %v7085_v7  ;;  %v7088_v39 = vld [vmem:[#allocation111_spill] sm:$0xff] }
 0x158   : > { %v3733_v49 = vpack.c.bf16 %v7080_v55, %v7079_v50  ;;  %v7090_v55 = vld [vmem:[#allocation117_spill] sm:$0xff] }
 0x159   : > { %3726 = vmatpush1.bf16.msra.mxu0 %v3725_v17  ;;  %v7081_v17 = vld [vmem:[#allocation103_spill] sm:$0xff] }
 0x15a   : > { %3728 = vmatprep.subr.bf16.mxu0 %v3727_v34  ;;  %3346 = vmatpush1.bf16.msra.mxu1 %v3345_v27  ;;  %v3735_v34 = vpack.c.bf16 %v7082_v58, %v7081_v17  ;;  %v7083_v27 = vld [vmem:[#allocation107_spill] sm:$0xff] }
 0x15b   : > { %3348 = vmatprep.subr.bf16.mxu1 %v3347_v59  ;;  %v3353_v60 = vpack.c.bf16 %v7084_v37, %v7083_v27  ;;  %v7087_v59 = vld [vmem:[#allocation110_spill] sm:$0xff] }
 0x15c   : > { %v3737_v44 = vpack.c.bf16 %v7088_v39, %v7087_v59 }
 0x15d   : > { %3730 = vmatpush1.bf16.msra.mxu0 %v3729_v47  ;;  %v7089_v47 = vld [vmem:[#allocation115_spill] sm:$0xff] }
 0x15e   : > { %3732 = vmatprep.subr.bf16.mxu0 %v3731_v22  ;;  %3350 = vmatpush1.bf16.msra.mxu1 %v3349_v9  ;;  %v3739_v22 = vpack.c.bf16 %v7090_v55, %v7089_v47  ;;  %v7091_v9 = vpack.c.bf16 %v6949_v42, %v6948_v28 }
 0x15f   : > { %3352 = vmatprep.subr.bf16.mxu1 %v3351_v51  ;;  %v7092_v51 = vpack.c.bf16 %v6953_v41, %v6952_v62 }
 0x161   : > { %3734 = vmatpush1.bf16.msra.mxu0 %v3733_v49  ;;  %v7093_v49 = vpack.c.bf16 %v6951_v31, %v6950_v29 }
 0x162   : > { %3736 = vmatprep.subr.bf16.mxu0 %v3735_v34  ;;  %3354 = vmatpush1.bf16.msra.mxu1 %v3353_v60  ;;  %v7094_v60 = vpack.c.bf16 %v6955_v33, %v6954_v1  ;;  %v7097_v34 = vpack.c.bf16 %v7013_v24, %v6958_v4 }
 0x163   : > { %3356 = vmatprep.subr.bf16.mxu1 %v3355_v19  ;;  %v7095_v19 = vpack.c.bf16 %v6957_v8, %v6956_v26 }
 0x165   : > { %3738 = vmatpush1.bf16.msra.mxu0 %v3737_v44  ;;  %v7096_v44 = vpack.c.bf16 %v7015_v5, %v7014_v25 }
 0x166   : > { %3740 = vmatprep.subr.bf16.mxu0 %v3739_v22  ;;  %3358 = vmatpush1.bf16.msra.mxu1 %v7091_v9  ;;  %v7098_v22 = vpack.c.bf16 %v7017_v3, %v7016_v40  ;;  %v7099_v9 = vpack.c.bf16 %v7019_v15, %v7018_v23 }
 0x167   : > { %3360 = vmatprep.subr.bf16.mxu1 %v7092_v51  ;;  %v7100_v51 = vpack.c.bf16 %v7023_v32, %v7022_v45 }
 0x169   : > { %3742 = vmatpush1.bf16.msra.mxu0 %v7093_v49  ;;  %v7101_v49 = vpack.c.bf16 %v7021_v2, %v7020_v53 }
 0x16a   : > { %3744 = vmatprep.subr.bf16.mxu0 %v7094_v60  ;;  %3362 = vmatpush1.bf16.msra.mxu1 %v7095_v19  ;;  %v7102_v60 = vpack.c.bf16 %v7025_v13, %v7024_v6  ;;  %v7103_v19 = vpack.c.bf16 %v7027_v21, %v7026_v11 }
 0x16b   : > { %3364 = vmatprep.subr.bf16.mxu1 %v7096_v44  ;;  %v7104_v44 = vpack.c.bf16 %v7031_v16, %v7030_v61 }
 0x16d   : > { %3746 = vmatpush1.bf16.msra.mxu0 %v7097_v34  ;;  %v7105_v34 = vpack.c.bf16 %v7029_v12, %v7028_v54  ;;  %v7115_v54 = vld [vmem:[#allocation179_spill] sm:$0xff] }
 0x16e   : > { %3748 = vmatprep.subr.bf16.mxu0 %v7098_v22  ;;  %3366 = vmatpush1.bf16.msra.mxu1 %v7099_v9  ;;  %v7106_v22 = vpack.c.bf16 %v7034_v18, %v7033_v20  ;;  %v7107_v9 = vpack.c.bf16 %v6981_v46, %v7035_v57  ;;  %v7120_v57 = vld [vmem:[#allocation182_spill] sm:$0xff] }
 0x16f   : > { %3368 = vmatprep.subr.bf16.mxu1 %v7100_v51  ;;  %v7108_v51 = vpack.c.bf16 %v7039_v10, %v7038_v36 }
 0x171   : > { %3750 = vmatpush1.bf16.msra.mxu0 %v7101_v49  ;;  %v7109_v49 = vld [vmem:[#allocation170_spill] sm:$0xff] }
 0x172   : > { %3752 = vmatprep.subr.bf16.mxu0 %v7102_v60  ;;  %3370 = vmatpush1.bf16.msra.mxu1 %v7103_v19  ;;  %v7110_v60 = vpack.c.bf16 %v7037_v30, %v7109_v49  ;;  %v7111_v19 = vld [vmem:[#allocation177_spill] sm:$0xff]  ;;  %v7238_v49 = vld [vmem:[#allocation42_spill] sm:$0xff] }
 0x173   : > { %3372 = vmatprep.subr.bf16.mxu1 %v7104_v44  ;;  %v7112_v44 = vld [vmem:[#allocation175_spill] sm:$0xff]  ;;  %v7222_v30 = vld [vmem:[#allocation205_spill] sm:$0xff] }
 0x174   : > { %v7113_v12 = vpack.c.bf16 %v7111_v19, %v7112_v44 }
 0x175   : > { %3754 = vmatpush1.bf16.msra.mxu0 %v7105_v34  ;;  %v7114_v34 = vld [vmem:[#allocation180_spill] sm:$0xff] }
 0x176   : > { %3756 = vmatprep.subr.bf16.mxu0 %v7106_v22  ;;  %3374 = vmatpush1.bf16.msra.mxu1 %v7107_v9  ;;  %v7116_v18 = vpack.c.bf16 %v7114_v34, %v7115_v54  ;;  %v7117_v22 = vld [vmem:[#allocation185_spill] sm:$0xff]  ;;  %v7119_v9 = vld [vmem:[#allocation183_spill] sm:$0xff]  ;;  %v7128_v54 = vld [vmem:[#allocation194_spill] sm:$0xff] }
 0x177   : > { %3376 = vmatprep.subr.bf16.mxu1 %v7108_v51  ;;  %v7118_v46 = vpack.c.bf16 %v6992_v14, %v7117_v22  ;;  %v7121_v10 = vpack.c.bf16 %v7119_v9, %v7120_v57  ;;  %v7122_v51 = vpack.c.bf16 %v7044_v38, %v7043_v43  ;;  %v7214_v57 = vld [vmem:[#allocation23_spill] sm:$0xff]  ;;  %v7216_v22 = vld [vmem:[#allocation24_spill] sm:$0xff] }
 0x179   : > { %3758 = vmatpush1.bf16.msra.mxu0 %v7110_v60  ;;  %v7123_v60 = vld [vmem:[#allocation191_spill] sm:$0xff] }
 0x17a   : > { %3760 = vmatprep.subr.bf16.mxu0 %v7113_v12  ;;  %3378 = vmatpush1.bf16.msra.mxu1 %v7116_v18  ;;  %v7124_v19 = vpack.c.bf16 %v4836_v48, %v7123_v60  ;;  %v7125_v12 = vld [vmem:[#allocation197_spill] sm:$0xff]  ;;  %v7127_v18 = vld [vmem:[#allocation195_spill] sm:$0xff] }
 0x17b   : > { %3380 = vmatprep.subr.bf16.mxu1 %v7118_v46  ;;  %v7126_v34 = vpack.c.bf16 %v7048_v63, %v7125_v12  ;;  %v7129_v14 = vpack.c.bf16 %v7127_v18, %v7128_v54  ;;  %v7130_v46 = vld [vmem:[#allocation199_spill] sm:$0xff]  ;;  %v7138_v63 = vld [vmem:[#allocation212_spill] sm:$0xff]  ;;  %v7140_v18 = vld [vmem:[#allocation22_spill] sm:$0xff] }
 0x17c   : > { %v7131_v9 = vpack.c.bf16 %v7050_v56, %v7130_v46  ;;  %v7135_v48 = vld [vmem:[#allocation207_spill] sm:$0xff]  ;;  %v7142_v56 = vld [vmem:[#allocation210_spill] sm:$0xff] }
 0x17d   : > { %3762 = vmatpush1.bf16.msra.mxu0 %v7121_v10  ;;  %v7132_v10 = vld [vmem:[#allocation203_spill] sm:$0xff] }
 0x17e   : > { %3764 = vmatprep.subr.bf16.mxu0 %v7122_v51  ;;  %3382 = vmatpush1.bf16.msra.mxu1 %v7124_v19  ;;  %v7133_v38 = vpack.c.bf16 %v7052_v35, %v7132_v10  ;;  %v7134_v51 = vld [vmem:[#allocation16_spill] sm:$0xff]  ;;  %v7136_v19 = vld [vmem:[#allocation206_spill] sm:$0xff]  ;;  %v7144_v46 = vld [vmem:[#allocation215_spill] sm:$0xff] }
 0x17f   : > { %3384 = vmatprep.subr.bf16.mxu1 %v7126_v34  ;;  %v7137_v60 = vpack.c.bf16 %v7135_v48, %v7136_v19  ;;  %v7139_v34 = vld [vmem:[#allocation20_spill] sm:$0xff]  ;;  %v7148_v48 = vld [vmem:[#allocation31_spill] sm:$0xff]  ;;  %v7205_v10 = vld [vmem:[#allocation18_spill] sm:$0xff] }
 0x180   : > { %v7150_v19 = vld [vmem:[#allocation40_spill] sm:$0xff] }
 0x181   : > { %3766 = vmatpush1.bf16.msra.mxu0 %v7129_v14  ;;  %v7141_v14 = vld [vmem:[#allocation29_spill] sm:$0xff] }
 0x182   : > { %3768 = vmatprep.subr.bf16.mxu0 %v7131_v9  ;;  %3386 = vmatpush1.bf16.msra.mxu1 %v7133_v38  ;;  %v7143_v9 = vand.u32 4294901760, %v7142_v56  ;;  %v7145_v38 = vld [vmem:[#allocation25_spill] sm:$0xff]  ;;  %v7154_v56 = vld [vmem:[#allocation52_spill] sm:$0xff] }
 0x183   : > { %3388 = vmatprep.subr.bf16.mxu1 %v7134_v51  ;;  %v7146_v51 = vld [vmem:[#allocation214_spill] sm:$0xff] }
 0x184   : > { %v7147_v35 = vand.u32 4294901760, %v7146_v51  ;;  %v7157_v51 = vld [vmem:[#allocation59_spill] sm:$0xff] }
 0x185   : > { %3770 = vmatpush1.bf16.msra.mxu0 %v7137_v60  ;;  %1189 = vmatmul.mubr.f32.vlgmr.msra.gmra.mrb[0].mxu1 %v7138_v63  ;;  %v7149_v60 = vld [vmem:[#allocation35_spill] sm:$0xff] }
 0x186   : > { %3772 = vmatprep.subr.bf16.mxu0 %v7139_v34  ;;  %3390 = vmatpush1.bf16.msra.mxu1 %v7140_v18  ;;  %v7151_v34 = vld [vmem:[#allocation38_spill] sm:$0xff]  ;;  %v7152_v18 = vld [vmem:[#allocation43_spill] sm:$0xff] }
 0x187   : > { %3392 = vmatprep.subr.bf16.mxu1 %v7141_v14  ;;  %1326 = vmatprep.mubr.f32.mxu1 %v7143_v9  ;;  %v7153_v14 = vld [vmem:[#allocation46_spill] sm:$0xff]  ;;  %v7155_v9 = vld [vmem:[#allocation49_spill] sm:$0xff] }
 0x188   : > { %2484 = vmatmul.mubr.f32.vlgmr.msra.gmra.mrb[0].mxu0 %v7144_v46 }
 0x189   : > { %3774 = vmatpush1.bf16.msra.mxu0 %v7145_v38  ;;  %2621 = vmatprep.mubr.f32.mxu0 %v7147_v35  ;;  %v7156_v38 = vld [vmem:[#allocation55_spill] sm:$0xff]  ;;  %v7158_v35 = vld [vmem:[#allocation64_spill] sm:$0xff] }
 0x18a   : > { %3776 = vmatprep.subr.bf16.mxu0 %v7148_v48  ;;  %3394 = vmatpush1.bf16.msra.mxu1 %v7149_v60  ;;  %v7159_v48 = vld [vmem:[#allocation61_spill] sm:$0xff]  ;;  %v7160_v60 = vld [vmem:[#allocation68_spill] sm:$0xff] }
 0x18b   : > { %3396 = vmatprep.subr.bf16.mxu1 %v7150_v19  ;;  %v7161_v19 = vld [vmem:[#allocation70_spill] sm:$0xff] }
 0x18d   : > { %3778 = vmatpush1.bf16.msra.mxu0 %v7151_v34  ;;  %v7162_v34 = vld [vmem:[#allocation76_spill] sm:$0xff] }
 0x18e   : > { %3780 = vmatprep.subr.bf16.mxu0 %v7152_v18  ;;  %3398 = vmatpush1.bf16.msra.mxu1 %v7153_v14  ;;  %v7163_v18 = vld [vmem:[#allocation73_spill] sm:$0xff]  ;;  %v7164_v14 = vld [vmem:[#allocation80_spill] sm:$0xff] }
 0x18f   : > { %3400 = vmatprep.subr.bf16.mxu1 %v7154_v56  ;;  %v7165_v56 = vld [vmem:[#allocation82_spill] sm:$0xff] }
 0x191   : > { %3782 = vmatpush1.bf16.msra.mxu0 %v7155_v9  ;;  %v7166_v9 = vld [vmem:[#allocation88_spill] sm:$0xff] }
 0x192   : > { %3784 = vmatprep.subr.bf16.mxu0 %v7156_v38  ;;  %3402 = vmatpush1.bf16.msra.mxu1 %v7157_v51  ;;  %v7167_v38 = vld [vmem:[#allocation85_spill] sm:$0xff]  ;;  %v7168_v51 = vld [vmem:[#allocation92_spill] sm:$0xff] }
 0x193   : > { %3404 = vmatprep.subr.bf16.mxu1 %v7158_v35  ;;  %v7169_v35 = vld [vmem:[#allocation94_spill] sm:$0xff] }
 0x195   : > { %3786 = vmatpush1.bf16.msra.mxu0 %v7159_v48  ;;  %v7170_v48 = vld [vmem:[#allocation100_spill] sm:$0xff] }
 0x196   : > { %3788 = vmatprep.subr.bf16.mxu0 %v7160_v60  ;;  %3406 = vmatpush1.bf16.msra.mxu1 %v7161_v19  ;;  %v7171_v60 = vld [vmem:[#allocation97_spill] sm:$0xff]  ;;  %v7172_v19 = vld [vmem:[#allocation104_spill] sm:$0xff] }
 0x197   : > { %3408 = vmatprep.subr.bf16.mxu1 %v7162_v34  ;;  %v7173_v34 = vld [vmem:[#allocation106_spill] sm:$0xff] }
 0x199   : > { %3790 = vmatpush1.bf16.msra.mxu0 %v7163_v18  ;;  %v7174_v18 = vld [vmem:[#allocation112_spill] sm:$0xff] }
 0x19a   : > { %3792 = vmatprep.subr.bf16.mxu0 %v7164_v14  ;;  %3410 = vmatpush1.bf16.msra.mxu1 %v7165_v56  ;;  %v7175_v14 = vld [vmem:[#allocation109_spill] sm:$0xff]  ;;  %v7176_v56 = vld [vmem:[#allocation116_spill] sm:$0xff] }
 0x19b   : > { %3412 = vmatprep.subr.bf16.mxu1 %v7166_v9  ;;  %v7177_v9 = vld [vmem:[#allocation118_spill] sm:$0xff] }
 0x19d   : > { %3794 = vmatpush1.bf16.msra.mxu0 %v7167_v38  ;;  %v7178_v38 = vld [vmem:[#allocation124_spill] sm:$0xff] }
 0x19e   : > { %3796 = vmatprep.subr.bf16.mxu0 %v7168_v51  ;;  %3414 = vmatpush1.bf16.msra.mxu1 %v7169_v35  ;;  %v7179_v51 = vld [vmem:[#allocation121_spill] sm:$0xff]  ;;  %v7180_v35 = vld [vmem:[#allocation128_spill] sm:$0xff] }
 0x19f   : > { %3416 = vmatprep.subr.bf16.mxu1 %v7170_v48  ;;  %v7181_v48 = vld [vmem:[#allocation130_spill] sm:$0xff] }
 0x1a1   : > { %3798 = vmatpush1.bf16.msra.mxu0 %v7171_v60  ;;  %v7182_v60 = vld [vmem:[#allocation136_spill] sm:$0xff] }
 0x1a2   : > { %3800 = vmatprep.subr.bf16.mxu0 %v7172_v19  ;;  %3418 = vmatpush1.bf16.msra.mxu1 %v7173_v34  ;;  %v7183_v19 = vld [vmem:[#allocation133_spill] sm:$0xff]  ;;  %v7184_v34 = vld [vmem:[#allocation140_spill] sm:$0xff] }
 0x1a3   : > { %3420 = vmatprep.subr.bf16.mxu1 %v7174_v18  ;;  %v7185_v18 = vld [vmem:[#allocation142_spill] sm:$0xff] }
 0x1a5   : > { %3802 = vmatpush1.bf16.msra.mxu0 %v7175_v14  ;;  %v7186_v14 = vld [vmem:[#allocation148_spill] sm:$0xff] }
 0x1a6   : > { %3804 = vmatprep.subr.bf16.mxu0 %v7176_v56  ;;  %3422 = vmatpush1.bf16.msra.mxu1 %v7177_v9  ;;  %v7187_v56 = vld [vmem:[#allocation145_spill] sm:$0xff]  ;;  %v7188_v9 = vld [vmem:[#allocation152_spill] sm:$0xff] }
 0x1a7   : > { %3424 = vmatprep.subr.bf16.mxu1 %v7178_v38  ;;  %v7189_v38 = vld [vmem:[#allocation154_spill] sm:$0xff] }
 0x1a9   : > { %3806 = vmatpush1.bf16.msra.mxu0 %v7179_v51  ;;  %v7190_v51 = vld [vmem:[#allocation160_spill] sm:$0xff] }
 0x1aa   : > { %3808 = vmatprep.subr.bf16.mxu0 %v7180_v35  ;;  %3426 = vmatpush1.bf16.msra.mxu1 %v7181_v48  ;;  %v7191_v35 = vld [vmem:[#allocation157_spill] sm:$0xff]  ;;  %v7192_v48 = vld [vmem:[#allocation164_spill] sm:$0xff] }
 0x1ab   : > { %3428 = vmatprep.subr.bf16.mxu1 %v7182_v60  ;;  %v7193_v60 = vld [vmem:[#allocation166_spill] sm:$0xff] }
 0x1ad   : > { %3810 = vmatpush1.bf16.msra.mxu0 %v7183_v19  ;;  %v7194_v19 = vld [vmem:[#allocation172_spill] sm:$0xff] }
 0x1ae   : > { %3812 = vmatprep.subr.bf16.mxu0 %v7184_v34  ;;  %3430 = vmatpush1.bf16.msra.mxu1 %v7185_v18  ;;  %v7195_v34 = vld [vmem:[#allocation169_spill] sm:$0xff]  ;;  %v7196_v18 = vld [vmem:[#allocation176_spill] sm:$0xff] }
 0x1af   : > { %3432 = vmatprep.subr.bf16.mxu1 %v7186_v14  ;;  %v7197_v14 = vld [vmem:[#allocation178_spill] sm:$0xff] }
 0x1b1   : > { %3814 = vmatpush1.bf16.msra.mxu0 %v7187_v56  ;;  %v7198_v56 = vld [vmem:[#allocation184_spill] sm:$0xff] }
 0x1b2   : > { %3816 = vmatprep.subr.bf16.mxu0 %v7188_v9  ;;  %3434 = vmatpush1.bf16.msra.mxu1 %v7189_v38  ;;  %v7199_v9 = vld [vmem:[#allocation181_spill] sm:$0xff]  ;;  %v7200_v38 = vld [vmem:[#allocation188_spill] sm:$0xff] }
 0x1b3   : > { %3436 = vmatprep.subr.bf16.mxu1 %v7190_v51  ;;  %v7201_v51 = vld [vmem:[#allocation190_spill] sm:$0xff] }
 0x1b5   : > { %3818 = vmatpush1.bf16.msra.mxu0 %v7191_v35  ;;  %v7202_v35 = vld [vmem:[#allocation196_spill] sm:$0xff] }
 0x1b6   : > { %3820 = vmatprep.subr.bf16.mxu0 %v7192_v48  ;;  %3438 = vmatpush1.bf16.msra.mxu1 %v7193_v60  ;;  %v7203_v48 = vld [vmem:[#allocation17_spill] sm:$0xff] }
 0x1b7   : > { %3440 = vmatprep.subr.bf16.mxu1 %v7194_v19  ;;  %v7204_v60 = vand.u32 4294901760, %v7203_v48  ;;  %v7206_v19 = vand.u32 4294901760, %v7205_v10  ;;  %v7218_v48 = vld [vmem:[#allocation28_spill] sm:$0xff] }
 0x1b8   : > { %v7219_v10 = vand.u32 4294901760, %v7218_v48  ;;  %v7232_v48 = vld [vmem:[#allocation34_spill] sm:$0xff] }
 0x1b9   : > { %3822 = vmatpush1.bf16.msra.mxu0 %v7195_v34  ;;  %v3451_v54 = vpack.c.bf16 %v7206_v19, %v7204_v60  ;;  %v7207_v34 = vld [vmem:[#allocation193_spill] sm:$0xff]  ;;  %v7220_v19 = vld [vmem:[#allocation30_spill] sm:$0xff] }
 0x1ba   : > { %3824 = vmatprep.subr.bf16.mxu0 %v7196_v18  ;;  %3442 = vmatpush1.bf16.msra.mxu1 %v7197_v14  ;;  %v7208_v18 = vld [vmem:[#allocation200_spill] sm:$0xff]  ;;  %v7209_v14 = vld [vmem:[#allocation202_spill] sm:$0xff]  ;;  %v7221_v60 = vand.u32 4294901760, %v7220_v19  ;;  %v7233_v19 = vand.u32 4294901760, %v7232_v48  ;;  %v7249_v48 = vld [vmem:[#allocation45_spill] sm:$0xff] }
 0x1bb   : > { %3444 = vmatprep.subr.bf16.mxu1 %v7198_v56  ;;  %v7210_v56 = vld [vmem:[#allocation19_spill] sm:$0xff] }
 0x1bc   : > { %v7211_v12 = vand.u32 4294901760, %v7210_v56  ;;  %v7224_v56 = vld [vmem:[#allocation26_spill] sm:$0xff] }
 0x1bd   : > { %3826 = vmatpush1.bf16.msra.mxu0 %v7199_v9  ;;  %v7212_v9 = vld [vmem:[#allocation21_spill] sm:$0xff] }
 0x1be   : > { %3828 = vmatprep.subr.bf16.mxu0 %v7200_v38  ;;  %3446 = vmatpush1.bf16.msra.mxu1 %v7201_v51  ;;  %v7213_v43 = vand.u32 4294901760, %v7212_v9  ;;  %v7215_v51 = vand.u32 4294901760, %v7214_v57  ;;  %v7226_v9 = vld [vmem:[#allocation27_spill] sm:$0xff]  ;;  %v7228_v57 = vld [vmem:[#allocation32_spill] sm:$0xff] }
 0x1bf   : > { %3448 = vmatprep.subr.bf16.mxu1 %v7202_v35  ;;  %v7217_v35 = vand.u32 4294901760, %v7216_v22  ;;  %v7229_v22 = vand.u32 4294901760, %v7228_v57 }
 0x1c0   : > { %v3835_v38 = vpack.c.bf16 %v7213_v43, %v7211_v12  ;;  %v7227_v43 = vand.u32 4294901760, %v7226_v9  ;;  %v7240_v9 = vld [vmem:[#allocation208_spill] sm:$0xff] }
 0x1c1   : > { %3830 = vmatpush1.bf16.msra.mxu0 %v7207_v34  ;;  %v3453_v44 = vpack.c.bf16 %v7217_v35, %v7215_v51  ;;  %v3455_v34 = vpack.c.bf16 %v7221_v60, %v7219_v10  ;;  %v7234_v10 = vld [vmem:[#allocation36_spill] sm:$0xff] }
 0x1c2   : > { %3832 = vmatprep.subr.bf16.mxu0 %v7208_v18  ;;  %3450 = vmatpush1.bf16.msra.mxu1 %v7209_v14  ;;  %v7223_v14 = vand.u32 4294901760, %v7138_v63  ;;  %v7225_v18 = vand.u32 4294901760, %v7224_v56  ;;  %v7235_v60 = vand.u32 4294901760, %v7234_v10  ;;  %v7236_v63 = vld [vmem:[#allocation41_spill] sm:$0xff]  ;;  %v7239_v56 = vand.u32 4294901760, %v7238_v49  ;;  %v7251_v10 = vld [vmem:[#allocation47_spill] sm:$0xff] }
 0x1c3   : > { %3452 = vmatprep.subr.bf16.mxu1 %v3451_v54  ;;  %v7230_v54 = vld [vmem:[#allocation33_spill] sm:$0xff]  ;;  %v7250_v49 = vand.u32 4294901760, %v7249_v48 }
 0x1c4   : > { %v3837_v12 = vpack.c.bf16 %v7227_v43, %v7225_v18  ;;  %v7231_v51 = vand.u32 4294901760, %v7230_v54  ;;  %v7242_v18 = vld [vmem:[#allocation37_spill] sm:$0xff]  ;;  %v7244_v43 = vld [vmem:[#allocation39_spill] sm:$0xff] }
 0x1c5   : > { %3834 = vmatpush1.bf16.msra.mxu0 %v7222_v30  ;;  %1330 = vmatmul.mubr.f32.vlgmr.msra.gmra.mrb[0].mxu1 %v7223_v14  ;;  %v3457_v30 = vpack.c.bf16 %v7235_v60, %v7233_v19  ;;  %v7237_v14 = vand.u32 4294901760, %v7236_v63  ;;  %v7245_v57 = vand.u32 4294901760, %v7244_v43  ;;  %v7246_v54 = vld [vmem:[#allocation211_spill] sm:$0xff]  ;;  %v7252_v60 = vand.u32 4294901760, %v7251_v10  ;;  %v7253_v63 = vld [vmem:[#allocation48_spill] sm:$0xff]  ;;  %v7259_v43 = vld [vmem:[#allocation50_spill] sm:$0xff] }
 0x1c6   : > { %3836 = vmatprep.subr.bf16.mxu0 %v3835_v38  ;;  %3454 = vmatpush1.bf16.msra.mxu1 %v3453_v44  ;;  %v3839_v35 = vpack.c.bf16 %v7231_v51, %v7229_v22  ;;  %v7241_v44 = vand.u32 4294901760, %v7144_v46  ;;  %v7243_v38 = vand.u32 4294901760, %v7242_v18  ;;  %v7254_v46 = vand.u32 4294901760, %v7253_v63 }
 0x1c7   : > { %3456 = vmatprep.subr.bf16.mxu1 %v3455_v34  ;;  %v3459_v36 = vpack.c.bf16 %v7239_v56, %v7237_v14  ;;  %1593 = vmatprep.mubr.f32.mxu1 %v7240_v9  ;;  %v7247_v34 = vld [vmem:[#allocation44_spill] sm:$0xff] }
 0x1c8   : > { %2625 = vmatmul.mubr.f32.vlgmr.msra.gmra.mrb[0].mxu0 %v7241_v44  ;;  %v3841_v22 = vpack.c.bf16 %v7245_v57, %v7243_v38  ;;  %v7248_v51 = vand.u32 4294901760, %v7247_v34  ;;  %v3461_v14 = vpack.c.bf16 %v7254_v46, %v7252_v60  ;;  %v7257_v44 = vld [vmem:[#allocation54_spill] sm:$0xff]  ;;  %v7269_v46 = vld [vmem:[#allocation60_spill] sm:$0xff] }
 0x1c9   : > { %3838 = vmatpush1.bf16.msra.mxu0 %v3837_v12  ;;  %2888 = vmatprep.mubr.f32.mxu0 %v7246_v54  ;;  %v7255_v12 = vld [vmem:[#allocation53_spill] sm:$0xff]  ;;  %v7258_v18 = vand.u32 4294901760, %v7257_v44  ;;  %v7267_v60 = vld [vmem:[#allocation58_spill] sm:$0xff] }
 0x1ca   : > { %3840 = vmatprep.subr.bf16.mxu0 %v3839_v35  ;;  %3458 = vmatpush1.bf16.msra.mxu1 %v3457_v30  ;;  %v3843_v19 = vpack.c.bf16 %v7250_v49, %v7248_v51  ;;  %v7256_v56 = vand.u32 4294901760, %v7255_v12  ;;  %v7260_v35 = vand.u32 4294901760, %v7259_v43  ;;  %v7261_v30 = vld [vmem:[#allocation51_spill] sm:$0xff]  ;;  %v7263_v51 = vld [vmem:[#allocation56_spill] sm:$0xff]  ;;  %v7265_v49 = vld [vmem:[#allocation57_spill] sm:$0xff]  ;;  %v7270_v12 = vand.u32 4294901760, %v7269_v46 }
 0x1cb   : > { %3460 = vmatprep.subr.bf16.mxu1 %v3459_v36  ;;  %v7262_v57 = vand.u32 4294901760, %v7261_v30  ;;  %v7264_v48 = vand.u32 4294901760, %v7263_v51  ;;  %v7266_v10 = vand.u32 4294901760, %v7265_v49  ;;  %v7268_v36 = vand.u32 4294901760, %v7267_v60  ;;  %v7273_v44 = vld [vmem:[#allocation66_spill] sm:$0xff]  ;;  %v7279_v51 = vld [vmem:[#allocation67_spill] sm:$0xff] }
 0x1cc   : > { %v3463_v38 = vpack.c.bf16 %v7258_v18, %v7256_v56  ;;  %v7271_v56 = vld [vmem:[#allocation65_spill] sm:$0xff]  ;;  %v7274_v18 = vand.u32 4294901760, %v7273_v44  ;;  %v7285_v46 = vld [vmem:[#allocation72_spill] sm:$0xff]  ;;  %v7289_v44 = vld [vmem:[#allocation78_spill] sm:$0xff] }
 0x1cd   : > { %3842 = vmatpush1.bf16.msra.mxu0 %v3841_v22  ;;  %v3845_v34 = vpack.c.bf16 %v7262_v57, %v7260_v35  ;;  %v3847_v63 = vpack.c.bf16 %v7266_v10, %v7264_v48  ;;  %v3465_v54 = vpack.c.bf16 %v7270_v12, %v7268_v36  ;;  %v7272_v22 = vand.u32 4294901760, %v7271_v56  ;;  %v7275_v35 = vld [vmem:[#allocation62_spill] sm:$0xff]  ;;  %v7281_v49 = vld [vmem:[#allocation69_spill] sm:$0xff]  ;;  %v7283_v36 = vld [vmem:[#allocation71_spill] sm:$0xff] }
 0x1ce   : > { %3844 = vmatprep.subr.bf16.mxu0 %v3843_v19  ;;  %3462 = vmatpush1.bf16.msra.mxu1 %v3461_v14  ;;  %v7276_v19 = vand.u32 4294901760, %v7275_v35  ;;  %v7277_v14 = vld [vmem:[#allocation63_spill] sm:$0xff]  ;;  %v7280_v48 = vand.u32 4294901760, %v7279_v51  ;;  %v7282_v10 = vand.u32 4294901760, %v7281_v49  ;;  %v7286_v12 = vand.u32 4294901760, %v7285_v46  ;;  %v7297_v49 = vld [vmem:[#allocation81_spill] sm:$0xff] }
 0x1cf   : > { %3464 = vmatprep.subr.bf16.mxu1 %v3463_v38  ;;  %v3467_v43 = vpack.c.bf16 %v7274_v18, %v7272_v22  ;;  %v7278_v30 = vand.u32 4294901760, %v7277_v14  ;;  %v7284_v38 = vand.u32 4294901760, %v7283_v36  ;;  %v7287_v22 = vld [vmem:[#allocation77_spill] sm:$0xff]  ;;  %v7290_v18 = vand.u32 4294901760, %v7289_v44  ;;  %v7295_v51 = vld [vmem:[#allocation79_spill] sm:$0xff]  ;;  %v7301_v46 = vld [vmem:[#allocation84_spill] sm:$0xff] }
 0x1d0   : > { %v3851_v60 = vpack.c.bf16 %v7282_v10, %v7280_v48  ;;  %v7296_v48 = vand.u32 4294901760, %v7295_v51  ;;  %v7298_v10 = vand.u32 4294901760, %v7297_v49  ;;  %v7305_v44 = vld [vmem:[#allocation90_spill] sm:$0xff]  ;;  %v7311_v51 = vld [vmem:[#allocation91_spill] sm:$0xff]  ;;  %v7313_v49 = vld [vmem:[#allocation93_spill] sm:$0xff] }
 0x1d1   : > { %3846 = vmatpush1.bf16.msra.mxu0 %v3845_v34  ;;  %v3849_v57 = vpack.c.bf16 %v7278_v30, %v7276_v19  ;;  %v3469_v56 = vpack.c.bf16 %v7286_v12, %v7284_v38  ;;  %v7288_v34 = vand.u32 4294901760, %v7287_v22  ;;  %v7291_v19 = vld [vmem:[#allocation74_spill] sm:$0xff]  ;;  %v7299_v38 = vld [vmem:[#allocation83_spill] sm:$0xff]  ;;  %v7302_v12 = vand.u32 4294901760, %v7301_v46  ;;  %v7317_v46 = vld [vmem:[#allocation96_spill] sm:$0xff] }
 0x1d2   : > { %3848 = vmatprep.subr.bf16.mxu0 %v3847_v63  ;;  %3466 = vmatpush1.bf16.msra.mxu1 %v3465_v54  ;;  %v7292_v63 = vand.u32 4294901760, %v7291_v19  ;;  %v7293_v54 = vld [vmem:[#allocation75_spill] sm:$0xff]  ;;  %v3855_v36 = vpack.c.bf16 %v7298_v10, %v7296_v48  ;;  %v7312_v48 = vand.u32 4294901760, %v7311_v51  ;;  %v7314_v10 = vand.u32 4294901760, %v7313_v49 }
 0x1d3   : > { %3468 = vmatprep.subr.bf16.mxu1 %v3467_v43  ;;  %v3471_v35 = vpack.c.bf16 %v7290_v18, %v7288_v34  ;;  %v7294_v14 = vand.u32 4294901760, %v7293_v54  ;;  %v7300_v43 = vand.u32 4294901760, %v7299_v38  ;;  %v7303_v34 = vld [vmem:[#allocation89_spill] sm:$0xff]  ;;  %v7306_v18 = vand.u32 4294901760, %v7305_v44 }
 0x1d4   : > { %v3859_v38 = vpack.c.bf16 %v7314_v10, %v7312_v48  ;;  %v7331_v10 = vand.u32 4294901760, %v7087_v59  ;;  %v7338_v59 = vand.u32 4294901760, %v6953_v41  ;;  %v7345_v41 = vand.u32 4294901760, %v7014_v25 }
 0x1d5   : > { %3850 = vmatpush1.bf16.msra.mxu0 %v3849_v57  ;;  %v3853_v30 = vpack.c.bf16 %v7294_v14, %v7292_v63  ;;  %v3473_v22 = vpack.c.bf16 %v7302_v12, %v7300_v43  ;;  %v7304_v57 = vand.u32 4294901760, %v7303_v34  ;;  %v7307_v63 = vld [vmem:[#allocation86_spill] sm:$0xff]  ;;  %v7315_v43 = vld [vmem:[#allocation95_spill] sm:$0xff]  ;;  %v7318_v12 = vand.u32 4294901760, %v7317_v46 }
 0x1d6   : > { %3852 = vmatprep.subr.bf16.mxu0 %v3851_v60  ;;  %3470 = vmatpush1.bf16.msra.mxu1 %v3469_v56  ;;  %v7308_v60 = vand.u32 4294901760, %v7307_v63  ;;  %v7309_v56 = vld [vmem:[#allocation87_spill] sm:$0xff]  ;;  %v7352_v25 = vand.u32 4294901760, %v7019_v15 }
 0x1d7   : > { %3472 = vmatprep.subr.bf16.mxu1 %v3471_v35  ;;  %v3475_v19 = vpack.c.bf16 %v7306_v18, %v7304_v57  ;;  %v7310_v54 = vand.u32 4294901760, %v7309_v56  ;;  %v7316_v35 = vand.u32 4294901760, %v7315_v43  ;;  %v7320_v57 = vld [vmem:[#allocation102_spill] sm:$0xff]  ;;  %v7325_v56 = vand.u32 4294901760, %v7081_v17 }
 0x1d8   : > { %v7321_v44 = vand.u32 4294901760, %v7320_v57  ;;  %v7335_v43 = vand.u32 4294901760, %v6948_v28  ;;  %v7342_v28 = vand.u32 4294901760, %v6955_v33  ;;  %v7349_v33 = vand.u32 4294901760, %v7016_v40 }
 0x1d9   : > { %3854 = vmatpush1.bf16.msra.mxu0 %v3853_v30  ;;  %v3857_v14 = vpack.c.bf16 %v7310_v54, %v7308_v60  ;;  %v3477_v34 = vpack.c.bf16 %v7318_v12, %v7316_v35  ;;  %v7319_v30 = vand.u32 4294901760, %v7077_v0  ;;  %v7326_v54 = vand.u32 4294901760, %v7082_v58 }
 0x1da   : > { %3856 = vmatprep.subr.bf16.mxu0 %v3855_v36  ;;  %3474 = vmatpush1.bf16.msra.mxu1 %v3473_v22  ;;  %v7322_v36 = vand.u32 4294901760, %v7079_v50  ;;  %v7323_v22 = vld [vmem:[#allocation99_spill] sm:$0xff]  ;;  %v7328_v0 = vand.u32 4294901760, %v7084_v37  ;;  %v7330_v50 = vand.u32 4294901760, %v7086_v52  ;;  %v7333_v58 = vand.u32 4294901760, %v7089_v47 }
 0x1db   : > { %3476 = vmatprep.subr.bf16.mxu1 %v3475_v19  ;;  %v3479_v18 = vpack.c.bf16 %v7321_v44, %v7319_v30  ;;  %v7324_v63 = vand.u32 4294901760, %v7323_v22  ;;  %v3863_v51 = vpack.c.bf16 %v7326_v54, %v7325_v56  ;;  %v7327_v19 = vand.u32 4294901760, %v7083_v27 }
 0x1dc   : > { %v7334_v27 = vand.u32 4294901760, %v7090_v55  ;;  %v7337_v52 = vand.u32 4294901760, %v6952_v62  ;;  %v7340_v12 = vand.u32 4294901760, %v6951_v31  ;;  %v7341_v55 = vand.u32 4294901760, %v6954_v1 }
 0x1dd   : > { %3858 = vmatpush1.bf16.msra.mxu0 %v3857_v14  ;;  %v3861_v60 = vpack.c.bf16 %v7324_v63, %v7322_v36  ;;  %v3481_v48 = vpack.c.bf16 %v7328_v0, %v7327_v19  ;;  %v7329_v14 = vand.u32 4294901760, %v7085_v7  ;;  %v7336_v7 = vand.u32 4294901760, %v6949_v42  ;;  %v7365_v19 = vld [vmem:[#allocation159_spill] sm:$0xff] }
 0x1de   : > { %3860 = vmatprep.subr.bf16.mxu0 %v3859_v38  ;;  %3478 = vmatpush1.bf16.msra.mxu1 %v3477_v34  ;;  %v7332_v38 = vand.u32 4294901760, %v7088_v39  ;;  %v3867_v37 = vpack.c.bf16 %v7334_v27, %v7333_v58  ;;  %v3487_v46 = vpack.c.bf16 %v7338_v59, %v7337_v52  ;;  %v7339_v39 = vand.u32 4294901760, %v6950_v29  ;;  %v7382_v52 = vld [vmem:[#allocation175_spill] sm:$0xff] }
 0x1df   : > { %3480 = vmatprep.subr.bf16.mxu1 %v3479_v18  ;;  %v3483_v49 = vpack.c.bf16 %v7330_v50, %v7329_v14  ;;  %v3485_v35 = vpack.c.bf16 %v7336_v7, %v7335_v43  ;;  %v3871_v42 = vpack.c.bf16 %v7342_v28, %v7341_v55  ;;  %v7343_v34 = vand.u32 4294901760, %v6956_v26  ;;  %v7370_v14 = vld [vmem:[#allocation167_spill] sm:$0xff]  ;;  %v7388_v28 = vld [vmem:[#allocation180_spill] sm:$0xff] }
 0x1e0   : > { %v3865_v17 = vpack.c.bf16 %v7332_v38, %v7331_v10  ;;  %v3869_v47 = vpack.c.bf16 %v7340_v12, %v7339_v39  ;;  %v7344_v62 = vand.u32 4294901760, %v6957_v8  ;;  %v7346_v29 = vand.u32 4294901760, %v7015_v5  ;;  %v7380_v7 = vld [vmem:[#allocation171_spill] sm:$0xff] }
 0x1e1   : > { %3862 = vmatpush1.bf16.msra.mxu0 %v3861_v60  ;;  %v7347_v31 = vand.u32 4294901760, %v6958_v4  ;;  %v7348_v44 = vand.u32 4294901760, %v7013_v24  ;;  %v7350_v26 = vand.u32 4294901760, %v7017_v3  ;;  %v7351_v18 = vand.u32 4294901760, %v7018_v23 }
 0x1e2   : > { %3864 = vmatprep.subr.bf16.mxu0 %v3863_v51  ;;  %3482 = vmatpush1.bf16.msra.mxu1 %v3481_v48  ;;  %v3489_v30 = vpack.c.bf16 %v7344_v62, %v7343_v34  ;;  %v3491_v57 = vpack.c.bf16 %v7346_v29, %v7345_v41  ;;  %v7353_v5 = vand.u32 4294901760, %v7022_v45  ;;  %v7354_v4 = vand.u32 4294901760, %v7023_v32  ;;  %v7390_v62 = vld [vmem:[#allocation185_spill] sm:$0xff]  ;;  %v7392_v41 = vld [vmem:[#allocation186_spill] sm:$0xff] }
 0x1e3   : > { %3484 = vmatprep.subr.bf16.mxu1 %v3483_v49  ;;  %v3873_v1 = vpack.c.bf16 %v7348_v44, %v7347_v31  ;;  %v3875_v8 = vpack.c.bf16 %v7350_v26, %v7349_v33  ;;  %v3493_v36 = vpack.c.bf16 %v7352_v25, %v7351_v18  ;;  %v7355_v24 = vand.u32 4294901760, %v7020_v53  ;;  %v7372_v49 = vld [vmem:[#allocation168_spill] sm:$0xff]  ;;  %v7394_v31 = vld [vmem:[#allocation182_spill] sm:$0xff]  ;;  %v7400_v25 = vld [vmem:[#allocation189_spill] sm:$0xff] }
 0x1e4   : > { %v3495_v22 = vpack.c.bf16 %v7354_v4, %v7353_v5  ;;  %v7356_v63 = vand.u32 4294901760, %v7021_v2  ;;  %v7357_v3 = vand.u32 4294901760, %v7024_v6  ;;  %v7358_v23 = vand.u32 4294901760, %v7025_v13  ;;  %v7363_v2 = vld [vmem:[#allocation158_spill] sm:$0xff]  ;;  %v7402_v4 = vld [vmem:[#allocation191_spill] sm:$0xff] }
 0x1e5   : > { %3866 = vmatpush1.bf16.msra.mxu0 %v3865_v17  ;;  %v7359_v60 = vand.u32 4294901760, %v7026_v11  ;;  %v7360_v45 = vand.u32 4294901760, %v7027_v21  ;;  %v7361_v32 = vand.u32 4294901760, %v7030_v61  ;;  %v7362_v53 = vand.u32 4294901760, %v7031_v16  ;;  %v7368_v11 = vld [vmem:[#allocation165_spill] sm:$0xff]  ;;  %v7376_v17 = vld [vmem:[#allocation174_spill] sm:$0xff] }
 0x1e6   : > { %3868 = vmatprep.subr.bf16.mxu0 %v3867_v37  ;;  %3486 = vmatpush1.bf16.msra.mxu1 %v3485_v35  ;;  %v3877_v40 = vpack.c.bf16 %v7356_v63, %v7355_v24  ;;  %v3879_v15 = vpack.c.bf16 %v7358_v23, %v7357_v3  ;;  %v7364_v51 = vand.u32 4294901760, %v7363_v2  ;;  %v7366_v0 = vand.u32 4294901760, %v7365_v19  ;;  %v7374_v16 = vld [vmem:[#allocation173_spill] sm:$0xff]  ;;  %v7378_v37 = vld [vmem:[#allocation170_spill] sm:$0xff]  ;;  %v7404_v24 = vld [vmem:[#allocation192_spill] sm:$0xff] }
 0x1e7   : > { %3488 = vmatprep.subr.bf16.mxu1 %v3487_v46  ;;  %v3497_v56 = vpack.c.bf16 %v7360_v45, %v7359_v60  ;;  %v3499_v54 = vpack.c.bf16 %v7362_v53, %v7361_v32  ;;  %v7367_v13 = vand.u32 4294901760, %v7033_v20  ;;  %v7369_v48 = vand.u32 4294901760, %v7368_v11  ;;  %v7384_v46 = vld [vmem:[#allocation177_spill] sm:$0xff]  ;;  %v7412_v53 = vld [vmem:[#allocation195_spill] sm:$0xff] }
 0x1e8   : > { %v3881_v6 = vpack.c.bf16 %v7366_v0, %v7364_v51  ;;  %v7371_v50 = vand.u32 4294901760, %v7370_v14  ;;  %v7373_v61 = vand.u32 4294901760, %v7372_v49  ;;  %v7375_v38 = vand.u32 4294901760, %v7374_v16  ;;  %v7406_v3 = vld [vmem:[#allocation197_spill] sm:$0xff]  ;;  %v7414_v51 = vld [vmem:[#allocation199_spill] sm:$0xff]  ;;  %v7422_v49 = vld [vmem:[#allocation206_spill] sm:$0xff] }
 0x1e9   : > { %3870 = vmatpush1.bf16.msra.mxu0 %v3869_v47  ;;  %v3883_v21 = vpack.c.bf16 %v7369_v48, %v7367_v13  ;;  %v7377_v58 = vand.u32 4294901760, %v7376_v17  ;;  %v7379_v43 = vand.u32 4294901760, %v7378_v37  ;;  %v7381_v35 = vand.u32 4294901760, %v7380_v7  ;;  %v7386_v47 = vld [vmem:[#allocation179_spill] sm:$0xff]  ;;  %v7416_v0 = vld [vmem:[#allocation201_spill] sm:$0xff]  ;;  %v7426_v17 = vld [vmem:[#allocation16_spill] sm:$0xff] }
 0x1ea   : > { %3872 = vmatprep.subr.bf16.mxu0 %v3871_v42  ;;  %3490 = vmatpush1.bf16.msra.mxu1 %v3489_v30  ;;  %v3501_v10 = vpack.c.bf16 %v7373_v61, %v7371_v50  ;;  %v7383_v59 = vand.u32 4294901760, %v7382_v52  ;;  %v7385_v39 = vand.u32 4294901760, %v7384_v46  ;;  %v7387_v55 = vand.u32 4294901760, %v7386_v47  ;;  %v7418_v11 = vld [vmem:[#allocation203_spill] sm:$0xff]  ;;  %v7429_v37 = vld [vmem:[#allocation22_spill] sm:$0xff]  ;;  %v7431_v7 = vld [vmem:[#allocation213_spill] sm:$0xff] }
 0x1eb   : > { %3492 = vmatprep.subr.bf16.mxu1 %v3491_v57  ;;  %v3503_v27 = vpack.c.bf16 %v7377_v58, %v7375_v38  ;;  %v3885_v20 = vpack.c.bf16 %v7381_v35, %v7379_v43  ;;  %v7389_v42 = vand.u32 4294901760, %v7388_v28  ;;  %v7391_v30 = vand.u32 4294901760, %v7390_v62  ;;  %v7427_v58 = vld [vmem:[#allocation209_spill] sm:$0xff]  ;;  %v7434_v52 = vld [vmem:[#allocation31_spill] sm:$0xff]  ;;  %v7436_v46 = vld [vmem:[#allocation40_spill] sm:$0xff] }
 0x1ec   : > { %v3887_v12 = vpack.c.bf16 %v7385_v39, %v7383_v59  ;;  %v7393_v29 = vand.u32 4294901760, %v7392_v41  ;;  %v7395_v44 = vand.u32 4294901760, %v7394_v31  ;;  %v7405_v63 = vand.u32 4294901760, %v7404_v24  ;;  %v7430_v43 = vld [vmem:[#allocation29_spill] sm:$0xff]  ;;  %v7435_v59 = vld [vmem:[#allocation35_spill] sm:$0xff]  ;;  %v7437_v39 = vld [vmem:[#allocation38_spill] sm:$0xff] }
 0x1ed   : > { %3874 = vmatpush1.bf16.msra.mxu0 %v3873_v1  ;;  %v3505_v34 = vpack.c.bf16 %v7389_v42, %v7387_v55  ;;  %v7396_v1 = vld [vmem:[#allocation183_spill] sm:$0xff]  ;;  %v7407_v23 = vand.u32 4294901760, %v7406_v3  ;;  %v7415_v19 = vand.u32 4294901760, %v7414_v51  ;;  %v7419_v48 = vand.u32 4294901760, %v7418_v11  ;;  %v7432_v35 = vld [vmem:[#allocation25_spill] sm:$0xff]  ;;  %v7439_v47 = vld [vmem:[#allocation46_spill] sm:$0xff] }
 0x1ee   : > { %3876 = vmatprep.subr.bf16.mxu0 %v3875_v8  ;;  %3494 = vmatpush1.bf16.msra.mxu1 %v3493_v36  ;;  %v3507_v57 = vpack.c.bf16 %v7393_v29, %v7391_v30  ;;  %v7397_v33 = vand.u32 4294901760, %v7396_v1  ;;  %v7398_v8 = vld [vmem:[#allocation187_spill] sm:$0xff]  ;;  %v7401_v36 = vand.u32 4294901760, %v7400_v25  ;;  %v7423_v61 = vand.u32 4294901760, %v7422_v49  ;;  %v7440_v55 = vld [vmem:[#allocation52_spill] sm:$0xff]  ;;  %v7445_v62 = vld [vmem:[#allocation61_spill] sm:$0xff] }
 0x1ef   : > { %3496 = vmatprep.subr.bf16.mxu1 %v3495_v22  ;;  %v7399_v18 = vand.u32 4294901760, %v7398_v8  ;;  %v7403_v22 = vand.u32 4294901760, %v7402_v4  ;;  %v7442_v28 = vld [vmem:[#allocation55_spill] sm:$0xff]  ;;  %v7446_v30 = vld [vmem:[#allocation68_spill] sm:$0xff]  ;;  %v7447_v41 = vld [vmem:[#allocation70_spill] sm:$0xff] }
 0x1f0   : > { %v3889_v26 = vpack.c.bf16 %v7397_v33, %v7395_v44  ;;  %v7443_v42 = vld [vmem:[#allocation59_spill] sm:$0xff]  ;;  %v7448_v29 = vld [vmem:[#allocation76_spill] sm:$0xff]  ;;  %v7451_v44 = vld [vmem:[#allocation82_spill] sm:$0xff] }
 0x1f1   : > { %3878 = vmatpush1.bf16.msra.mxu0 %v3877_v40  ;;  %v3891_v5 = vpack.c.bf16 %v7401_v36, %v7399_v18  ;;  %v3509_v40 = vpack.c.bf16 %v7405_v63, %v7403_v22  ;;  %v7450_v31 = vld [vmem:[#allocation80_spill] sm:$0xff]  ;;  %v7453_v33 = vld [vmem:[#allocation85_spill] sm:$0xff]  ;;  %v7455_v8 = vld [vmem:[#allocation94_spill] sm:$0xff] }
 0x1f2   : > { %3880 = vmatprep.subr.bf16.mxu0 %v3879_v15  ;;  %3498 = vmatpush1.bf16.msra.mxu1 %v3497_v56  ;;  %v7408_v15 = vld [vmem:[#allocation198_spill] sm:$0xff]  ;;  %v7452_v1 = vld [vmem:[#allocation88_spill] sm:$0xff]  ;;  %v7457_v25 = vld [vmem:[#allocation97_spill] sm:$0xff] }
 0x1f3   : > { %3500 = vmatprep.subr.bf16.mxu1 %v3499_v54  ;;  %v7409_v60 = vand.u32 4294901760, %v7408_v15  ;;  %v7410_v56 = vld [vmem:[#allocation194_spill] sm:$0xff]  ;;  %v7413_v54 = vand.u32 4294901760, %v7412_v53  ;;  %v7456_v18 = vld [vmem:[#allocation100_spill] sm:$0xff]  ;;  %v7461_v22 = vld [vmem:[#allocation109_spill] sm:$0xff] }
 0x1f4   : > { %v7411_v32 = vand.u32 4294901760, %v7410_v56  ;;  %v7458_v36 = vld [vmem:[#allocation104_spill] sm:$0xff]  ;;  %v7463_v63 = vld [vmem:[#allocation118_spill] sm:$0xff]  ;;  %v7465_v3 = vld [vmem:[#allocation121_spill] sm:$0xff] }
 0x1f5   : > { %3882 = vmatpush1.bf16.msra.mxu0 %v3881_v6  ;;  %v3511_v45 = vpack.c.bf16 %v7409_v60, %v7407_v23  ;;  %v7417_v6 = vand.u32 4294901760, %v7416_v0  ;;  %v7460_v4 = vld [vmem:[#allocation112_spill] sm:$0xff]  ;;  %v7467_v15 = vld [vmem:[#allocation130_spill] sm:$0xff]  ;;  %v7477_v0 = vld [vmem:[#allocation157_spill] sm:$0xff] }
 0x1f6   : > { %3884 = vmatprep.subr.bf16.mxu0 %v3883_v21  ;;  %3502 = vmatpush1.bf16.msra.mxu1 %v3501_v10  ;;  %v3893_v2 = vpack.c.bf16 %v7413_v54, %v7411_v32  ;;  %v7420_v21 = vld [vmem:[#allocation204_spill] sm:$0xff]  ;;  %v7424_v10 = vld [vmem:[#allocation207_spill] sm:$0xff]  ;;  %v7471_v32 = vld [vmem:[#allocation142_spill] sm:$0xff] }
 0x1f7   : > { %3504 = vmatprep.subr.bf16.mxu1 %v3503_v27  ;;  %v3895_v13 = vpack.c.bf16 %v7417_v6, %v7415_v19  ;;  %v7421_v14 = vand.u32 4294901760, %v7420_v21  ;;  %v7425_v16 = vand.u32 4294901760, %v7424_v10  ;;  %v7428_v27 = vld [vmem:[#allocation20_spill] sm:$0xff]  ;;  %v7473_v54 = vld [vmem:[#allocation145_spill] sm:$0xff]  ;;  %v7475_v51 = vld [vmem:[#allocation154_spill] sm:$0xff] }
 0x1f8   : > { %v7462_v24 = vld [vmem:[#allocation116_spill] sm:$0xff]  ;;  %v7485_v49 = vld [vmem:[#allocation181_spill] sm:$0xff]  ;;  %v7487_v10 = vld [vmem:[#allocation190_spill] sm:$0xff] }
 0x1f9   : > { %3886 = vmatpush1.bf16.msra.mxu0 %v3885_v20  ;;  %v3513_v50 = vpack.c.bf16 %v7421_v14, %v7419_v48  ;;  %v3897_v38 = vpack.c.bf16 %v7425_v16, %v7423_v61  ;;  %v7433_v20 = vld [vmem:[#allocation211_spill] sm:$0xff]  ;;  %v7466_v23 = vld [vmem:[#allocation128_spill] sm:$0xff]  ;;  %v7481_v48 = vld [vmem:[#allocation169_spill] sm:$0xff] }
 0x1fa   : > { %3888 = vmatprep.subr.bf16.mxu0 %v3887_v12  ;;  %3506 = vmatpush1.bf16.msra.mxu1 %v3505_v34  ;;  %v7438_v12 = vld [vmem:[#allocation43_spill] sm:$0xff]  ;;  %v7444_v34 = vld [vmem:[#allocation64_spill] sm:$0xff]  ;;  %v7483_v14 = vld [vmem:[#allocation178_spill] sm:$0xff] }
 0x1fb   : > { %3508 = vmatprep.subr.bf16.mxu1 %v3507_v57  ;;  %v7449_v57 = vld [vmem:[#allocation73_spill] sm:$0xff]  ;;  %v7468_v60 = vld [vmem:[#allocation136_spill] sm:$0xff] }
 0x1fc   : > { %v7470_v56 = vld [vmem:[#allocation140_spill] sm:$0xff] }
 0x1fd   : > { %3890 = vmatpush1.bf16.msra.mxu0 %v3889_v26  ;;  %v7454_v26 = vld [vmem:[#allocation92_spill] sm:$0xff] }
 0x1fe   : > { %3892 = vmatprep.subr.bf16.mxu0 %v3891_v5  ;;  %3510 = vmatpush1.bf16.msra.mxu1 %v3509_v40  ;;  %v7459_v5 = vld [vmem:[#allocation106_spill] sm:$0xff]  ;;  %v7464_v40 = vld [vmem:[#allocation124_spill] sm:$0xff] }
 0x1ff   : > { %3512 = vmatprep.subr.bf16.mxu1 %v3511_v45  ;;  %v7469_v45 = vld [vmem:[#allocation133_spill] sm:$0xff]  ;;  %v7472_v53 = vld [vmem:[#allocation148_spill] sm:$0xff] }
 0x200   : > { %v7476_v19 = vld [vmem:[#allocation160_spill] sm:$0xff] }
 0x201   : > { %3894 = vmatpush1.bf16.msra.mxu0 %v3893_v2  ;;  %v7474_v2 = vld [vmem:[#allocation152_spill] sm:$0xff] }
 0x202   : > { %3896 = vmatprep.subr.bf16.mxu0 %v3895_v13  ;;  %3514 = vmatpush1.bf16.msra.mxu1 %v3513_v50  ;;  %v7478_v6 = vld [vmem:[#allocation164_spill] sm:$0xff]  ;;  %v7479_v13 = vld [vmem:[#allocation166_spill] sm:$0xff] }
 0x203   : > { %3516 = vmatprep.subr.bf16.mxu1 %v7426_v17  ;;  %v7480_v11 = vld [vmem:[#allocation172_spill] sm:$0xff] }
 0x204   : > { %v7482_v21 = vld [vmem:[#allocation176_spill] sm:$0xff] }
 0x205   : > { %3898 = vmatpush1.bf16.msra.mxu0 %v3897_v38  ;;  %1595 = vmatmul.mubr.f32.vlgmr.msra.gmra.mrb[0].mxu1 %v7427_v58  ;;  %v7484_v50 = vld [vmem:[#allocation184_spill] sm:$0xff]  ;;  %v7489_v38 = vld [vmem:[#allocation193_spill] sm:$0xff] }
 0x206   : > { %3900 = vmatprep.subr.bf16.mxu0 %v7428_v27  ;;  %3518 = vmatpush1.bf16.msra.mxu1 %v7429_v37  ;;  %v7486_v61 = vld [vmem:[#allocation188_spill] sm:$0xff]  ;;  %v7491_v27 = vld [vmem:[#allocation202_spill] sm:$0xff]  ;;  %v7492_v37 = vld [vmem:[#allocation205_spill] sm:$0xff] }
 0x207   : > { %3520 = vmatprep.subr.bf16.mxu1 %v7430_v43  ;;  %1730 = vmatprep.mubr.f32.mxu1 %v7240_v9  ;;  %v7441_v9 = vld [vmem:[#allocation49_spill] sm:$0xff]  ;;  %v7488_v16 = vld [vmem:[#allocation196_spill] sm:$0xff] }
 0x208   : > { %2890 = vmatmul.mubr.f32.vlgmr.msra.gmra.mrb[0].mxu0 %v7431_v7  ;;  %v7490_v17 = vld [vmem:[#allocation200_spill] sm:$0xff] }
 0x209   : > { %3902 = vmatpush1.bf16.msra.mxu0 %v7432_v35  ;;  %3025 = vmatprep.mubr.f32.mxu0 %v7433_v20 }
 0x20a   : > { %3904 = vmatprep.subr.bf16.mxu0 %v7434_v52  ;;  %3522 = vmatpush1.bf16.msra.mxu1 %v7435_v59  ;;  %v3034_v52 = vstv %s3033_s21 }
 0x20b   : > { %3524 = vmatprep.subr.bf16.mxu1 %v7436_v46 }
 0x20d   : > { %3906 = vmatpush1.bf16.msra.mxu0 %v7437_v39 }
 0x20e   : > { %3908 = vmatprep.subr.bf16.mxu0 %v7438_v12  ;;  %3526 = vmatpush1.bf16.msra.mxu1 %v7439_v47 }
 0x20f   : > { %3528 = vmatprep.subr.bf16.mxu1 %v7440_v55 }
 0x211   : > { %3910 = vmatpush1.bf16.msra.mxu0 %v7441_v9 }
 0x212   : > { %3912 = vmatprep.subr.bf16.mxu0 %v7442_v28  ;;  %3530 = vmatpush1.bf16.msra.mxu1 %v7443_v42 }
 0x213   : > { %3532 = vmatprep.subr.bf16.mxu1 %v7444_v34 }
 0x215   : > { %3914 = vmatpush1.bf16.msra.mxu0 %v7445_v62 }
 0x216   : > { %3916 = vmatprep.subr.bf16.mxu0 %v7446_v30  ;;  %3534 = vmatpush1.bf16.msra.mxu1 %v7447_v41  ;;  %v7493_v41 = vld [vmem:[#allocation15_spill] sm:$0xff] }
 0x217   : > { %3536 = vmatprep.subr.bf16.mxu1 %v7448_v29 }
 0x219   : > { %3918 = vmatpush1.bf16.msra.mxu0 %v7449_v57 }
 0x21a   : > { %3920 = vmatprep.subr.bf16.mxu0 %v7450_v31  ;;  %3538 = vmatpush1.bf16.msra.mxu1 %v7451_v44 }
 0x21b   : > { %3540 = vmatprep.subr.bf16.mxu1 %v7452_v1 }
 0x21d   : > { %3922 = vmatpush1.bf16.msra.mxu0 %v7453_v33 }
 0x21e   : > { %3924 = vmatprep.subr.bf16.mxu0 %v7454_v26  ;;  %3542 = vmatpush1.bf16.msra.mxu1 %v7455_v8 }
 0x21f   : > { %3544 = vmatprep.subr.bf16.mxu1 %v7456_v18 }
 0x221   : > { %3926 = vmatpush1.bf16.msra.mxu0 %v7457_v25 }
 0x222   : > { %3928 = vmatprep.subr.bf16.mxu0 %v7458_v36  ;;  %3546 = vmatpush1.bf16.msra.mxu1 %v7459_v5 }
 0x223   : > { %3548 = vmatprep.subr.bf16.mxu1 %v7460_v4 }
 0x225   : > { %3930 = vmatpush1.bf16.msra.mxu0 %v7461_v22 }
 0x226   : > { %3932 = vmatprep.subr.bf16.mxu0 %v7462_v24  ;;  %3550 = vmatpush1.bf16.msra.mxu1 %v7463_v63 }
 0x227   : > { %3552 = vmatprep.subr.bf16.mxu1 %v7464_v40 }
 0x229   : > { %3934 = vmatpush1.bf16.msra.mxu0 %v7465_v3 }
 0x22a   : > { %3936 = vmatprep.subr.bf16.mxu0 %v7466_v23  ;;  %3554 = vmatpush1.bf16.msra.mxu1 %v7467_v15 }
 0x22b   : > { %3556 = vmatprep.subr.bf16.mxu1 %v7468_v60 }
 0x22d   : > { %3938 = vmatpush1.bf16.msra.mxu0 %v7469_v45 }
 0x22e   : > { %3940 = vmatprep.subr.bf16.mxu0 %v7470_v56  ;;  %3558 = vmatpush1.bf16.msra.mxu1 %v7471_v32 }
 0x22f   : > { %3560 = vmatprep.subr.bf16.mxu1 %v7472_v53 }
 0x231   : > { %3942 = vmatpush1.bf16.msra.mxu0 %v7473_v54 }
 0x232   : > { %3944 = vmatprep.subr.bf16.mxu0 %v7474_v2  ;;  %3562 = vmatpush1.bf16.msra.mxu1 %v7475_v51 }
 0x233   : > { %3564 = vmatprep.subr.bf16.mxu1 %v7476_v19 }
 0x235   : > { %3946 = vmatpush1.bf16.msra.mxu0 %v7477_v0 }
 0x236   : > { %3948 = vmatprep.subr.bf16.mxu0 %v7478_v6  ;;  %3566 = vmatpush1.bf16.msra.mxu1 %v7479_v13 }
 0x237   : > { %3568 = vmatprep.subr.bf16.mxu1 %v7480_v11 }
 0x239   : > { %3950 = vmatpush1.bf16.msra.mxu0 %v7481_v48 }
 0x23a   : > { %3952 = vmatprep.subr.bf16.mxu0 %v7482_v21  ;;  %3570 = vmatpush1.bf16.msra.mxu1 %v7483_v14 }
 0x23b   : > { %3572 = vmatprep.subr.bf16.mxu1 %v7484_v50 }
 0x23d   : > { %3954 = vmatpush1.bf16.msra.mxu0 %v7485_v49 }
 0x23e   : > { %3956 = vmatprep.subr.bf16.mxu0 %v7486_v61  ;;  %3574 = vmatpush1.bf16.msra.mxu1 %v7487_v10 }
 0x23f   : > { %3576 = vmatprep.subr.bf16.mxu1 %v7488_v16 }
 0x241   : > { %3958 = vmatpush1.bf16.msra.mxu0 %v7489_v38 }
 0x242   : > { %3960 = vmatprep.subr.bf16.mxu0 %v7490_v17  ;;  %3578 = vmatpush1.bf16.msra.mxu1 %v7491_v27 }
 0x245   : > { %3962 = vmatpush1.bf16.msra.mxu0 %v7492_v37  ;;  %1732 = vmatmul.mubr.f32.vlgmr.msra.gmra.mrb[0].mxu1 %v7427_v58 }
 0x248   : > { %3027 = vmatmul.mubr.f32.vlgmr.msra.gmra.mrb[0].mxu0 %v7431_v7 }
 0x318   : > { %v1733_v43 = vpop.f32.mrb[0].mxu1 }
 0x319   : > { %v1735_v35 = vpop.f32.mrb[1].mxu1 }
 0x31b   : > { %v3028_v20 = vpop.f32.mrb[0].mxu0 }
 0x31c   : > { %v3963_v59 = vadd.f32 %v3028_v20, %v1733_v43  ;;  %v3030_v46 = vpop.f32.mrb[1].mxu0 }
 0x31d   : > { %v3964_v39 = vadd.f32 %v3030_v46, %v1735_v35 }
 0x31e   : > { %v3035_v12 = vadd.f32 %v3963_v59, %v3034_v52 }
 0x31f   : > { %v3036_v47 = vadd.f32 %v3964_v39, %v3034_v52 }
 0x320   : > { %v3186_v55 = vmul.f32 -1.442695, %v3035_v12 }
 0x321   : > { %v3187_v9 = vmul.f32 -1.442695, %v3036_v47 }
 0x322   : > { %4064 = vpow2.f32 %v3186_v55 }
 0x323   : > { %4066 = vpow2.f32 %v3187_v9 }
 0x32c   : > { %v4065_v28 = vpop.eup %4064 }
 0x32d   : > { %v4067_v58 = vpop.eup %4066  ;;  %v3043_v42 = vadd.f32 1.0, %v4065_v28 }
 0x32e   : > { %v3044_v7 = vadd.f32 1.0, %v4067_v58 }
 0x32f   : > { %4068 = vrcp.f32 %v3043_v42 }
 0x330   : > { %4070 = vrcp.f32 %v3044_v7 }
 0x339   : > { %v4069_v34 = vpop.eup %4068 }
 0x33a   : > { %v4071_v62 = vpop.eup %4070 }
 0x33b   : > { %v3051_v30 = vcombine.low %v4069_v34, %v4071_v62 }
 0x33d   : > { %v3058_v29 = vrot.slane %v3051_v30, %v7493_v41 }
 0x33f   : > { %v3065_v57 = vrot.slane %v3058_v29, %v7493_v41 }
 0x341   : > { %3067 = vst.msk [vmem:[%s218_s9] sm:$0x3] %vm4412_vm0, %v3065_v57 }
 0x342   : > { %4143 = shalt.err (!%p4140_p5)
}
 0x343   : > { %s4144_s7 = scalar_lea.hbm %s6116_s28, 32  ;;  %s4148_s13 = scalar_lea.hbm %s6170_s3, 64 }
 0x344   : > { %p4145_p9 = scmp.ne.s32.totalorder %s6116_s28, %s4144_s7  ;;  %p4149_p7 = scmp.lt.u32.totalorder %s6116_s28, %s6170_s3 }
 0x345   : > { %p4150_p3 = scmp.lt.u32.totalorder %s4148_s13, %s4144_s7  ;;  %p4152_p4 = scmp.lt.u32.totalorder %s4144_s7, %s6116_s28 }
 0x346   : > { %p4146_p1 = pnand %p4145_p9, %p4345_p10 }
 0x347   : > { %p4151_p13 = por %p4150_p3, %p4149_p7 }
 0x348   : > { %p4147_p2 = pneg %p4146_p1 }
 0x349   : > { %p4153_p6 = por %p4152_p4, %p4151_p13 }
 0x34b   : > { %p4154_p8 = pnand %p4153_p6, %p4147_p2 }
 0x34d   : > { %4157 = shalt.err (!%p4154_p8)
}
 0x34e   : > { %3991 = dma.vmem_to_hbm [thread:$0]  (%p4345_p10), %s6118_s10, 32, %s6116_s28, %s3069_s17  }
 0x34f PF: > { %s3095_s21 = sand.u32 1, %s4196_s14   ;;  %p7495_p12 = scmp.ne.s32.totalorder %s6690_s24, 0 }
 0x350   : > { %p7496_p11 = scmp.ge.s32.totalorder %s4216_s19, 2  ;;  %s3096_s23 = scalar_lea.sflag [#allocation7], %s3095_s21 }
 0x352   : > { %p4002_p0 = pnand %p7496_p11, %p7495_p12 }
 0x354   : > { %4191 = dma.done.wait (!%p4002_p0), %s3096_s23, 32  }
 0x355   : > { %4193 = vsyncadd (!%p4002_p0), %s3096_s23, 4294967264  ;;  %s21_s19 = sadd.s32 1, %s4216_s19   ;;  %s7497_s14 = smov %s4200_s15 }
 0x356   : > { %p18_p5 = scmp.ge.s32.totalorder %s21_s19, 4   ;;  %s7498_s15 = smov %s4204_s16 }
 0x357   : > { %s7499_s16 = smov %s4354_s5  ;;  %s7500_s17 = smov %s4212_s18 }
 0x358   : > { %s7501_s18 = smov %s7503_s29  ;;  %20 = sbr.rel (!%p18_p5) target bundleno = 9 (0x9), region = 90 }
 0x35f   :  { %3101 = vsyncpa [#allocation6], 1 }
 0x360   :  { %3103 = vsyncpa [#allocation6 + $0x1], 1 }
 0x361   :  { %3104 = vsyncpa [#allocation9], 1 }
 0x362   :  { %3105 = vsyncpa [#allocation7], 1 }
 0x363   :  { %3107 = vsyncpa [#allocation7 + $0x1], 1 }

</bundles_post_ra>
